<compile_context>
chip_gen: v6e
topology: v6e:2x2x1
jax: 0.10.0
libtpu: 0.0.40
codegen_flags: <defaults>
</compile_context>

<pallas_src>
import jax
import jax.numpy as jnp
from jax.experimental import pallas as pl
from jax.experimental.pallas import tpu as pltpu

HIDDEN = 128            # hidden width of the MLP
TILE_L = 128            # batch elements per lane-dense row (lane axis)
SUBL = 8                # sublane rows per block (min sublane tile)
BLOCK_B = SUBL * TILE_L  # batch elements per grid step (= 1024)


def _mlp_kernel(x_ref, w1_ref, b1_ref, w2t_ref, b2_ref, w3_ref, b3_ref, o_ref):
    """One grid step = SUBL * TILE_L batch elements.

    Activations are transposed: hidden on sublanes, batch on lanes, so all
    loads/stores are lane-dense and the only matmul is (128,128)@(128,128).
    """
    for r in range(SUBL):  # static unroll over the 8 sublane rows of the tile
        x_row = x_ref[pl.ds(r, 1), :]                                 # (1, TILE_L)

        # layer1: h1[j, i] = relu(w1[j] * x[i] + b1[j])   (outer product, VPU)
        h1 = jnp.maximum(w1_ref[...] * x_row + b1_ref[...], 0.0)      # (H, TILE_L) f32

        # layer2: h2 = relu(W2 @ h1 + b2)   -- bf16 MXU, f32 accumulate
        h2 = jnp.dot(w2t_ref[...], h1.astype(jnp.bfloat16),
                     preferred_element_type=jnp.float32)              # (H, TILE_L) f32
        h2 = jnp.maximum(h2 + b2_ref[...], 0.0)

        # layer3: y[i] = tanh(sum_k w3[k] * h2[k, i] + b3)  (VPU mul + XLU reduce)
        y = jnp.sum(w3_ref[...] * h2, axis=0, keepdims=True) + b3_ref[...]
        o_ref[pl.ds(r, 1), :] = jnp.tanh(y)                           # (1, TILE_L)


def nonlinear_regression(x, params):
    """x: (N, 1) float32; params in PyTorch nn.Linear layout. Returns (N, 1) f32."""
    w1, b1, w2, b2, w3, b3 = params
    n = x.shape[0]
    assert x.shape == (n, 1)

    # Pad the batch to a multiple of BLOCK_B and lay it out lane-dense:
    # batch element b lives at (b // TILE_L, b % TILE_L).
    n_pad = pl.cdiv(n, BLOCK_B) * BLOCK_B
    x_flat = jnp.pad(x.reshape(-1), (0, n_pad - n))
    x2d = x_flat.reshape(n_pad // TILE_L, TILE_L)      # rows are a multiple of SUBL
    n_blocks = n_pad // BLOCK_B

    # Kernel-layout parameters (hidden axis on sublanes).
    w1c = w1.reshape(HIDDEN, 1).astype(jnp.float32)    # layer1.weight   (128, 1)
    b1c = b1.reshape(HIDDEN, 1).astype(jnp.float32)    # layer1.bias     (128, 1)
    w2t = w2.astype(jnp.bfloat16)                      # layer2.weight   (128, 128) bf16
    b2c = b2.reshape(HIDDEN, 1).astype(jnp.float32)    # layer2.bias     (128, 1)
    w3c = w3.reshape(HIDDEN, 1).astype(jnp.float32)    # layer3.weight.T (128, 1)
    b3c = b3.reshape(1, 1).astype(jnp.float32)         # layer3.bias     (1, 1)

    rep = lambda shape: pl.BlockSpec(shape, lambda i: (0, 0))  # grid-invariant param

    out2d = pl.pallas_call(
        _mlp_kernel,
        out_shape=jax.ShapeDtypeStruct((n_pad // TILE_L, TILE_L), jnp.float32),
        grid_spec=pltpu.PrefetchScalarGridSpec(
            num_scalar_prefetch=0,
            grid=(n_blocks,),
            in_specs=[
                pl.BlockSpec((SUBL, TILE_L), lambda i: (i, 0)),   # x tile (lane-dense)
                rep((HIDDEN, 1)),        # w1
                rep((HIDDEN, 1)),        # b1
                rep((HIDDEN, HIDDEN)),   # w2 (bf16)
                rep((HIDDEN, 1)),        # b2
                rep((HIDDEN, 1)),        # w3
                rep((1, 1)),             # b3
            ],
            out_specs=pl.BlockSpec((SUBL, TILE_L), lambda i: (i, 0)),
        ),
        compiler_params=pltpu.CompilerParams(
            dimension_semantics=("parallel",),   # shards the batch grid across TCs on v7x
        ),
    )(x2d, w1c, b1c, w2t, b2c, w3c, b3c)

    return out2d.reshape(-1)[:n].reshape(n, 1)


def init_params(key):
    """Deterministic init matching nn.Linear shapes (PyTorch (out, in) layout)."""
    ks = jax.random.split(key, 6)

    def uniform(k, shape, fan_in):
        bound = 1.0 / jnp.sqrt(jnp.float32(fan_in))
        return jax.random.uniform(k, shape, jnp.float32, -bound, bound)

    w1 = uniform(ks[0], (HIDDEN, 1), 1)             # layer1.weight
    b1 = uniform(ks[1], (HIDDEN,), 1)               # layer1.bias
    w2 = uniform(ks[2], (HIDDEN, HIDDEN), HIDDEN)   # layer2.weight
    b2 = uniform(ks[3], (HIDDEN,), HIDDEN)          # layer2.bias
    w3 = uniform(ks[4], (1, HIDDEN), HIDDEN)        # layer3.weight
    b3 = uniform(ks[5], (1,), HIDDEN)               # layer3.bias
    return (w1, b1, w2, b2, w3, b3)


def reference_f32(x, params):
    """Pure-f32 PyTorch-equivalent forward."""
    w1, b1, w2, b2, w3, b3 = params
    hp = jax.lax.Precision.HIGHEST
    h = jnp.maximum(jnp.dot(x, w1.T, precision=hp) + b1, 0.0)
    h = jnp.maximum(jnp.dot(h, w2.T, precision=hp) + b2, 0.0)
    return jnp.tanh(jnp.dot(h, w3.T, precision=hp) + b3)


def reference_mixed(x, params):
    """Mirrors the kernel's precision: bf16 operands for layer 2, f32 accumulate."""
    w1, b1, w2, b2, w3, b3 = params
    hp = jax.lax.Precision.HIGHEST
    h = jnp.maximum(jnp.dot(x, w1.T, precision=hp) + b1, 0.0)
    h = jnp.dot(h.astype(jnp.bfloat16), w2.astype(jnp.bfloat16).T,
                preferred_element_type=jnp.float32)
    h = jnp.maximum(h + b2, 0.0)
    return jnp.tanh(jnp.dot(h, w3.T, precision=hp) + b3)


if __name__ == "__main__":
    key = jax.random.PRNGKey(0)
    kx, kp = jax.random.split(key)

    N = 32  # small demo batch; the wrapper pads internally to one 1024-element block
    x = jax.random.normal(kx, (N, 1), dtype=jnp.float32)
    params = init_params(kp)

    out = jax.block_until_ready(nonlinear_regression(x, params))

    assert out.shape == (N, 1)
    # Tight check against a reference that uses the same mixed precision as the kernel.
    assert jnp.allclose(out, reference_mixed(x, params), atol=1e-3, rtol=1e-3)
    # Looser check against the pure-f32 module forward (bf16 layer-2 rounding only).
    assert jnp.allclose(out, reference_f32(x, params), atol=5e-2, rtol=0)

    print("KERNEL_OK")
</pallas_src>

<mosaic_0001>
module attributes {stable_mosaic.version = 11 : i64} {
  func.func @_mlp_kernel(%arg0: i32, %arg1: memref<8x128xf32, #tpu.memory_space<vmem>>, %arg2: memref<128x1xf32, #tpu.memory_space<vmem>>, %arg3: memref<128x1xf32, #tpu.memory_space<vmem>>, %arg4: memref<128x128xbf16, #tpu.memory_space<vmem>>, %arg5: memref<128x1xf32, #tpu.memory_space<vmem>>, %arg6: memref<128x1xf32, #tpu.memory_space<vmem>>, %arg7: memref<1x1xf32, #tpu.memory_space<vmem>>, %arg8: memref<8x128xf32, #tpu.memory_space<vmem>>) attributes {dimension_semantics = [#tpu.dimension_semantics<parallel>], iteration_bounds = array<i64: 1>, scalar_prefetch = 0 : i64, scratch_operands = 0 : i64, tpu.core_type = #tpu.core_type<tc>, window_params = [{transform_indices = @transform_0, window_bounds = array<i64: 8, 128>}, {pipeline_mode = #tpu.pipeline_mode<synchronous>, transform_indices = @transform_1, window_bounds = array<i64: 128, 1>}, {pipeline_mode = #tpu.pipeline_mode<synchronous>, transform_indices = @transform_2, window_bounds = array<i64: 128, 1>}, {pipeline_mode = #tpu.pipeline_mode<synchronous>, transform_indices = @transform_3, window_bounds = array<i64: 128, 128>}, {pipeline_mode = #tpu.pipeline_mode<synchronous>, transform_indices = @transform_4, window_bounds = array<i64: 128, 1>}, {pipeline_mode = #tpu.pipeline_mode<synchronous>, transform_indices = @transform_5, window_bounds = array<i64: 128, 1>}, {pipeline_mode = #tpu.pipeline_mode<synchronous>, transform_indices = @transform_6, window_bounds = array<i64: 1, 1>}, {transform_indices = @transform_7, window_bounds = array<i64: 8, 128>}]} {
    %c0 = arith.constant 0 : index
    %c0_0 = arith.constant 0 : index
    %0 = vector.load %arg1[%c0, %c0_0] : memref<8x128xf32, #tpu.memory_space<vmem>>, vector<1x128xf32>
    %c0_1 = arith.constant 0 : index
    %c0_2 = arith.constant 0 : index
    %1 = vector.load %arg2[%c0_1, %c0_2] : memref<128x1xf32, #tpu.memory_space<vmem>>, vector<128x1xf32>
    %2 = vector.broadcast %1 : vector<128x1xf32> to vector<128x128xf32>
    %3 = vector.broadcast %0 : vector<1x128xf32> to vector<128x128xf32>
    %4 = arith.mulf %2, %3 : vector<128x128xf32>
    %c0_3 = arith.constant 0 : index
    %c0_4 = arith.constant 0 : index
    %5 = vector.load %arg3[%c0_3, %c0_4] : memref<128x1xf32, #tpu.memory_space<vmem>>, vector<128x1xf32>
    %6 = vector.broadcast %5 : vector<128x1xf32> to vector<128x128xf32>
    %7 = arith.addf %4, %6 : vector<128x128xf32>
    %cst = arith.constant 0.000000e+00 : f32
    %8 = vector.broadcast %cst : f32 to vector<128x128xf32>
    %9 = arith.maximumf %7, %8 : vector<128x128xf32>
    %c0_5 = arith.constant 0 : index
    %c0_6 = arith.constant 0 : index
    %10 = vector.load %arg4[%c0_5, %c0_6] : memref<128x128xbf16, #tpu.memory_space<vmem>>, vector<128x128xbf16>
    %11 = arith.truncf %9 : vector<128x128xf32> to vector<128x128xbf16>
    %cst_7 = arith.constant dense<0.000000e+00> : vector<128x128xf32>
    %12 = tpu.matmul %10, %11, %cst_7 {dimension_numbers = #tpu.dot_dimension_numbers<[1], [0], [0], [1], [0, 0, 1, 1], [], []>} : vector<128x128xbf16>, vector<128x128xbf16>, vector<128x128xf32> -> vector<128x128xf32>
    %c0_8 = arith.constant 0 : index
    %c0_9 = arith.constant 0 : index
    %13 = vector.load %arg5[%c0_8, %c0_9] : memref<128x1xf32, #tpu.memory_space<vmem>>, vector<128x1xf32>
    %14 = vector.broadcast %13 : vector<128x1xf32> to vector<128x128xf32>
    %15 = arith.addf %12, %14 : vector<128x128xf32>
    %cst_10 = arith.constant 0.000000e+00 : f32
    %16 = vector.broadcast %cst_10 : f32 to vector<128x128xf32>
    %17 = arith.maximumf %15, %16 : vector<128x128xf32>
    %c0_11 = arith.constant 0 : index
    %c0_12 = arith.constant 0 : index
    %18 = vector.load %arg6[%c0_11, %c0_12] : memref<128x1xf32, #tpu.memory_space<vmem>>, vector<128x1xf32>
    %19 = vector.broadcast %18 : vector<128x1xf32> to vector<128x128xf32>
    %20 = arith.mulf %19, %17 : vector<128x128xf32>
    %cst_13 = arith.constant dense<0.000000e+00> : vector<128xf32>
    %21 = vector.multi_reduction <add>, %20, %cst_13 [0] : vector<128x128xf32> to vector<128xf32>
    %22 = vector.shape_cast %21 : vector<128xf32> to vector<1x128xf32>
    %c0_14 = arith.constant 0 : index
    %c0_15 = arith.constant 0 : index
    %23 = vector.load %arg7[%c0_14, %c0_15] : memref<1x1xf32, #tpu.memory_space<vmem>>, vector<1x1xf32>
    %24 = vector.broadcast %23 : vector<1x1xf32> to vector<1x128xf32>
    %25 = arith.addf %22, %24 : vector<1x128xf32>
    %26 = math.tanh %25 : vector<1x128xf32>
    %c0_16 = arith.constant 0 : index
    %c0_17 = arith.constant 0 : index
    %27 = vector.load %arg8[%c0_16, %c0_17] : memref<8x128xf32, #tpu.memory_space<vmem>>, vector<1x128xf32>
    tpu.vector_store %arg8[%c0_16, %c0_17], %26 {strides = array<i32>} : memref<8x128xf32, #tpu.memory_space<vmem>>, vector<1x128xf32>,
    %c1 = arith.constant 1 : index
    %c0_18 = arith.constant 0 : index
    %28 = vector.load %arg1[%c1, %c0_18] : memref<8x128xf32, #tpu.memory_space<vmem>>, vector<1x128xf32>
    %c0_19 = arith.constant 0 : index
    %c0_20 = arith.constant 0 : index
    %29 = vector.load %arg2[%c0_19, %c0_20] : memref<128x1xf32, #tpu.memory_space<vmem>>, vector<128x1xf32>
    %30 = vector.broadcast %29 : vector<128x1xf32> to vector<128x128xf32>
    %31 = vector.broadcast %28 : vector<1x128xf32> to vector<128x128xf32>
    %32 = arith.mulf %30, %31 : vector<128x128xf32>
    %c0_21 = arith.constant 0 : index
    %c0_22 = arith.constant 0 : index
    %33 = vector.load %arg3[%c0_21, %c0_22] : memref<128x1xf32, #tpu.memory_space<vmem>>, vector<128x1xf32>
    %34 = vector.broadcast %33 : vector<128x1xf32> to vector<128x128xf32>
    %35 = arith.addf %32, %34 : vector<128x128xf32>
    %cst_23 = arith.constant 0.000000e+00 : f32
    %36 = vector.broadcast %cst_23 : f32 to vector<128x128xf32>
    %37 = arith.maximumf %35, %36 : vector<128x128xf32>
    %c0_24 = arith.constant 0 : index
    %c0_25 = arith.constant 0 : index
    %38 = vector.load %arg4[%c0_24, %c0_25] : memref<128x128xbf16, #tpu.memory_space<vmem>>, vector<128x128xbf16>
    %39 = arith.truncf %37 : vector<128x128xf32> to vector<128x128xbf16>
    %cst_26 = arith.constant dense<0.000000e+00> : vector<128x128xf32>
    %40 = tpu.matmul %38, %39, %cst_26 {dimension_numbers = #tpu.dot_dimension_numbers<[1], [0], [0], [1], [0, 0, 1, 1], [], []>} : vector<128x128xbf16>, vector<128x128xbf16>, vector<128x128xf32> -> vector<128x128xf32>
    %c0_27 = arith.constant 0 : index
    %c0_28 = arith.constant 0 : index
    %41 = vector.load %arg5[%c0_27, %c0_28] : memref<128x1xf32, #tpu.memory_space<vmem>>, vector<128x1xf32>
    %42 = vector.broadcast %41 : vector<128x1xf32> to vector<128x128xf32>
    %43 = arith.addf %40, %42 : vector<128x128xf32>
    %cst_29 = arith.constant 0.000000e+00 : f32
    %44 = vector.broadcast %cst_29 : f32 to vector<128x128xf32>
    %45 = arith.maximumf %43, %44 : vector<128x128xf32>
    %c0_30 = arith.constant 0 : index
    %c0_31 = arith.constant 0 : index
    %46 = vector.load %arg6[%c0_30, %c0_31] : memref<128x1xf32, #tpu.memory_space<vmem>>, vector<128x1xf32>
    %47 = vector.broadcast %46 : vector<128x1xf32> to vector<128x128xf32>
    %48 = arith.mulf %47, %45 : vector<128x128xf32>
    %cst_32 = arith.constant dense<0.000000e+00> : vector<128xf32>
    %49 = vector.multi_reduction <add>, %48, %cst_32 [0] : vector<128x128xf32> to vector<128xf32>
    %50 = vector.shape_cast %49 : vector<128xf32> to vector<1x128xf32>
    %c0_33 = arith.constant 0 : index
    %c0_34 = arith.constant 0 : index
    %51 = vector.load %arg7[%c0_33, %c0_34] : memref<1x1xf32, #tpu.memory_space<vmem>>, vector<1x1xf32>
    %52 = vector.broadcast %51 : vector<1x1xf32> to vector<1x128xf32>
    %53 = arith.addf %50, %52 : vector<1x128xf32>
    %54 = math.tanh %53 : vector<1x128xf32>
    %c1_35 = arith.constant 1 : index
    %c0_36 = arith.constant 0 : index
    %55 = vector.load %arg8[%c1_35, %c0_36] : memref<8x128xf32, #tpu.memory_space<vmem>>, vector<1x128xf32>
    tpu.vector_store %arg8[%c1_35, %c0_36], %54 {strides = array<i32>} : memref<8x128xf32, #tpu.memory_space<vmem>>, vector<1x128xf32>,
    %c2 = arith.constant 2 : index
    %c0_37 = arith.constant 0 : index
    %56 = vector.load %arg1[%c2, %c0_37] : memref<8x128xf32, #tpu.memory_space<vmem>>, vector<1x128xf32>
    %c0_38 = arith.constant 0 : index
    %c0_39 = arith.constant 0 : index
    %57 = vector.load %arg2[%c0_38, %c0_39] : memref<128x1xf32, #tpu.memory_space<vmem>>, vector<128x1xf32>
    %58 = vector.broadcast %57 : vector<128x1xf32> to vector<128x128xf32>
    %59 = vector.broadcast %56 : vector<1x128xf32> to vector<128x128xf32>
    %60 = arith.mulf %58, %59 : vector<128x128xf32>
    %c0_40 = arith.constant 0 : index
    %c0_41 = arith.constant 0 : index
    %61 = vector.load %arg3[%c0_40, %c0_41] : memref<128x1xf32, #tpu.memory_space<vmem>>, vector<128x1xf32>
    %62 = vector.broadcast %61 : vector<128x1xf32> to vector<128x128xf32>
    %63 = arith.addf %60, %62 : vector<128x128xf32>
    %cst_42 = arith.constant 0.000000e+00 : f32
    %64 = vector.broadcast %cst_42 : f32 to vector<128x128xf32>
    %65 = arith.maximumf %63, %64 : vector<128x128xf32>
    %c0_43 = arith.constant 0 : index
    %c0_44 = arith.constant 0 : index
    %66 = vector.load %arg4[%c0_43, %c0_44] : memref<128x128xbf16, #tpu.memory_space<vmem>>, vector<128x128xbf16>
    %67 = arith.truncf %65 : vector<128x128xf32> to vector<128x128xbf16>
    %cst_45 = arith.constant dense<0.000000e+00> : vector<128x128xf32>
    %68 = tpu.matmul %66, %67, %cst_45 {dimension_numbers = #tpu.dot_dimension_numbers<[1], [0], [0], [1], [0, 0, 1, 1], [], []>} : vector<128x128xbf16>, vector<128x128xbf16>, vector<128x128xf32> -> vector<128x128xf32>
    %c0_46 = arith.constant 0 : index
    %c0_47 = arith.constant 0 : index
    %69 = vector.load %arg5[%c0_46, %c0_47] : memref<128x1xf32, #tpu.memory_space<vmem>>, vector<128x1xf32>
    %70 = vector.broadcast %69 : vector<128x1xf32> to vector<128x128xf32>
    %71 = arith.addf %68, %70 : vector<128x128xf32>
    %cst_48 = arith.constant 0.000000e+00 : f32
    %72 = vector.broadcast %cst_48 : f32 to vector<128x128xf32>
    %73 = arith.maximumf %71, %72 : vector<128x128xf32>
    %c0_49 = arith.constant 0 : index
    %c0_50 = arith.constant 0 : index
    %74 = vector.load %arg6[%c0_49, %c0_50] : memref<128x1xf32, #tpu.memory_space<vmem>>, vector<128x1xf32>
    %75 = vector.broadcast %74 : vector<128x1xf32> to vector<128x128xf32>
    %76 = arith.mulf %75, %73 : vector<128x128xf32>
    %cst_51 = arith.constant dense<0.000000e+00> : vector<128xf32>
    %77 = vector.multi_reduction <add>, %76, %cst_51 [0] : vector<128x128xf32> to vector<128xf32>
    %78 = vector.shape_cast %77 : vector<128xf32> to vector<1x128xf32>
    %c0_52 = arith.constant 0 : index
    %c0_53 = arith.constant 0 : index
    %79 = vector.load %arg7[%c0_52, %c0_53] : memref<1x1xf32, #tpu.memory_space<vmem>>, vector<1x1xf32>
    %80 = vector.broadcast %79 : vector<1x1xf32> to vector<1x128xf32>
    %81 = arith.addf %78, %80 : vector<1x128xf32>
    %82 = math.tanh %81 : vector<1x128xf32>
    %c2_54 = arith.constant 2 : index
    %c0_55 = arith.constant 0 : index
    %83 = vector.load %arg8[%c2_54, %c0_55] : memref<8x128xf32, #tpu.memory_space<vmem>>, vector<1x128xf32>
    tpu.vector_store %arg8[%c2_54, %c0_55], %82 {strides = array<i32>} : memref<8x128xf32, #tpu.memory_space<vmem>>, vector<1x128xf32>,
    %c3 = arith.constant 3 : index
    %c0_56 = arith.constant 0 : index
    %84 = vector.load %arg1[%c3, %c0_56] : memref<8x128xf32, #tpu.memory_space<vmem>>, vector<1x128xf32>
    %c0_57 = arith.constant 0 : index
    %c0_58 = arith.constant 0 : index
    %85 = vector.load %arg2[%c0_57, %c0_58] : memref<128x1xf32, #tpu.memory_space<vmem>>, vector<128x1xf32>
    %86 = vector.broadcast %85 : vector<128x1xf32> to vector<128x128xf32>
    %87 = vector.broadcast %84 : vector<1x128xf32> to vector<128x128xf32>
    %88 = arith.mulf %86, %87 : vector<128x128xf32>
    %c0_59 = arith.constant 0 : index
    %c0_60 = arith.constant 0 : index
    %89 = vector.load %arg3[%c0_59, %c0_60] : memref<128x1xf32, #tpu.memory_space<vmem>>, vector<128x1xf32>
    %90 = vector.broadcast %89 : vector<128x1xf32> to vector<128x128xf32>
    %91 = arith.addf %88, %90 : vector<128x128xf32>
    %cst_61 = arith.constant 0.000000e+00 : f32
    %92 = vector.broadcast %cst_61 : f32 to vector<128x128xf32>
    %93 = arith.maximumf %91, %92 : vector<128x128xf32>
    %c0_62 = arith.constant 0 : index
    %c0_63 = arith.constant 0 : index
    %94 = vector.load %arg4[%c0_62, %c0_63] : memref<128x128xbf16, #tpu.memory_space<vmem>>, vector<128x128xbf16>
    %95 = arith.truncf %93 : vector<128x128xf32> to vector<128x128xbf16>
    %cst_64 = arith.constant dense<0.000000e+00> : vector<128x128xf32>
    %96 = tpu.matmul %94, %95, %cst_64 {dimension_numbers = #tpu.dot_dimension_numbers<[1], [0], [0], [1], [0, 0, 1, 1], [], []>} : vector<128x128xbf16>, vector<128x128xbf16>, vector<128x128xf32> -> vector<128x128xf32>
    %c0_65 = arith.constant 0 : index
    %c0_66 = arith.constant 0 : index
    %97 = vector.load %arg5[%c0_65, %c0_66] : memref<128x1xf32, #tpu.memory_space<vmem>>, vector<128x1xf32>
    %98 = vector.broadcast %97 : vector<128x1xf32> to vector<128x128xf32>
    %99 = arith.addf %96, %98 : vector<128x128xf32>
    %cst_67 = arith.constant 0.000000e+00 : f32
    %100 = vector.broadcast %cst_67 : f32 to vector<128x128xf32>
    %101 = arith.maximumf %99, %100 : vector<128x128xf32>
    %c0_68 = arith.constant 0 : index
    %c0_69 = arith.constant 0 : index
    %102 = vector.load %arg6[%c0_68, %c0_69] : memref<128x1xf32, #tpu.memory_space<vmem>>, vector<128x1xf32>
    %103 = vector.broadcast %102 : vector<128x1xf32> to vector<128x128xf32>
    %104 = arith.mulf %103, %101 : vector<128x128xf32>
    %cst_70 = arith.constant dense<0.000000e+00> : vector<128xf32>
    %105 = vector.multi_reduction <add>, %104, %cst_70 [0] : vector<128x128xf32> to vector<128xf32>
    %106 = vector.shape_cast %105 : vector<128xf32> to vector<1x128xf32>
    %c0_71 = arith.constant 0 : index
    %c0_72 = arith.constant 0 : index
    %107 = vector.load %arg7[%c0_71, %c0_72] : memref<1x1xf32, #tpu.memory_space<vmem>>, vector<1x1xf32>
    %108 = vector.broadcast %107 : vector<1x1xf32> to vector<1x128xf32>
    %109 = arith.addf %106, %108 : vector<1x128xf32>
    %110 = math.tanh %109 : vector<1x128xf32>
    %c3_73 = arith.constant 3 : index
    %c0_74 = arith.constant 0 : index
    %111 = vector.load %arg8[%c3_73, %c0_74] : memref<8x128xf32, #tpu.memory_space<vmem>>, vector<1x128xf32>
    tpu.vector_store %arg8[%c3_73, %c0_74], %110 {strides = array<i32>} : memref<8x128xf32, #tpu.memory_space<vmem>>, vector<1x128xf32>,
    %c4 = arith.constant 4 : index
    %c0_75 = arith.constant 0 : index
    %112 = vector.load %arg1[%c4, %c0_75] : memref<8x128xf32, #tpu.memory_space<vmem>>, vector<1x128xf32>
    %c0_76 = arith.constant 0 : index
    %c0_77 = arith.constant 0 : index
    %113 = vector.load %arg2[%c0_76, %c0_77] : memref<128x1xf32, #tpu.memory_space<vmem>>, vector<128x1xf32>
    %114 = vector.broadcast %113 : vector<128x1xf32> to vector<128x128xf32>
    %115 = vector.broadcast %112 : vector<1x128xf32> to vector<128x128xf32>
    %116 = arith.mulf %114, %115 : vector<128x128xf32>
    %c0_78 = arith.constant 0 : index
    %c0_79 = arith.constant 0 : index
    %117 = vector.load %arg3[%c0_78, %c0_79] : memref<128x1xf32, #tpu.memory_space<vmem>>, vector<128x1xf32>
    %118 = vector.broadcast %117 : vector<128x1xf32> to vector<128x128xf32>
    %119 = arith.addf %116, %118 : vector<128x128xf32>
    %cst_80 = arith.constant 0.000000e+00 : f32
    %120 = vector.broadcast %cst_80 : f32 to vector<128x128xf32>
    %121 = arith.maximumf %119, %120 : vector<128x128xf32>
    %c0_81 = arith.constant 0 : index
    %c0_82 = arith.constant 0 : index
    %122 = vector.load %arg4[%c0_81, %c0_82] : memref<128x128xbf16, #tpu.memory_space<vmem>>, vector<128x128xbf16>
    %123 = arith.truncf %121 : vector<128x128xf32> to vector<128x128xbf16>
    %cst_83 = arith.constant dense<0.000000e+00> : vector<128x128xf32>
    %124 = tpu.matmul %122, %123, %cst_83 {dimension_numbers = #tpu.dot_dimension_numbers<[1], [0], [0], [1], [0, 0, 1, 1], [], []>} : vector<128x128xbf16>, vector<128x128xbf16>, vector<128x128xf32> -> vector<128x128xf32>
    %c0_84 = arith.constant 0 : index
    %c0_85 = arith.constant 0 : index
    %125 = vector.load %arg5[%c0_84, %c0_85] : memref<128x1xf32, #tpu.memory_space<vmem>>, vector<128x1xf32>
    %126 = vector.broadcast %125 : vector<128x1xf32> to vector<128x128xf32>
    %127 = arith.addf %124, %126 : vector<128x128xf32>
    %cst_86 = arith.constant 0.000000e+00 : f32
    %128 = vector.broadcast %cst_86 : f32 to vector<128x128xf32>
    %129 = arith.maximumf %127, %128 : vector<128x128xf32>
    %c0_87 = arith.constant 0 : index
    %c0_88 = arith.constant 0 : index
    %130 = vector.load %arg6[%c0_87, %c0_88] : memref<128x1xf32, #tpu.memory_space<vmem>>, vector<128x1xf32>
    %131 = vector.broadcast %130 : vector<128x1xf32> to vector<128x128xf32>
    %132 = arith.mulf %131, %129 : vector<128x128xf32>
    %cst_89 = arith.constant dense<0.000000e+00> : vector<128xf32>
    %133 = vector.multi_reduction <add>, %132, %cst_89 [0] : vector<128x128xf32> to vector<128xf32>
    %134 = vector.shape_cast %133 : vector<128xf32> to vector<1x128xf32>
    %c0_90 = arith.constant 0 : index
    %c0_91 = arith.constant 0 : index
    %135 = vector.load %arg7[%c0_90, %c0_91] : memref<1x1xf32, #tpu.memory_space<vmem>>, vector<1x1xf32>
    %136 = vector.broadcast %135 : vector<1x1xf32> to vector<1x128xf32>
    %137 = arith.addf %134, %136 : vector<1x128xf32>
    %138 = math.tanh %137 : vector<1x128xf32>
    %c4_92 = arith.constant 4 : index
    %c0_93 = arith.constant 0 : index
    %139 = vector.load %arg8[%c4_92, %c0_93] : memref<8x128xf32, #tpu.memory_space<vmem>>, vector<1x128xf32>
    tpu.vector_store %arg8[%c4_92, %c0_93], %138 {strides = array<i32>} : memref<8x128xf32, #tpu.memory_space<vmem>>, vector<1x128xf32>,
    %c5 = arith.constant 5 : index
    %c0_94 = arith.constant 0 : index
    %140 = vector.load %arg1[%c5, %c0_94] : memref<8x128xf32, #tpu.memory_space<vmem>>, vector<1x128xf32>
    %c0_95 = arith.constant 0 : index
    %c0_96 = arith.constant 0 : index
    %141 = vector.load %arg2[%c0_95, %c0_96] : memref<128x1xf32, #tpu.memory_space<vmem>>, vector<128x1xf32>
    %142 = vector.broadcast %141 : vector<128x1xf32> to vector<128x128xf32>
    %143 = vector.broadcast %140 : vector<1x128xf32> to vector<128x128xf32>
    %144 = arith.mulf %142, %143 : vector<128x128xf32>
    %c0_97 = arith.constant 0 : index
    %c0_98 = arith.constant 0 : index
    %145 = vector.load %arg3[%c0_97, %c0_98] : memref<128x1xf32, #tpu.memory_space<vmem>>, vector<128x1xf32>
    %146 = vector.broadcast %145 : vector<128x1xf32> to vector<128x128xf32>
    %147 = arith.addf %144, %146 : vector<128x128xf32>
    %cst_99 = arith.constant 0.000000e+00 : f32
    %148 = vector.broadcast %cst_99 : f32 to vector<128x128xf32>
    %149 = arith.maximumf %147, %148 : vector<128x128xf32>
    %c0_100 = arith.constant 0 : index
    %c0_101 = arith.constant 0 : index
    %150 = vector.load %arg4[%c0_100, %c0_101] : memref<128x128xbf16, #tpu.memory_space<vmem>>, vector<128x128xbf16>
    %151 = arith.truncf %149 : vector<128x128xf32> to vector<128x128xbf16>
    %cst_102 = arith.constant dense<0.000000e+00> : vector<128x128xf32>
    %152 = tpu.matmul %150, %151, %cst_102 {dimension_numbers = #tpu.dot_dimension_numbers<[1], [0], [0], [1], [0, 0, 1, 1], [], []>} : vector<128x128xbf16>, vector<128x128xbf16>, vector<128x128xf32> -> vector<128x128xf32>
    %c0_103 = arith.constant 0 : index
    %c0_104 = arith.constant 0 : index
    %153 = vector.load %arg5[%c0_103, %c0_104] : memref<128x1xf32, #tpu.memory_space<vmem>>, vector<128x1xf32>
    %154 = vector.broadcast %153 : vector<128x1xf32> to vector<128x128xf32>
    %155 = arith.addf %152, %154 : vector<128x128xf32>
    %cst_105 = arith.constant 0.000000e+00 : f32
    %156 = vector.broadcast %cst_105 : f32 to vector<128x128xf32>
    %157 = arith.maximumf %155, %156 : vector<128x128xf32>
    %c0_106 = arith.constant 0 : index
    %c0_107 = arith.constant 0 : index
    %158 = vector.load %arg6[%c0_106, %c0_107] : memref<128x1xf32, #tpu.memory_space<vmem>>, vector<128x1xf32>
    %159 = vector.broadcast %158 : vector<128x1xf32> to vector<128x128xf32>
    %160 = arith.mulf %159, %157 : vector<128x128xf32>
    %cst_108 = arith.constant dense<0.000000e+00> : vector<128xf32>
    %161 = vector.multi_reduction <add>, %160, %cst_108 [0] : vector<128x128xf32> to vector<128xf32>
    %162 = vector.shape_cast %161 : vector<128xf32> to vector<1x128xf32>
    %c0_109 = arith.constant 0 : index
    %c0_110 = arith.constant 0 : index
    %163 = vector.load %arg7[%c0_109, %c0_110] : memref<1x1xf32, #tpu.memory_space<vmem>>, vector<1x1xf32>
    %164 = vector.broadcast %163 : vector<1x1xf32> to vector<1x128xf32>
    %165 = arith.addf %162, %164 : vector<1x128xf32>
    %166 = math.tanh %165 : vector<1x128xf32>
    %c5_111 = arith.constant 5 : index
    %c0_112 = arith.constant 0 : index
    %167 = vector.load %arg8[%c5_111, %c0_112] : memref<8x128xf32, #tpu.memory_space<vmem>>, vector<1x128xf32>
    tpu.vector_store %arg8[%c5_111, %c0_112], %166 {strides = array<i32>} : memref<8x128xf32, #tpu.memory_space<vmem>>, vector<1x128xf32>,
    %c6 = arith.constant 6 : index
    %c0_113 = arith.constant 0 : index
    %168 = vector.load %arg1[%c6, %c0_113] : memref<8x128xf32, #tpu.memory_space<vmem>>, vector<1x128xf32>
    %c0_114 = arith.constant 0 : index
    %c0_115 = arith.constant 0 : index
    %169 = vector.load %arg2[%c0_114, %c0_115] : memref<128x1xf32, #tpu.memory_space<vmem>>, vector<128x1xf32>
    %170 = vector.broadcast %169 : vector<128x1xf32> to vector<128x128xf32>
    %171 = vector.broadcast %168 : vector<1x128xf32> to vector<128x128xf32>
    %172 = arith.mulf %170, %171 : vector<128x128xf32>
    %c0_116 = arith.constant 0 : index
    %c0_117 = arith.constant 0 : index
    %173 = vector.load %arg3[%c0_116, %c0_117] : memref<128x1xf32, #tpu.memory_space<vmem>>, vector<128x1xf32>
    %174 = vector.broadcast %173 : vector<128x1xf32> to vector<128x128xf32>
    %175 = arith.addf %172, %174 : vector<128x128xf32>
    %cst_118 = arith.constant 0.000000e+00 : f32
    %176 = vector.broadcast %cst_118 : f32 to vector<128x128xf32>
    %177 = arith.maximumf %175, %176 : vector<128x128xf32>
    %c0_119 = arith.constant 0 : index
    %c0_120 = arith.constant 0 : index
    %178 = vector.load %arg4[%c0_119, %c0_120] : memref<128x128xbf16, #tpu.memory_space<vmem>>, vector<128x128xbf16>
    %179 = arith.truncf %177 : vector<128x128xf32> to vector<128x128xbf16>
    %cst_121 = arith.constant dense<0.000000e+00> : vector<128x128xf32>
    %180 = tpu.matmul %178, %179, %cst_121 {dimension_numbers = #tpu.dot_dimension_numbers<[1], [0], [0], [1], [0, 0, 1, 1], [], []>} : vector<128x128xbf16>, vector<128x128xbf16>, vector<128x128xf32> -> vector<128x128xf32>
    %c0_122 = arith.constant 0 : index
    %c0_123 = arith.constant 0 : index
    %181 = vector.load %arg5[%c0_122, %c0_123] : memref<128x1xf32, #tpu.memory_space<vmem>>, vector<128x1xf32>
    %182 = vector.broadcast %181 : vector<128x1xf32> to vector<128x128xf32>
    %183 = arith.addf %180, %182 : vector<128x128xf32>
    %cst_124 = arith.constant 0.000000e+00 : f32
    %184 = vector.broadcast %cst_124 : f32 to vector<128x128xf32>
    %185 = arith.maximumf %183, %184 : vector<128x128xf32>
    %c0_125 = arith.constant 0 : index
    %c0_126 = arith.constant 0 : index
    %186 = vector.load %arg6[%c0_125, %c0_126] : memref<128x1xf32, #tpu.memory_space<vmem>>, vector<128x1xf32>
    %187 = vector.broadcast %186 : vector<128x1xf32> to vector<128x128xf32>
    %188 = arith.mulf %187, %185 : vector<128x128xf32>
    %cst_127 = arith.constant dense<0.000000e+00> : vector<128xf32>
    %189 = vector.multi_reduction <add>, %188, %cst_127 [0] : vector<128x128xf32> to vector<128xf32>
    %190 = vector.shape_cast %189 : vector<128xf32> to vector<1x128xf32>
    %c0_128 = arith.constant 0 : index
    %c0_129 = arith.constant 0 : index
    %191 = vector.load %arg7[%c0_128, %c0_129] : memref<1x1xf32, #tpu.memory_space<vmem>>, vector<1x1xf32>
    %192 = vector.broadcast %191 : vector<1x1xf32> to vector<1x128xf32>
    %193 = arith.addf %190, %192 : vector<1x128xf32>
    %194 = math.tanh %193 : vector<1x128xf32>
    %c6_130 = arith.constant 6 : index
    %c0_131 = arith.constant 0 : index
    %195 = vector.load %arg8[%c6_130, %c0_131] : memref<8x128xf32, #tpu.memory_space<vmem>>, vector<1x128xf32>
    tpu.vector_store %arg8[%c6_130, %c0_131], %194 {strides = array<i32>} : memref<8x128xf32, #tpu.memory_space<vmem>>, vector<1x128xf32>,
    %c7 = arith.constant 7 : index
    %c0_132 = arith.constant 0 : index
    %196 = vector.load %arg1[%c7, %c0_132] : memref<8x128xf32, #tpu.memory_space<vmem>>, vector<1x128xf32>
    %c0_133 = arith.constant 0 : index
    %c0_134 = arith.constant 0 : index
    %197 = vector.load %arg2[%c0_133, %c0_134] : memref<128x1xf32, #tpu.memory_space<vmem>>, vector<128x1xf32>
    %198 = vector.broadcast %197 : vector<128x1xf32> to vector<128x128xf32>
    %199 = vector.broadcast %196 : vector<1x128xf32> to vector<128x128xf32>
    %200 = arith.mulf %198, %199 : vector<128x128xf32>
    %c0_135 = arith.constant 0 : index
    %c0_136 = arith.constant 0 : index
    %201 = vector.load %arg3[%c0_135, %c0_136] : memref<128x1xf32, #tpu.memory_space<vmem>>, vector<128x1xf32>
    %202 = vector.broadcast %201 : vector<128x1xf32> to vector<128x128xf32>
    %203 = arith.addf %200, %202 : vector<128x128xf32>
    %cst_137 = arith.constant 0.000000e+00 : f32
    %204 = vector.broadcast %cst_137 : f32 to vector<128x128xf32>
    %205 = arith.maximumf %203, %204 : vector<128x128xf32>
    %c0_138 = arith.constant 0 : index
    %c0_139 = arith.constant 0 : index
    %206 = vector.load %arg4[%c0_138, %c0_139] : memref<128x128xbf16, #tpu.memory_space<vmem>>, vector<128x128xbf16>
    %207 = arith.truncf %205 : vector<128x128xf32> to vector<128x128xbf16>
    %cst_140 = arith.constant dense<0.000000e+00> : vector<128x128xf32>
    %208 = tpu.matmul %206, %207, %cst_140 {dimension_numbers = #tpu.dot_dimension_numbers<[1], [0], [0], [1], [0, 0, 1, 1], [], []>} : vector<128x128xbf16>, vector<128x128xbf16>, vector<128x128xf32> -> vector<128x128xf32>
    %c0_141 = arith.constant 0 : index
    %c0_142 = arith.constant 0 : index
    %209 = vector.load %arg5[%c0_141, %c0_142] : memref<128x1xf32, #tpu.memory_space<vmem>>, vector<128x1xf32>
    %210 = vector.broadcast %209 : vector<128x1xf32> to vector<128x128xf32>
    %211 = arith.addf %208, %210 : vector<128x128xf32>
    %cst_143 = arith.constant 0.000000e+00 : f32
    %212 = vector.broadcast %cst_143 : f32 to vector<128x128xf32>
    %213 = arith.maximumf %211, %212 : vector<128x128xf32>
    %c0_144 = arith.constant 0 : index
    %c0_145 = arith.constant 0 : index
    %214 = vector.load %arg6[%c0_144, %c0_145] : memref<128x1xf32, #tpu.memory_space<vmem>>, vector<128x1xf32>
    %215 = vector.broadcast %214 : vector<128x1xf32> to vector<128x128xf32>
    %216 = arith.mulf %215, %213 : vector<128x128xf32>
    %cst_146 = arith.constant dense<0.000000e+00> : vector<128xf32>
    %217 = vector.multi_reduction <add>, %216, %cst_146 [0] : vector<128x128xf32> to vector<128xf32>
    %218 = vector.shape_cast %217 : vector<128xf32> to vector<1x128xf32>
    %c0_147 = arith.constant 0 : index
    %c0_148 = arith.constant 0 : index
    %219 = vector.load %arg7[%c0_147, %c0_148] : memref<1x1xf32, #tpu.memory_space<vmem>>, vector<1x1xf32>
    %220 = vector.broadcast %219 : vector<1x1xf32> to vector<1x128xf32>
    %221 = arith.addf %218, %220 : vector<1x128xf32>
    %222 = math.tanh %221 : vector<1x128xf32>
    %c7_149 = arith.constant 7 : index
    %c0_150 = arith.constant 0 : index
    %223 = vector.load %arg8[%c7_149, %c0_150] : memref<8x128xf32, #tpu.memory_space<vmem>>, vector<1x128xf32>
    tpu.vector_store %arg8[%c7_149, %c0_150], %222 {strides = array<i32>} : memref<8x128xf32, #tpu.memory_space<vmem>>, vector<1x128xf32>,
    return
  }
  func.func @transform_0(%arg0: i32) -> (i32, i32) {
    %c0_i32 = arith.constant 0 : i32
    %c0_i32_0 = arith.constant 0 : i32
    return %arg0, %c0_i32 : i32, i32
  }
  func.func @transform_1(%arg0: i32) -> (i32, i32) {
    %c0_i32 = arith.constant 0 : i32
    %c0_i32_0 = arith.constant 0 : i32
    %c0_i32_1 = arith.constant 0 : i32
    return %c0_i32, %c0_i32_0 : i32, i32
  }
  func.func @transform_2(%arg0: i32) -> (i32, i32) {
    %c0_i32 = arith.constant 0 : i32
    %c0_i32_0 = arith.constant 0 : i32
    %c0_i32_1 = arith.constant 0 : i32
    return %c0_i32, %c0_i32_0 : i32, i32
  }
  func.func @transform_3(%arg0: i32) -> (i32, i32) {
    %c0_i32 = arith.constant 0 : i32
    %c0_i32_0 = arith.constant 0 : i32
    %c0_i32_1 = arith.constant 0 : i32
    return %c0_i32, %c0_i32_0 : i32, i32
  }
  func.func @transform_4(%arg0: i32) -> (i32, i32) {
    %c0_i32 = arith.constant 0 : i32
    %c0_i32_0 = arith.constant 0 : i32
    %c0_i32_1 = arith.constant 0 : i32
    return %c0_i32, %c0_i32_0 : i32, i32
  }
  func.func @transform_5(%arg0: i32) -> (i32, i32) {
    %c0_i32 = arith.constant 0 : i32
    %c0_i32_0 = arith.constant 0 : i32
    %c0_i32_1 = arith.constant 0 : i32
    return %c0_i32, %c0_i32_0 : i32, i32
  }
  func.func @transform_6(%arg0: i32) -> (i32, i32) {
    %c0_i32 = arith.constant 0 : i32
    %c0_i32_0 = arith.constant 0 : i32
    %c0_i32_1 = arith.constant 0 : i32
    return %c0_i32, %c0_i32_0 : i32, i32
  }
  func.func @transform_7(%arg0: i32) -> (i32, i32) {
    %c0_i32 = arith.constant 0 : i32
    %c0_i32_0 = arith.constant 0 : i32
    return %arg0, %c0_i32 : i32, i32
  }
}

</mosaic_0001>

<bundles_post_ra>
// kernel: tpu_custom_call.1
= control target key start
LH: loop header
LB: loop body
LE: loop exit
PB: predicated region body
PF: predicated region fallthrough
CT: control target
= control target key end

     0   :  { %s9321_s0 = inlined_call_operand.vmem [shape: f32[8,128], index: 0, kind: input, shape index: {}]   ;;  %s9322_s1 = inlined_call_operand.vmem [shape: f32[128,1], index: 1, kind: input, shape index: {}]   ;;  %s9323_s2 = inlined_call_operand.vmem [shape: f32[128,1], index: 2, kind: input, shape index: {}]   ;;  %s9324_s3 = inlined_call_operand.vmem [shape: bf16[128,128], index: 3, kind: input, shape index: {}]   ;;  %s9325_s4 = inlined_call_operand.vmem [shape: f32[128,1], index: 4, kind: input, shape index: {}]   ;;  %s9326_s5 = inlined_call_operand.vmem [shape: f32[128,1], index: 5, kind: input, shape index: {}]   ;;  %s9327_s6 = inlined_call_operand.<no memory space> [shape: f32[1,1], index: 6, kind: input, shape index: {}]   ;;  %s9328_s7 = inlined_call_operand.hbm [shape: f32[8,128], index: 7, kind: output, shape index: {}]  }
   0x1   :  { %v12_v0 = vstv %s9327_s6 }
   0x2   :  { %13 = vst [vmem:[#allocation2] sm:$0x1] %v12_v0 }
   0x3   :  { %v6030_v1 = vld [vmem:[%s9322_s1 + $0x10] sm:$0xff]  ;;  %v6035_v2 = vld [vmem:[%s9322_s1] sm:$0xff]  ;;  %v5982_v3 = vmov 0   ;;  %v6042_v4 = vld [vmem:[%s9322_s1 + $0x18] sm:$0xff] }
   0x4   :  { %9500 = vst [vmem:[#allocation6_spill] sm:$0xff] %v6030_v1  ;;  %9501 = vst [vmem:[#allocation7_spill] sm:$0xff] %v6035_v2  ;;  %5879 = vset.pattern.permute.xlu1 %v5982_v3  ;;  %5878 = vset.pattern.permute.xlu0 %v5982_v3  ;;  %v6047_v5 = vld [vmem:[%s9322_s1 + $0x8] sm:$0xff]  ;;  %v6059_v7 = vld [vmem:[%s9322_s1 + $0x20] sm:$0xff] }
   0x5   :  { %59 = vperm.xlu1 %5879, %v6030_v1   ;;  %49 = vperm.xlu0 %5878, %v6035_v2   ;;  %9502 = vst [vmem:[#allocation8_spill] sm:$0xff] %v6042_v4  ;;  %9503 = vst [vmem:[#allocation9_spill] sm:$0xff] %v6047_v5  ;;  %v6054_v6 = vld [vmem:[%s9322_s1 + $0x28] sm:$0xff]  ;;  %v6066_v8 = vld [vmem:[%s9322_s1 + $0x38] sm:$0xff] }
   0x6   :  { %9504 = vst [vmem:[#allocation10_spill] sm:$0xff] %v6054_v6  ;;  %9505 = vst [vmem:[#allocation11_spill] sm:$0xff] %v6059_v7  ;;  %v6071_v9 = vld [vmem:[%s9322_s1 + $0x30] sm:$0xff]  ;;  %v6078_v10 = vld [vmem:[%s9322_s1 + $0x48] sm:$0xff] }
   0x7   :  { %9506 = vst [vmem:[#allocation12_spill] sm:$0xff] %v6066_v8  ;;  %9507 = vst [vmem:[#allocation13_spill] sm:$0xff] %v6071_v9  ;;  %v6083_v11 = vld [vmem:[%s9322_s1 + $0x40] sm:$0xff]  ;;  %v6090_v12 = vld [vmem:[%s9322_s1 + $0x58] sm:$0xff] }
   0x8   :  { %9508 = vst [vmem:[#allocation14_spill] sm:$0xff] %v6078_v10  ;;  %9509 = vst [vmem:[#allocation15_spill] sm:$0xff] %v6083_v11  ;;  %v6095_v13 = vld [vmem:[%s9322_s1 + $0x50] sm:$0xff]  ;;  %v6100_v14 = vld [vmem:[%s9322_s1 + $0x68] sm:$0xff] }
   0x9   :  { %64 = vperm.xlu1 %5879, %v6042_v4   ;;  %54 = vperm.xlu0 %5878, %v6047_v5   ;;  %9510 = vst [vmem:[#allocation16_spill] sm:$0xff] %v6090_v12  ;;  %9511 = vst [vmem:[#allocation17_spill] sm:$0xff] %v6095_v13  ;;  %v6105_v15 = vld [vmem:[%s9322_s1 + $0x60] sm:$0xff]  ;;  %v6112_v16 = vld [vmem:[%s9322_s1 + $0x78] sm:$0xff] }
   0xa   :  { %9512 = vst [vmem:[#allocation18_spill] sm:$0xff] %v6100_v14  ;;  %9513 = vst [vmem:[#allocation19_spill] sm:$0xff] %v6105_v15  ;;  %v6117_v17 = vld [vmem:[%s9322_s1 + $0x70] sm:$0xff]  ;;  %v6124_v18 = vld [vmem:[%s9323_s2 + $0x8] sm:$0xff] }
   0xb   :  { %9514 = vst [vmem:[#allocation20_spill] sm:$0xff] %v6112_v16  ;;  %9515 = vst [vmem:[#allocation21_spill] sm:$0xff] %v6117_v17  ;;  %v6129_v19 = vld [vmem:[%s9323_s2] sm:$0xff]  ;;  %v6136_v20 = vld [vmem:[%s9323_s2 + $0x18] sm:$0xff] }
   0xc   :  { %9516 = vst [vmem:[#allocation22_spill] sm:$0xff] %v6124_v18  ;;  %9517 = vst [vmem:[#allocation23_spill] sm:$0xff] %v6129_v19  ;;  %v6141_v21 = vld [vmem:[%s9323_s2 + $0x10] sm:$0xff]  ;;  %v6148_v22 = vld [vmem:[%s9323_s2 + $0x28] sm:$0xff] }
   0xd   :  { %74 = vperm.xlu1 %5879, %v6054_v6   ;;  %69 = vperm.xlu0 %5878, %v6059_v7   ;;  %9518 = vst [vmem:[#allocation24_spill] sm:$0xff] %v6136_v20  ;;  %9519 = vst [vmem:[#allocation25_spill] sm:$0xff] %v6141_v21  ;;  %v6153_v23 = vld [vmem:[%s9323_s2 + $0x20] sm:$0xff]  ;;  %v6160_v24 = vld [vmem:[%s9323_s2 + $0x38] sm:$0xff] }
   0xe   :  { %9520 = vst [vmem:[#allocation26_spill] sm:$0xff] %v6148_v22  ;;  %9521 = vst [vmem:[#allocation27_spill] sm:$0xff] %v6153_v23  ;;  %v6165_v25 = vld [vmem:[%s9323_s2 + $0x30] sm:$0xff]  ;;  %v6172_v26 = vld [vmem:[%s9323_s2 + $0x48] sm:$0xff] }
   0xf   :  { %9522 = vst [vmem:[#allocation28_spill] sm:$0xff] %v6160_v24  ;;  %9523 = vst [vmem:[#allocation29_spill] sm:$0xff] %v6165_v25  ;;  %v6177_v27 = vld [vmem:[%s9323_s2 + $0x40] sm:$0xff]  ;;  %v6184_v28 = vld [vmem:[%s9323_s2 + $0x58] sm:$0xff] }
  0x10   :  { %9524 = vst [vmem:[#allocation30_spill] sm:$0xff] %v6172_v26  ;;  %9525 = vst [vmem:[#allocation31_spill] sm:$0xff] %v6177_v27  ;;  %v6189_v29 = vld [vmem:[%s9323_s2 + $0x50] sm:$0xff]  ;;  %v6196_v30 = vld [vmem:[%s9323_s2 + $0x68] sm:$0xff] }
  0x11   :  { %84 = vperm.xlu1 %5879, %v6066_v8   ;;  %79 = vperm.xlu0 %5878, %v6071_v9   ;;  %9526 = vst [vmem:[#allocation32_spill] sm:$0xff] %v6189_v29  ;;  %v6201_v31 = vld [vmem:[%s9323_s2 + $0x60] sm:$0xff]  ;;  %v6208_v32 = vld [vmem:[%s9323_s2 + $0x78] sm:$0xff]  ;;  %v6213_v33 = vld [vmem:[%s9323_s2 + $0x70] sm:$0xff] }
  0x12   :  { %v6220_v34 = vld [vmem:[%s9325_s4 + $0x8] sm:$0xff]  ;;  %v6225_v35 = vld [vmem:[%s9325_s4] sm:$0xff] }
  0x15   :  { %94 = vperm.xlu1 %5879, %v6078_v10   ;;  %89 = vperm.xlu0 %5878, %v6083_v11  }
  0x19   :  { %104 = vperm.xlu1 %5879, %v6090_v12   ;;  %99 = vperm.xlu0 %5878, %v6095_v13  }
  0x1d   :  { %114 = vperm.xlu1 %5879, %v6100_v14   ;;  %109 = vperm.xlu0 %5878, %v6105_v15  }
  0x21   :  { %124 = vperm.xlu1 %5879, %v6112_v16   ;;  %119 = vperm.xlu0 %5878, %v6117_v17  }
  0x25   :  { %170 = vperm.xlu1 %5879, %v6124_v18   ;;  %165 = vperm.xlu0 %5878, %v6129_v19  }
  0x29   :  { %180 = vperm.xlu1 %5879, %v6136_v20   ;;  %175 = vperm.xlu0 %5878, %v6141_v21  }
  0x2d   :  { %190 = vperm.xlu1 %5879, %v6148_v22   ;;  %185 = vperm.xlu0 %5878, %v6153_v23  }
  0x31   :  { %200 = vperm.xlu1 %5879, %v6160_v24   ;;  %195 = vperm.xlu0 %5878, %v6165_v25  }
  0x35   :  { %210 = vperm.xlu1 %5879, %v6172_v26   ;;  %205 = vperm.xlu0 %5878, %v6177_v27  }
  0x39   :  { %220 = vperm.xlu1 %5879, %v6184_v28   ;;  %215 = vperm.xlu0 %5878, %v6189_v29  }
  0x3d   :  { %230 = vperm.xlu1 %5879, %v6196_v30   ;;  %225 = vperm.xlu0 %5878, %v6201_v31  }
  0x41   :  { %240 = vperm.xlu1 %5879, %v6208_v32   ;;  %235 = vperm.xlu0 %5878, %v6213_v33  }
  0x42   :  { %14 = vsyncpa [#allocation4], 0  ;;  %v6234_v36 = vld [vmem:[%s9325_s4 + $0x18] sm:$0xff]  ;;  %v6239_v37 = vld [vmem:[%s9325_s4 + $0x10] sm:$0xff] }
  0x43   :  { %v6246_v38 = vld [vmem:[%s9325_s4 + $0x28] sm:$0xff]  ;;  %v6251_v39 = vld [vmem:[%s9325_s4 + $0x20] sm:$0xff]  ;;  %v6258_v40 = vld [vmem:[%s9325_s4 + $0x38] sm:$0xff] }
  0x44   :  { %v6263_v41 = vld [vmem:[%s9325_s4 + $0x30] sm:$0xff]  ;;  %v6270_v42 = vld [vmem:[%s9325_s4 + $0x48] sm:$0xff]  ;;  %v6275_v43 = vld [vmem:[%s9325_s4 + $0x40] sm:$0xff] }
  0x45   :  { %322 = vperm.xlu1 %5879, %v6220_v34   ;;  %317 = vperm.xlu0 %5878, %v6225_v35   ;;  %v6282_v44 = vld [vmem:[%s9325_s4 + $0x58] sm:$0xff]  ;;  %v6287_v45 = vld [vmem:[%s9325_s4 + $0x50] sm:$0xff]  ;;  %v6294_v46 = vld [vmem:[%s9325_s4 + $0x68] sm:$0xff] }
  0x46   :  { %9527 = vst [vmem:[#allocation33_spill] sm:$0xff] %v6294_v46  ;;  %v6299_v47 = vld [vmem:[%s9325_s4 + $0x60] sm:$0xff]  ;;  %v6306_v48 = vld [vmem:[%s9325_s4 + $0x78] sm:$0xff]  ;;  %v6311_v49 = vld [vmem:[%s9325_s4 + $0x70] sm:$0xff] }
  0x47   :  { %9528 = vst [vmem:[#allocation34_spill] sm:$0xff] %v6306_v48  ;;  %v5880_v50 = vld [vmem:[%s9324_s3] sm:$0xff]   ;;  %v6321_v51 = vld [vmem:[%s9326_s5 + $0x8] sm:$0xff]  ;;  %v6333_v53 = vld [vmem:[%s9326_s5 + $0x18] sm:$0xff] }
  0x48   :  { %9529 = vst [vmem:[#allocation35_spill] sm:$0xff] %v6321_v51  ;;  %v6326_v52 = vld [vmem:[%s9326_s5] sm:$0xff]  ;;  %5636 = vmatprep.mubr.bf16.mxu0 %v5880_v50  ;;  %9531 = vst [vmem:[#allocation37_spill] sm:$0xff] %v6333_v53  ;;  %v6338_v54 = vld [vmem:[%s9326_s5 + $0x10] sm:$0xff] }
  0x49   :  { %332 = vperm.xlu1 %5879, %v6234_v36   ;;  %327 = vperm.xlu0 %5878, %v6239_v37   ;;  %9530 = vst [vmem:[#allocation36_spill] sm:$0xff] %v6326_v52  ;;  %9532 = vst [vmem:[#allocation38_spill] sm:$0xff] %v6338_v54  ;;  %v6345_v55 = vld [vmem:[%s9326_s5 + $0x28] sm:$0xff]  ;;  %v6350_v56 = vld [vmem:[%s9326_s5 + $0x20] sm:$0xff] }
  0x4a   :  { %9533 = vst [vmem:[#allocation39_spill] sm:$0xff] %v6345_v55  ;;  %9534 = vst [vmem:[#allocation40_spill] sm:$0xff] %v6350_v56  ;;  %v6357_v57 = vld [vmem:[%s9326_s5 + $0x38] sm:$0xff]  ;;  %v6362_v58 = vld [vmem:[%s9326_s5 + $0x30] sm:$0xff] }
  0x4b   :  { %9535 = vst [vmem:[#allocation41_spill] sm:$0xff] %v6357_v57  ;;  %9536 = vst [vmem:[#allocation42_spill] sm:$0xff] %v6362_v58  ;;  %v6369_v59 = vld [vmem:[%s9326_s5 + $0x48] sm:$0xff]  ;;  %v6374_v60 = vld [vmem:[%s9326_s5 + $0x40] sm:$0xff] }
  0x4c   :  { %9537 = vst [vmem:[#allocation43_spill] sm:$0xff] %v6369_v59  ;;  %9538 = vst [vmem:[#allocation44_spill] sm:$0xff] %v6374_v60  ;;  %v6381_v61 = vld [vmem:[%s9326_s5 + $0x58] sm:$0xff]  ;;  %v6386_v62 = vld [vmem:[%s9326_s5 + $0x50] sm:$0xff] }
  0x4d   :  { %342 = vperm.xlu1 %5879, %v6246_v38   ;;  %337 = vperm.xlu0 %5878, %v6251_v39   ;;  %9539 = vst [vmem:[#allocation45_spill] sm:$0xff] %v6381_v61  ;;  %9540 = vst [vmem:[#allocation46_spill] sm:$0xff] %v6386_v62  ;;  %v6393_v63 = vld [vmem:[%s9326_s5 + $0x68] sm:$0xff]  ;;  %v6398_v0 = vld [vmem:[%s9326_s5 + $0x60] sm:$0xff] }
  0x4e   :  { %9541 = vst [vmem:[#allocation47_spill] sm:$0xff] %v6393_v63  ;;  %9542 = vst [vmem:[#allocation48_spill] sm:$0xff] %v6398_v0  ;;  %v6405_v3 = vld [vmem:[%s9326_s5 + $0x78] sm:$0xff]  ;;  %v6410_v50 = vld [vmem:[%s9326_s5 + $0x70] sm:$0xff] }
  0x4f   :  { %9543 = vst [vmem:[#allocation49_spill] sm:$0xff] %v6405_v3  ;;  %9544 = vst [vmem:[#allocation50_spill] sm:$0xff] %v6410_v50 }
  0x51   :  { %352 = vperm.xlu1 %5879, %v6258_v40   ;;  %347 = vperm.xlu0 %5878, %v6263_v41  }
  0x55   :  { %362 = vperm.xlu1 %5879, %v6270_v42   ;;  %357 = vperm.xlu0 %5878, %v6275_v43  }
  0x59   :  { %372 = vperm.xlu1 %5879, %v6282_v44   ;;  %367 = vperm.xlu0 %5878, %v6287_v45  }
  0x5d   :  { %382 = vperm.xlu1 %5879, %v6294_v46   ;;  %377 = vperm.xlu0 %5878, %v6299_v47  }
  0x61   :  { %392 = vperm.xlu1 %5879, %v6306_v48   ;;  %387 = vperm.xlu0 %5878, %v6311_v49  }
  0x65   :  { %579 = vperm.xlu1 %5879, %v6321_v51   ;;  %574 = vperm.xlu0 %5878, %v6326_v52  }
  0x69   :  { %589 = vperm.xlu1 %5879, %v6333_v53   ;;  %584 = vperm.xlu0 %5878, %v6338_v54  }
  0x6d   :  { %599 = vperm.xlu1 %5879, %v6345_v55   ;;  %594 = vperm.xlu0 %5878, %v6350_v56  }
  0x71   :  { %609 = vperm.xlu1 %5879, %v6357_v57   ;;  %604 = vperm.xlu0 %5878, %v6362_v58  }
  0x75   :  { %619 = vperm.xlu1 %5879, %v6369_v59   ;;  %614 = vperm.xlu0 %5878, %v6374_v60  }
  0x79   :  { %629 = vperm.xlu1 %5879, %v6381_v61   ;;  %624 = vperm.xlu0 %5878, %v6386_v62  }
  0x7d   :  { %639 = vperm.xlu1 %5879, %v6393_v63   ;;  %634 = vperm.xlu0 %5878, %v6398_v0   ;;  %v689_v63 = vld [vmem:[#allocation2] sm:$0x1] }
  0x80   :  { %v6412_v61 = vpop.permute.xlu1 %59  ;;  %v6414_v59 = vpop.permute.xlu0 %49 }
  0x81   :  { %649 = vperm.xlu1 %5879, %v6405_v3   ;;  %644 = vperm.xlu0 %5878, %v6410_v50  }
  0x84   :  { %v6418_v0 = vpop.permute.xlu1 %64  ;;  %v6420_v62 = vpop.permute.xlu0 %54 }
  0x85   :  { %721 = vperm.xlu1 %5879, %v6035_v2   ;;  %692 = vperm.xlu0 %5878, %v689_v63  }
  0x88   :  { %v6423_v57 = vpop.permute.xlu1 %74  ;;  %v6425_v60 = vpop.permute.xlu0 %69 }
  0x89   :  { %731 = vperm.xlu1 %5879, %v6030_v1   ;;  %726 = vperm.xlu0 %5878, %v6047_v5  }
  0x8c   :  { %v6429_v55 = vpop.permute.xlu1 %84  ;;  %v6431_v3 = vpop.permute.xlu0 %79 }
  0x8d   :  { %741 = vperm.xlu1 %5879, %v6059_v7   ;;  %736 = vperm.xlu0 %5878, %v6042_v4  }
  0x90   :  { %v6435_v50 = vpop.permute.xlu1 %94  ;;  %v6437_v2 = vpop.permute.xlu0 %89 }
  0x91   :  { %751 = vperm.xlu1 %5879, %v6071_v9   ;;  %746 = vperm.xlu0 %5878, %v6054_v6  }
  0x94   :  { %v105_v63 = vpop.permute.xlu1 %104  ;;  %v100_v1 = vpop.permute.xlu0 %99 }
  0x95   :  { %761 = vperm.xlu1 %5879, %v6083_v11   ;;  %756 = vperm.xlu0 %5878, %v6066_v8  }
  0x98   :  { %v115_v5 = vpop.permute.xlu1 %114  ;;  %v110_v58 = vpop.permute.xlu0 %109 }
  0x99   :  { %771 = vperm.xlu1 %5879, %v6095_v13   ;;  %766 = vperm.xlu0 %5878, %v6078_v10  }
  0x9c   :  { %v125_v7 = vpop.permute.xlu1 %124  ;;  %v120_v4 = vpop.permute.xlu0 %119 }
  0x9d   :  { %781 = vperm.xlu1 %5879, %v6105_v15   ;;  %776 = vperm.xlu0 %5878, %v6090_v12  }
  0xa0   :  { %v6447_v9 = vpop.permute.xlu1 %170  ;;  %v6449_v6 = vpop.permute.xlu0 %165 }
  0xa1   :  { %791 = vperm.xlu1 %5879, %v6117_v17   ;;  %786 = vperm.xlu0 %5878, %v6100_v14  }
  0xa4   :  { %v6453_v11 = vpop.permute.xlu1 %180  ;;  %v6455_v8 = vpop.permute.xlu0 %175 }
  0xa5   :  { %837 = vperm.xlu1 %5879, %v6129_v19   ;;  %796 = vperm.xlu0 %5878, %v6112_v16  }
  0xa8   :  { %v6459_v13 = vpop.permute.xlu1 %190  ;;  %v6461_v15 = vpop.permute.xlu0 %185 }
  0xa9   :  { %847 = vperm.xlu1 %5879, %v6141_v21   ;;  %842 = vperm.xlu0 %5878, %v6124_v18  }
  0xac   :  { %v201_v12 = vpop.permute.xlu1 %200  ;;  %v196_v17 = vpop.permute.xlu0 %195 }
  0xad   :  { %857 = vperm.xlu1 %5879, %v6153_v23   ;;  %852 = vperm.xlu0 %5878, %v6136_v20   ;;  %v6474_v23 = vld [vmem:[%s9321_s0] ss:$0 sm:$0xff] }
  0xae   :  { %v146_v20 = vmul.f32 %v6474_v23, %v125_v7 }
  0xb0   :  { %v211_v14 = vpop.permute.xlu1 %210  ;;  %v206_v10 = vpop.permute.xlu0 %205 }
  0xb1   :  { %867 = vperm.xlu1 %5879, %v6165_v25   ;;  %862 = vperm.xlu0 %5878, %v6148_v22   ;;  %v144_v25 = vmul.f32 %v6474_v23, %v115_v5  ;;  %v143_v22 = vmul.f32 %v6474_v23, %v110_v58  ;;  %v141_v5 = vmul.f32 %v6474_v23, %v100_v1 }
  0xb2   :  { %v139_v1 = vmul.f32 %v6474_v23, %v6437_v2  ;;  %v137_v2 = vmul.f32 %v6474_v23, %v6431_v3 }
  0xb4   :  { %v221_v19 = vpop.permute.xlu1 %220  ;;  %v216_v16 = vpop.permute.xlu0 %215 }
  0xb5   :  { %877 = vperm.xlu1 %5879, %v6177_v27   ;;  %872 = vperm.xlu0 %5878, %v6160_v24   ;;  %v145_v27 = vmul.f32 %v6474_v23, %v120_v4  ;;  %v253_v7 = vadd.f32 %v216_v16, %v141_v5  ;;  %v251_v16 = vadd.f32 %v206_v10, %v139_v1  ;;  %v9551_v1 = vld [vmem:[#allocation34_spill] sm:$0xff] }
  0xb8   :  { %v231_v21 = vpop.permute.xlu1 %230  ;;  %v226_v18 = vpop.permute.xlu0 %225 }
  0xb9   :  { %887 = vperm.xlu1 %5879, %v6189_v29   ;;  %882 = vperm.xlu0 %5878, %v6172_v26   ;;  %v256_v24 = vadd.f32 %v231_v21, %v144_v25  ;;  %v255_v53 = vadd.f32 %v226_v18, %v143_v22  ;;  %v142_v29 = vmul.f32 %v6474_v23, %v105_v63 }
  0xbb   :  { %v254_v52 = vadd.f32 %v221_v19, %v142_v29  ;;  %v272_v46 = vmax.f32 %v256_v24, 0.0  ;;  %v271_v4 = vmax.f32 %v255_v53, 0.0  ;;  %v269_v24 = vmax.f32 %v253_v7, 0.0 }
  0xbc   :  { %v241_v56 = vpop.permute.xlu1 %240  ;;  %v236_v51 = vpop.permute.xlu0 %235 }
  0xbd   :  { %v258_v54 = vadd.f32 %v241_v56, %v146_v20  ;;  %v257_v48 = vadd.f32 %v236_v51, %v145_v27  ;;  %897 = vperm.xlu1 %5879, %v6201_v31   ;;  %892 = vperm.xlu0 %5878, %v6184_v28   ;;  %v140_v20 = vmul.f32 %v6474_v23, %v6435_v50  ;;  %v270_v19 = vmax.f32 %v254_v52, 0.0 }
  0xbe   :  { %v297_v31 = vpack.c.bf16 %v272_v46, %v271_v4  ;;  %v136_v52 = vmul.f32 %v6474_v23, %v6423_v57 }
  0xbf   :  { %v274_v26 = vmax.f32 %v258_v54, 0.0  ;;  %v273_v58 = vmax.f32 %v257_v48, 0.0  ;;  %v252_v25 = vadd.f32 %v211_v14, %v140_v20  ;;  %v249_v14 = vadd.f32 %v196_v17, %v137_v2  ;;  %v9549_v20 = vld [vmem:[#allocation33_spill] sm:$0xff] }
  0xc0   :  { %v6486_v21 = vpop.permute.xlu1 %322  ;;  %v6488_v18 = vpop.permute.xlu0 %317  ;;  %v296_v46 = vpack.c.bf16 %v270_v19, %v269_v24  ;;  %v5884_v24 = vld [vmem:[%s9324_s3 + $0x20] sm:$0xff]  }
  0xc1   :  { %907 = vperm.xlu1 %5879, %v6213_v33   ;;  %902 = vperm.xlu0 %5878, %v6196_v30   ;;  %v298_v22 = vpack.c.bf16 %v274_v26, %v273_v58  ;;  %v138_v33 = vmul.f32 %v6474_v23, %v6429_v55  ;;  %v268_v26 = vmax.f32 %v252_v25, 0.0  ;;  %v267_v30 = vmax.f32 %v251_v16, 0.0  ;;  %v5888_v25 = vld [vmem:[%s9324_s3] sm:$0xff]  }
  0xc2   :  { %v265_v53 = vmax.f32 %v249_v14, 0.0  ;;  %5668 = vmatprep.mubr.bf16.mxu1 %v5888_v25  ;;  %v9554_v14 = vld [vmem:[#allocation40_spill] sm:$0xff] }
  0xc3   :  { %5620 = vmatprep.subr.bf16.mxu0 %v298_v22  ;;  %v250_v10 = vadd.f32 %v201_v12, %v138_v33  ;;  %v248_v12 = vadd.f32 %v6459_v13, %v136_v52  ;;  %v295_v56 = vpack.c.bf16 %v268_v26, %v267_v30  ;;  %v133_v13 = vmul.f32 %v6474_v23, %v6412_v61  ;;  %v9553_v33 = vld [vmem:[#allocation35_spill] sm:$0xff]  ;;  %v9555_v26 = vld [vmem:[#allocation37_spill] sm:$0xff] }
  0xc4   :  { %v6496_v27 = vpop.permute.xlu1 %332  ;;  %v6498_v29 = vpop.permute.xlu0 %327  ;;  %5621 = vmatpush3.bf16.msra.mxu0 %v298_v22  ;;  %v9550_v22 = vld [vmem:[#allocation36_spill] sm:$0xff]  ;;  %v5885_v30 = vld [vmem:[%s9324_s3 + $0x28] sm:$0xff]  }
  0xc5   :  { %989 = vperm.xlu1 %5879, %v6225_v35   ;;  %912 = vperm.xlu0 %5878, %v6208_v32   ;;  %v135_v32 = vmul.f32 %v6474_v23, %v6425_v60  ;;  %v266_v35 = vmax.f32 %v250_v10, 0.0  ;;  %v264_v57 = vmax.f32 %v248_v12, 0.0  ;;  %v9558_v12 = vld [vmem:[#allocation42_spill] sm:$0xff] }
  0xc6   :  { %5622 = vmatprep.subr.bf16.mxu0 %v297_v31 }
  0xc7   :  { %v247_v17 = vadd.f32 %v6461_v15, %v135_v32  ;;  %v5886_v32 = vld [vmem:[%s9324_s3 + $0x30] sm:$0xff]  }
  0xc8   :  { %v6506_v48 = vpop.permute.xlu1 %342  ;;  %v6508_v51 = vpop.permute.xlu0 %337  ;;  %5623 = vmatpush3.bf16.msra.mxu0 %v297_v31  ;;  %v9552_v31 = vld [vmem:[#allocation38_spill] sm:$0xff] }
  0xc9   :  { %999 = vperm.xlu1 %5879, %v6239_v37   ;;  %994 = vperm.xlu0 %5878, %v6220_v34   ;;  %v134_v37 = vmul.f32 %v6474_v23, %v6418_v0  ;;  %v245_v34 = vadd.f32 %v6455_v8, %v133_v13  ;;  %v263_v60 = vmax.f32 %v247_v17, 0.0  ;;  %v294_v0 = vpack.c.bf16 %v266_v35, %v265_v53  ;;  %v9559_v17 = vld [vmem:[#allocation39_spill] sm:$0xff] }
  0xca   :  { %5624 = vmatprep.subr.bf16.mxu0 %v296_v46  ;;  %v5887_v13 = vld [vmem:[%s9324_s3 + $0x38] sm:$0xff]  }
  0xcb   :  { %v246_v15 = vadd.f32 %v6453_v11, %v134_v37  ;;  %v131_v11 = vmul.f32 %v6474_v23, %v6414_v59  ;;  %v261_v63 = vmax.f32 %v245_v34, 0.0  ;;  %v9563_v37 = vld [vmem:[#allocation41_spill] sm:$0xff] }
  0xcc   :  { %v6518_v54 = vpop.permute.xlu1 %352  ;;  %v6520_v55 = vpop.permute.xlu0 %347  ;;  %5625 = vmatpush3.bf16.msra.mxu0 %v296_v46 }
  0xcd   :  { %1009 = vperm.xlu1 %5879, %v6251_v39   ;;  %1004 = vperm.xlu0 %5878, %v6234_v36   ;;  %v132_v39 = vmul.f32 %v6474_v23, %v6420_v62  ;;  %v243_v36 = vadd.f32 %v6449_v6, %v131_v11  ;;  %v262_v61 = vmax.f32 %v246_v15, 0.0  ;;  %v293_v62 = vpack.c.bf16 %v264_v57, %v263_v60  ;;  %v9566_v57 = vld [vmem:[#allocation46_spill] sm:$0xff]  ;;  %v9567_v60 = vld [vmem:[#allocation43_spill] sm:$0xff]  ;;  %v9570_v11 = vld [vmem:[#allocation48_spill] sm:$0xff] }
  0xce   :  { %5626 = vmatprep.subr.bf16.mxu0 %v295_v56 }
  0xcf   :  { %v244_v8 = vadd.f32 %v6447_v9, %v132_v39  ;;  %v259_v23 = vmax.f32 %v243_v36, 0.0  ;;  %v292_v6 = vpack.c.bf16 %v262_v61, %v261_v63  ;;  %v9573_v63 = vld [vmem:[#allocation50_spill] sm:$0xff] }
  0xd0   :  { %v6530_v3 = vpop.permute.xlu1 %362  ;;  %v6532_v50 = vpop.permute.xlu0 %357  ;;  %5627 = vmatpush3.bf16.msra.mxu0 %v295_v56  ;;  %v9562_v56 = vld [vmem:[#allocation44_spill] sm:$0xff] }
  0xd1   :  { %1019 = vperm.xlu1 %5879, %v6263_v41   ;;  %1014 = vperm.xlu0 %5878, %v6246_v38   ;;  %v260_v38 = vmax.f32 %v244_v8, 0.0  ;;  %v9571_v8 = vld [vmem:[#allocation45_spill] sm:$0xff] }
  0xd2   :  { %5628 = vmatprep.subr.bf16.mxu0 %v294_v0 }
  0xd4   :  { %v6542_v5 = vpop.permute.xlu1 %372  ;;  %v6544_v58 = vpop.permute.xlu0 %367  ;;  %5629 = vmatpush3.bf16.msra.mxu0 %v294_v0 }
  0xd5   :  { %1029 = vperm.xlu1 %5879, %v6275_v43   ;;  %1024 = vperm.xlu0 %5878, %v6258_v40   ;;  %v291_v40 = vpack.c.bf16 %v260_v38, %v259_v23  ;;  %v5881_v43 = vld [vmem:[%s9324_s3 + $0x8] sm:$0xff]   ;;  %v1361_v38 = vld [vmem:[#allocation2] sm:$0x1] }
  0xd6   :  { %5630 = vmatprep.subr.bf16.mxu0 %v293_v62 }
  0xd8   :  { %v6548_v41 = vpop.permute.xlu1 %382  ;;  %v6550_v9 = vpop.permute.xlu0 %377  ;;  %5631 = vmatpush3.bf16.msra.mxu0 %v293_v62  ;;  %v9574_v62 = vld [vmem:[#allocation47_spill] sm:$0xff] }
  0xd9   :  { %9545 = vst [vmem:[#allocation51_spill] sm:$0xff] %v6548_v41  ;;  %9546 = vst [vmem:[#allocation52_spill] sm:$0xff] %v6550_v9  ;;  %1039 = vperm.xlu1 %5879, %v6287_v45   ;;  %1034 = vperm.xlu0 %5878, %v6270_v42   ;;  %v5882_v42 = vld [vmem:[%s9324_s3 + $0x10] sm:$0xff]  }
  0xda   :  { %5632 = vmatprep.subr.bf16.mxu0 %v292_v6  ;;  %v9600_v41 = vld [vmem:[#allocation30_spill] sm:$0xff] }
  0xdc   :  { %v6554_v59 = vpop.permute.xlu1 %392  ;;  %v6556_v7 = vpop.permute.xlu0 %387  ;;  %5633 = vmatpush3.bf16.msra.mxu0 %v292_v6 }
  0xdd   :  { %9547 = vst [vmem:[#allocation53_spill] sm:$0xff] %v6554_v59  ;;  %9548 = vst [vmem:[#allocation54_spill] sm:$0xff] %v6556_v7  ;;  %1049 = vperm.xlu1 %5879, %v6299_v47   ;;  %1044 = vperm.xlu0 %5878, %v6282_v44  }
  0xde   :  { %5634 = vmatprep.subr.bf16.mxu0 %v291_v40 }
  0xe0   :  { %v6563_v4 = vpop.permute.xlu1 %579  ;;  %v6565_v45 = vpop.permute.xlu0 %574  ;;  %5635 = vmatpush3.bf16.msra.mxu0 %v291_v40  ;;  %v9575_v40 = vld [vmem:[#allocation49_spill] sm:$0xff] }
  0xe1   :  { %1059 = vperm.xlu1 %5879, %v6311_v49   ;;  %1054 = vperm.xlu0 %5878, %v9549_v20   ;;  %v5883_v49 = vld [vmem:[%s9324_s3 + $0x18] sm:$0xff]   ;;  %v9576_v20 = vld [vmem:[#allocation9_spill] sm:$0xff] }
  0xe3   :  { %5637 = vmatmul.mubr.bf16.vlgmr.msra.gmra.mxu0 %v5881_v43 }
  0xe4   :  { %v6572_v44 = vpop.permute.xlu1 %589  ;;  %v6574_v47 = vpop.permute.xlu0 %584  ;;  %5640 = vmatprep.mubr.bf16.mxu0 %v5882_v42 }
  0xe5   :  { %1246 = vperm.xlu1 %5879, %v9550_v22   ;;  %1064 = vperm.xlu0 %5878, %v9551_v1   ;;  %v9577_v22 = vld [vmem:[#allocation7_spill] sm:$0xff] }
  0xe8   :  { %v6584_v16 = vpop.permute.xlu1 %599  ;;  %v6586_v19 = vpop.permute.xlu0 %594 }
  0xe9   :  { %1256 = vperm.xlu1 %5879, %v9552_v31   ;;  %1251 = vperm.xlu0 %5878, %v9553_v33  }
  0xeb   :  { %5641 = vmatmul.mubr.bf16.gmra.mxu0 %v5883_v49  ;;  %v9578_v49 = vld [vmem:[#allocation8_spill] sm:$0xff] }
  0xec   :  { %v6593_v2 = vpop.permute.xlu1 %609  ;;  %v6595_v10 = vpop.permute.xlu0 %604  ;;  %5644 = vmatprep.mubr.bf16.mxu0 %v5884_v24  ;;  %v9579_v24 = vld [vmem:[#allocation6_spill] sm:$0xff] }
  0xed   :  { %1266 = vperm.xlu1 %5879, %v9554_v14   ;;  %1261 = vperm.xlu0 %5878, %v9555_v26   ;;  %v9580_v14 = vld [vmem:[#allocation10_spill] sm:$0xff]  ;;  %v9581_v26 = vld [vmem:[#allocation11_spill] sm:$0xff] }
  0xf0   :  { %v6602_v46 = vpop.permute.xlu1 %619  ;;  %v6604_v52 = vpop.permute.xlu0 %614 }
  0xf1   :  { %9556 = vst [vmem:[#allocation33_spill] sm:$0xff] %v6602_v46  ;;  %9557 = vst [vmem:[#allocation36_spill] sm:$0xff] %v6604_v52  ;;  %1276 = vperm.xlu1 %5879, %v9558_v12   ;;  %1271 = vperm.xlu0 %5878, %v9559_v17   ;;  %v9582_v12 = vld [vmem:[#allocation12_spill] sm:$0xff]  ;;  %v9583_v17 = vld [vmem:[#allocation13_spill] sm:$0xff] }
  0xf2   :  { %v6730_v52 = vld [vmem:[%s9323_s2 + $0x78] sm:$0xff] }
  0xf3   :  { %5645 = vmatmul.mubr.bf16.gmra.mxu0 %v5885_v30 }
  0xf4   :  { %v6611_v35 = vpop.permute.xlu1 %629  ;;  %v6613_v53 = vpop.permute.xlu0 %624  ;;  %5648 = vmatprep.mubr.bf16.mxu0 %v5886_v32 }
  0xf5   :  { %9560 = vst [vmem:[#allocation34_spill] sm:$0xff] %v6611_v35  ;;  %9561 = vst [vmem:[#allocation38_spill] sm:$0xff] %v6613_v53  ;;  %1286 = vperm.xlu1 %5879, %v9562_v56   ;;  %1281 = vperm.xlu0 %5878, %v9563_v37  }
  0xf8   :  { %v6620_v15 = vpop.permute.xlu1 %639  ;;  %v6622_v34 = vpop.permute.xlu0 %634 }
  0xf9   :  { %9564 = vst [vmem:[#allocation35_spill] sm:$0xff] %v6620_v15  ;;  %9565 = vst [vmem:[#allocation40_spill] sm:$0xff] %v6622_v34  ;;  %1296 = vperm.xlu1 %5879, %v9566_v57   ;;  %1291 = vperm.xlu0 %5878, %v9567_v60   ;;  %v9585_v57 = vld [vmem:[#allocation15_spill] sm:$0xff] }
  0xfb   :  { %5649 = vmatmul.mubr.bf16.gmra.mxu0 %v5887_v13  ;;  %v9584_v13 = vld [vmem:[#allocation14_spill] sm:$0xff] }
  0xfc   :  { %v6626_v0 = vpop.permute.xlu1 %649  ;;  %v6628_v39 = vpop.permute.xlu0 %644 }
  0xfd   :  { %9568 = vst [vmem:[#allocation37_spill] sm:$0xff] %v6626_v0  ;;  %9569 = vst [vmem:[#allocation42_spill] sm:$0xff] %v6628_v39  ;;  %1306 = vperm.xlu1 %5879, %v9570_v11   ;;  %1301 = vperm.xlu0 %5878, %v9571_v8   ;;  %v9586_v8 = vld [vmem:[#allocation16_spill] sm:$0xff] }
 0x100   :  { %v6632_v36 = vpop.permute.xlu1 %721  ;;  %v6634_v61 = vpop.permute.xlu0 %692 }
 0x101   :  { %9572 = vst [vmem:[#allocation39_spill] sm:$0xff] %v6634_v61  ;;  %1316 = vperm.xlu1 %5879, %v9573_v63   ;;  %1311 = vperm.xlu0 %5878, %v9574_v62   ;;  %v9587_v63 = vld [vmem:[#allocation17_spill] sm:$0xff]  ;;  %v9597_v61 = vld [vmem:[#allocation27_spill] sm:$0xff] }
 0x104   :  { %v6638_v23 = vpop.permute.xlu1 %731  ;;  %v6640_v6 = vpop.permute.xlu0 %726 }
 0x105   :  { %1364 = vperm.xlu1 %5879, %v1361_v38   ;;  %1321 = vperm.xlu0 %5878, %v9575_v40   ;;  %v9588_v40 = vld [vmem:[#allocation18_spill] sm:$0xff] }
 0x108   :  { %v6643_v43 = vpop.permute.xlu1 %741  ;;  %v6645_v42 = vpop.permute.xlu0 %736 }
 0x109   :  { %1398 = vperm.xlu1 %5879, %v9576_v20   ;;  %1393 = vperm.xlu0 %5878, %v9577_v22   ;;  %v9589_v20 = vld [vmem:[#allocation19_spill] sm:$0xff] }
 0x10c   :  { %v6649_v1 = vpop.permute.xlu1 %751  ;;  %v6651_v25 = vpop.permute.xlu0 %746 }
 0x10d   :  { %1408 = vperm.xlu1 %5879, %v9578_v49   ;;  %1403 = vperm.xlu0 %5878, %v9579_v24   ;;  %v9590_v24 = vld [vmem:[#allocation20_spill] sm:$0xff] }
 0x110   :  { %v6655_v31 = vpop.permute.xlu1 %761  ;;  %v6657_v33 = vpop.permute.xlu0 %756 }
 0x111   :  { %1418 = vperm.xlu1 %5879, %v9580_v14   ;;  %1413 = vperm.xlu0 %5878, %v9581_v26   ;;  %v9591_v14 = vld [vmem:[#allocation21_spill] sm:$0xff] }
 0x114   :  { %v6661_v30 = vpop.permute.xlu1 %771  ;;  %v6663_v32 = vpop.permute.xlu0 %766 }
 0x115   :  { %1428 = vperm.xlu1 %5879, %v9582_v12   ;;  %1423 = vperm.xlu0 %5878, %v9583_v17   ;;  %v9592_v17 = vld [vmem:[#allocation22_spill] sm:$0xff] }
 0x118   :  { %v782_v56 = vpop.permute.xlu1 %781  ;;  %v777_v37 = vpop.permute.xlu0 %776 }
 0x119   :  { %1438 = vperm.xlu1 %5879, %v9584_v13   ;;  %1433 = vperm.xlu0 %5878, %v9585_v57   ;;  %v9593_v13 = vld [vmem:[#allocation23_spill] sm:$0xff] }
 0x11c   :  { %v792_v60 = vpop.permute.xlu1 %791  ;;  %v787_v11 = vpop.permute.xlu0 %786 }
 0x11d   :  { %1448 = vperm.xlu1 %5879, %v9586_v8   ;;  %1443 = vperm.xlu0 %5878, %v9587_v63   ;;  %v9594_v63 = vld [vmem:[#allocation24_spill] sm:$0xff] }
 0x120   :  { %v6671_v62 = vpop.permute.xlu1 %837  ;;  %v797_v38 = vpop.permute.xlu0 %796 }
 0x121   :  { %1458 = vperm.xlu1 %5879, %v9588_v40   ;;  %1453 = vperm.xlu0 %5878, %v9589_v20   ;;  %v9595_v40 = vld [vmem:[#allocation25_spill] sm:$0xff] }
 0x124   :  { %v6675_v22 = vpop.permute.xlu1 %847  ;;  %v6677_v49 = vpop.permute.xlu0 %842 }
 0x125   :  { %1468 = vperm.xlu1 %5879, %v9590_v24   ;;  %1463 = vperm.xlu0 %5878, %v9591_v14   ;;  %v9596_v14 = vld [vmem:[#allocation26_spill] sm:$0xff] }
 0x128   :  { %v6681_v26 = vpop.permute.xlu1 %857  ;;  %v6683_v12 = vpop.permute.xlu0 %852 }
 0x129   :  { %1514 = vperm.xlu1 %5879, %v9592_v17   ;;  %1509 = vperm.xlu0 %5878, %v9593_v13   ;;  %v9598_v17 = vld [vmem:[#allocation28_spill] sm:$0xff]  ;;  %v9599_v13 = vld [vmem:[#allocation29_spill] sm:$0xff] }
 0x12c   :  { %v6687_v57 = vpop.permute.xlu1 %867  ;;  %v6689_v8 = vpop.permute.xlu0 %862 }
 0x12d   :  { %1524 = vperm.xlu1 %5879, %v9594_v63   ;;  %1519 = vperm.xlu0 %5878, %v9595_v40   ;;  %v9601_v63 = vld [vmem:[#allocation31_spill] sm:$0xff]  ;;  %v6704_v40 = vld [vmem:[%s9321_s0 + $0x1] ss:$0 sm:$0xff] }
 0x12e   :  { %v818_v35 = vmul.f32 %v6704_v40, %v797_v38  ;;  %v814_v9 = vmul.f32 %v6704_v40, %v777_v37 }
 0x130   :  { %v878_v20 = vpop.permute.xlu1 %877  ;;  %v6693_v24 = vpop.permute.xlu0 %872 }
 0x131   :  { %1534 = vperm.xlu1 %5879, %v9596_v14   ;;  %1529 = vperm.xlu0 %5878, %v9597_v61   ;;  %v817_v61 = vmul.f32 %v6704_v40, %v792_v60  ;;  %v815_v60 = vmul.f32 %v6704_v40, %v782_v56 }
 0x134   :  { %v888_v0 = vpop.permute.xlu1 %887  ;;  %v883_v39 = vpop.permute.xlu0 %882 }
 0x135   :  { %1544 = vperm.xlu1 %5879, %v9598_v17   ;;  %1539 = vperm.xlu0 %5878, %v9599_v13   ;;  %v9602_v17 = vld [vmem:[#allocation32_spill] sm:$0xff]  ;;  %v816_v13 = vmul.f32 %v6704_v40, %v787_v11 }
 0x138   :  { %v898_v15 = vpop.permute.xlu1 %897  ;;  %v893_v34 = vpop.permute.xlu0 %892 }
 0x139   :  { %1554 = vperm.xlu1 %5879, %v9600_v41   ;;  %1549 = vperm.xlu0 %5878, %v9601_v63   ;;  %v6713_v41 = vld [vmem:[%s9323_s2 + $0x68] sm:$0xff]  ;;  %v6718_v63 = vld [vmem:[%s9323_s2 + $0x60] sm:$0xff]  ;;  %v927_v46 = vadd.f32 %v898_v15, %v815_v60  ;;  %v812_v60 = vmul.f32 %v6704_v40, %v6663_v32  ;;  %v810_v32 = vmul.f32 %v6704_v40, %v6657_v33 }
 0x13c   :  { %v908_v14 = vpop.permute.xlu1 %907  ;;  %v903_v59 = vpop.permute.xlu0 %902 }
 0x13d   :  { %1564 = vperm.xlu1 %5879, %v6184_v28   ;;  %1559 = vperm.xlu0 %5878, %v9602_v17   ;;  %v929_v7 = vadd.f32 %v908_v14, %v817_v61  ;;  %v928_v28 = vadd.f32 %v903_v59, %v816_v13  ;;  %v6735_v59 = vld [vmem:[%s9323_s2 + $0x70] sm:$0xff]  ;;  %v926_v14 = vadd.f32 %v893_v34, %v814_v9  ;;  %v6755_v9 = vld [vmem:[%s9325_s4] sm:$0xff] }
 0x13e   :  { %v811_v34 = vmul.f32 %v6704_v40, %v6655_v31  ;;  %v6775_v31 = vld [vmem:[%s9325_s4 + $0x10] sm:$0xff] }
 0x13f   :  { %v945_v56 = vmax.f32 %v929_v7, 0.0  ;;  %v944_v61 = vmax.f32 %v928_v28, 0.0  ;;  %v943_v7 = vmax.f32 %v927_v46, 0.0  ;;  %v924_v28 = vadd.f32 %v883_v39, %v812_v60  ;;  %v6770_v39 = vld [vmem:[%s9325_s4 + $0x18] sm:$0xff] }
 0x140   :  { %v6722_v53 = vpop.permute.xlu1 %989  ;;  %v913_v17 = vpop.permute.xlu0 %912 }
 0x141   :  { %9603 = vst [vmem:[#allocation44_spill] sm:$0xff] %v6722_v53  ;;  %v930_v11 = vadd.f32 %v913_v17, %v818_v35  ;;  %1574 = vperm.xlu1 %5879, %v6713_v41   ;;  %1569 = vperm.xlu0 %5878, %v6718_v63   ;;  %v813_v35 = vmul.f32 %v6704_v40, %v6661_v30  ;;  %v6750_v30 = vld [vmem:[%s9325_s4 + $0x8] sm:$0xff] }
 0x142   :  { %v7071_v53 = vld [vmem:[%s9322_s1 + $0x8] sm:$0xff] }
 0x143   :  { %v946_v38 = vmax.f32 %v930_v11, 0.0  ;;  %v925_v17 = vadd.f32 %v888_v0, %v813_v35  ;;  %v942_v11 = vmax.f32 %v926_v14, 0.0  ;;  %v969_v0 = vpack.c.bf16 %v944_v61, %v943_v7  ;;  %9663 = vst [vmem:[#allocation79_spill] sm:$0xff] %v7071_v53 }
 0x144   :  { %v6739_v13 = vpop.permute.xlu1 %999  ;;  %v6741_v15 = vpop.permute.xlu0 %994  ;;  %v809_v14 = vmul.f32 %v6704_v40, %v6649_v1  ;;  %v922_v61 = vadd.f32 %v6693_v24, %v810_v32  ;;  %v6792_v1 = vld [vmem:[%s9325_s4 + $0x28] sm:$0xff]  ;;  %v6797_v24 = vld [vmem:[%s9325_s4 + $0x20] sm:$0xff] }
 0x145   :  { %9604 = vst [vmem:[#allocation41_spill] sm:$0xff] %v6739_v13  ;;  %9605 = vst [vmem:[#allocation46_spill] sm:$0xff] %v6741_v15  ;;  %1584 = vperm.xlu1 %5879, %v6730_v52   ;;  %1579 = vperm.xlu0 %5878, %v6735_v59   ;;  %v970_v37 = vpack.c.bf16 %v946_v38, %v945_v56  ;;  %v923_v38 = vadd.f32 %v878_v20, %v811_v34  ;;  %v941_v35 = vmax.f32 %v925_v17, 0.0  ;;  %v7066_v13 = vld [vmem:[%s9322_s1 + $0x10] sm:$0xff] }
 0x146   :  { %v808_v17 = vmul.f32 %v6704_v40, %v6651_v25  ;;  %v921_v7 = vadd.f32 %v6687_v57, %v809_v14  ;;  %v938_v25 = vmax.f32 %v922_v61, 0.0  ;;  %v805_v61 = vmul.f32 %v6704_v40, %v6638_v23  ;;  %v6836_v23 = vld [vmem:[%s9325_s4 + $0x48] sm:$0xff]  ;;  %9662 = vst [vmem:[#allocation78_spill] sm:$0xff] %v7066_v13 }
 0x147   :  { %5652 = vmatprep.subr.bf16.mxu1 %v970_v37  ;;  %v968_v60 = vpack.c.bf16 %v942_v11, %v941_v35  ;;  %v939_v34 = vmax.f32 %v923_v38, 0.0  ;;  %v806_v38 = vmul.f32 %v6704_v40, %v6645_v42  ;;  %9615 = vst [vmem:[#allocation6_spill] sm:$0xff] %v6836_v23 }
 0x148   :  { %v6759_v56 = vpop.permute.xlu1 %1009  ;;  %5653 = vmatpush3.bf16.msra.mxu1 %v970_v37  ;;  %v6761_v46 = vpop.permute.xlu0 %1004  ;;  %v940_v37 = vmax.f32 %v924_v28, 0.0  ;;  %v807_v28 = vmul.f32 %v6704_v40, %v6643_v43  ;;  %v920_v11 = vadd.f32 %v6689_v8, %v808_v17  ;;  %v937_v14 = vmax.f32 %v921_v7, 0.0  ;;  %v6814_v43 = vld [vmem:[%s9325_s4 + $0x38] sm:$0xff]  ;;  %v6819_v8 = vld [vmem:[%s9325_s4 + $0x30] sm:$0xff] }
 0x149   :  { %9606 = vst [vmem:[#allocation43_spill] sm:$0xff] %v6759_v56  ;;  %9607 = vst [vmem:[#allocation48_spill] sm:$0xff] %v6761_v46  ;;  %1666 = vperm.xlu1 %5879, %v6750_v30   ;;  %1661 = vperm.xlu0 %5878, %v6755_v9   ;;  %v804_v7 = vmul.f32 %v6704_v40, %v6640_v6 }
 0x14a   :  { %5654 = vmatprep.subr.bf16.mxu1 %v969_v0  ;;  %v967_v32 = vpack.c.bf16 %v940_v37, %v939_v34  ;;  %v919_v35 = vadd.f32 %v6681_v26, %v807_v28  ;;  %9612 = vst [vmem:[#allocation9_spill] sm:$0xff] %v6814_v43  ;;  %v918_v37 = vadd.f32 %v6683_v12, %v806_v38  ;;  %v936_v42 = vmax.f32 %v920_v11, 0.0  ;;  %v6841_v12 = vld [vmem:[%s9325_s4 + $0x40] sm:$0xff] }
 0x14b   :  { %v966_v17 = vpack.c.bf16 %v938_v25, %v937_v14  ;;  %v917_v34 = vadd.f32 %v6675_v22, %v805_v61  ;;  %9616 = vst [vmem:[#allocation10_spill] sm:$0xff] %v6841_v12  ;;  %v803_v11 = vmul.f32 %v6704_v40, %v6632_v36  ;;  %v916_v25 = vadd.f32 %v6677_v49, %v804_v7  ;;  %v6856_v36 = vld [vmem:[%s9325_s4 + $0x58] sm:$0xff]  ;;  %v6861_v49 = vld [vmem:[%s9325_s4 + $0x50] sm:$0xff]  ;;  %v6877_v7 = vld [vmem:[%s9325_s4 + $0x60] sm:$0xff] }
 0x14c   :  { %v6780_v33 = vpop.permute.xlu1 %1019  ;;  %5655 = vmatpush3.bf16.msra.mxu1 %v969_v0  ;;  %v6782_v20 = vpop.permute.xlu0 %1014  ;;  %v935_v28 = vmax.f32 %v919_v35, 0.0  ;;  %v934_v6 = vmax.f32 %v918_v37, 0.0  ;;  %9619 = vst [vmem:[#allocation13_spill] sm:$0xff] %v6856_v36  ;;  %9620 = vst [vmem:[#allocation14_spill] sm:$0xff] %v6861_v49 }
 0x14d   :  { %9608 = vst [vmem:[#allocation45_spill] sm:$0xff] %v6780_v33  ;;  %9609 = vst [vmem:[#allocation50_spill] sm:$0xff] %v6782_v20  ;;  %1676 = vperm.xlu1 %5879, %v6770_v39   ;;  %1671 = vperm.xlu0 %5878, %v6775_v31   ;;  %v915_v35 = vadd.f32 %v6671_v62, %v803_v11  ;;  %v933_v14 = vmax.f32 %v917_v34, 0.0  ;;  %v932_v40 = vmax.f32 %v916_v25, 0.0  ;;  %v6888_v25 = vld [vmem:[%s9325_s4 + $0x78] sm:$0xff]  ;;  %v6989_v20 = vld [vmem:[%s9326_s5 + $0x48] sm:$0xff] }
 0x14e   :  { %5656 = vmatprep.subr.bf16.mxu1 %v968_v60  ;;  %v965_v38 = vpack.c.bf16 %v936_v42, %v935_v28  ;;  %9624 = vst [vmem:[#allocation18_spill] sm:$0xff] %v6877_v7  ;;  %9627 = vst [vmem:[#allocation21_spill] sm:$0xff] %v6888_v25  ;;  %v7010_v33 = vld [vmem:[%s9326_s5 + $0x50] sm:$0xff] }
 0x14f   :  { %v964_v42 = vpack.c.bf16 %v934_v6, %v933_v14  ;;  %v931_v62 = vmax.f32 %v915_v35, 0.0  ;;  %v6893_v6 = vld [vmem:[%s9325_s4 + $0x70] sm:$0xff]  ;;  %9647 = vst [vmem:[#allocation63_spill] sm:$0xff] %v6989_v20  ;;  %9652 = vst [vmem:[#allocation68_spill] sm:$0xff] %v7010_v33 }
 0x150   :  { %v6802_v0 = vpop.permute.xlu1 %1029  ;;  %5657 = vmatpush3.bf16.msra.mxu1 %v968_v60  ;;  %v6804_v57 = vpop.permute.xlu0 %1024  ;;  %9628 = vst [vmem:[#allocation22_spill] sm:$0xff] %v6893_v6 }
 0x151   :  { %9610 = vst [vmem:[#allocation47_spill] sm:$0xff] %v6802_v0  ;;  %9611 = vst [vmem:[#allocation49_spill] sm:$0xff] %v6804_v57  ;;  %1686 = vperm.xlu1 %5879, %v6792_v1   ;;  %1681 = vperm.xlu0 %5878, %v6797_v24   ;;  %v963_v11 = vpack.c.bf16 %v932_v40, %v931_v62  ;;  %v5890_v40 = vld [vmem:[%s9324_s3 + $0x10] sm:$0xff]   ;;  %v6913_v62 = vld [vmem:[%s9326_s5 + $0x8] sm:$0xff] }
 0x152   :  { %5658 = vmatprep.subr.bf16.mxu1 %v967_v32  ;;  %9631 = vst [vmem:[#allocation25_spill] sm:$0xff] %v6913_v62  ;;  %v6994_v57 = vld [vmem:[%s9326_s5 + $0x40] sm:$0xff] }
 0x153   :  { %9648 = vst [vmem:[#allocation64_spill] sm:$0xff] %v6994_v57 }
 0x154   :  { %v6824_v60 = vpop.permute.xlu1 %1039  ;;  %5659 = vmatpush3.bf16.msra.mxu1 %v967_v32  ;;  %v6826_v26 = vpop.permute.xlu0 %1034 }
 0x155   :  { %9613 = vst [vmem:[#allocation7_spill] sm:$0xff] %v6824_v60  ;;  %9614 = vst [vmem:[#allocation8_spill] sm:$0xff] %v6826_v26  ;;  %1696 = vperm.xlu1 %5879, %v6814_v43   ;;  %1691 = vperm.xlu0 %5878, %v6819_v8   ;;  %v5892_v26 = vld [vmem:[%s9324_s3 + $0x20] sm:$0xff]  }
 0x156   :  { %5660 = vmatprep.subr.bf16.mxu1 %v966_v17  ;;  %v6956_v60 = vld [vmem:[%s9326_s5 + $0x20] sm:$0xff] }
 0x157   :  { %9640 = vst [vmem:[#allocation56_spill] sm:$0xff] %v6956_v60 }
 0x158   :  { %v6846_v32 = vpop.permute.xlu1 %1049  ;;  %5661 = vmatpush3.bf16.msra.mxu1 %v966_v17  ;;  %v6848_v22 = vpop.permute.xlu0 %1044  ;;  %v6872_v17 = vld [vmem:[%s9325_s4 + $0x68] sm:$0xff] }
 0x159   :  { %9617 = vst [vmem:[#allocation11_spill] sm:$0xff] %v6846_v32  ;;  %9618 = vst [vmem:[#allocation12_spill] sm:$0xff] %v6848_v22  ;;  %1706 = vperm.xlu1 %5879, %v6836_v23   ;;  %1701 = vperm.xlu0 %5878, %v6841_v12   ;;  %v6934_v32 = vld [vmem:[%s9326_s5 + $0x10] sm:$0xff]  ;;  %v6951_v22 = vld [vmem:[%s9326_s5 + $0x28] sm:$0xff] }
 0x15a   :  { %5662 = vmatprep.subr.bf16.mxu1 %v965_v38  ;;  %9623 = vst [vmem:[#allocation17_spill] sm:$0xff] %v6872_v17  ;;  %9636 = vst [vmem:[#allocation30_spill] sm:$0xff] %v6934_v32  ;;  %v7198_v23 = vld [vmem:[%s9323_s2 + $0x10] sm:$0xff] }
 0x15b   :  { %9639 = vst [vmem:[#allocation55_spill] sm:$0xff] %v6951_v22  ;;  %9680 = vst [vmem:[#allocation96_spill] sm:$0xff] %v7198_v23 }
 0x15c   :  { %v6863_v61 = vpop.permute.xlu1 %1059  ;;  %5663 = vmatpush3.bf16.msra.mxu1 %v965_v38  ;;  %v6865_v37 = vpop.permute.xlu0 %1054  ;;  %v5889_v38 = vld [vmem:[%s9324_s3 + $0x8] sm:$0xff]  }
 0x15d   :  { %9621 = vst [vmem:[#allocation15_spill] sm:$0xff] %v6863_v61  ;;  %9622 = vst [vmem:[#allocation16_spill] sm:$0xff] %v6865_v37  ;;  %1716 = vperm.xlu1 %5879, %v6856_v36   ;;  %1711 = vperm.xlu0 %5878, %v6861_v49   ;;  %v6929_v61 = vld [vmem:[%s9326_s5 + $0x18] sm:$0xff] }
 0x15e   :  { %5664 = vmatprep.subr.bf16.mxu1 %v964_v42  ;;  %9635 = vst [vmem:[#allocation29_spill] sm:$0xff] %v6929_v61 }
 0x160   :  { %v6879_v34 = vpop.permute.xlu1 %1246  ;;  %5665 = vmatpush3.bf16.msra.mxu1 %v964_v42  ;;  %v6881_v28 = vpop.permute.xlu0 %1064  ;;  %v5896_v42 = vld [vmem:[%s9324_s3] sm:$0xff]  }
 0x161   :  { %9625 = vst [vmem:[#allocation19_spill] sm:$0xff] %v6879_v34  ;;  %9626 = vst [vmem:[#allocation20_spill] sm:$0xff] %v6881_v28  ;;  %1726 = vperm.xlu1 %5879, %v6872_v17   ;;  %1721 = vperm.xlu0 %5878, %v6877_v7  }
 0x162   :  { %5666 = vmatprep.subr.bf16.mxu1 %v963_v11  ;;  %5700 = vmatprep.mubr.bf16.mxu0 %v5896_v42 }
 0x164   :  { %v6898_v35 = vpop.permute.xlu1 %1256  ;;  %5667 = vmatpush3.bf16.msra.mxu1 %v963_v11  ;;  %v6900_v14 = vpop.permute.xlu0 %1251  ;;  %v6918_v11 = vld [vmem:[%s9326_s5] sm:$0xff] }
 0x165   :  { %9629 = vst [vmem:[#allocation23_spill] sm:$0xff] %v6898_v35  ;;  %9630 = vst [vmem:[#allocation24_spill] sm:$0xff] %v6900_v14  ;;  %1736 = vperm.xlu1 %5879, %v6888_v25   ;;  %1731 = vperm.xlu0 %5878, %v6893_v6   ;;  %v7029_v35 = vld [vmem:[%s9326_s5 + $0x60] sm:$0xff]  ;;  %v7045_v14 = vld [vmem:[%s9326_s5 + $0x70] sm:$0xff] }
 0x166   :  { %9632 = vst [vmem:[#allocation26_spill] sm:$0xff] %v6918_v11  ;;  %9656 = vst [vmem:[#allocation72_spill] sm:$0xff] %v7029_v35  ;;  %v7179_v25 = vld [vmem:[%s9323_s2] sm:$0xff] }
 0x167   :  { %5669 = vmatmul.mubr.bf16.vlgmr.msra.gmra.mxu1 %v5889_v38  ;;  %v5891_v38 = vld [vmem:[%s9324_s3 + $0x18] sm:$0xff]   ;;  %9660 = vst [vmem:[#allocation76_spill] sm:$0xff] %v7045_v14  ;;  %9678 = vst [vmem:[#allocation94_spill] sm:$0xff] %v7179_v25 }
 0x168   :  { %v6920_v37 = vpop.permute.xlu1 %1266  ;;  %v6922_v28 = vpop.permute.xlu0 %1261  ;;  %5672 = vmatprep.mubr.bf16.mxu1 %v5890_v40 }
 0x169   :  { %9633 = vst [vmem:[#allocation27_spill] sm:$0xff] %v6920_v37  ;;  %9634 = vst [vmem:[#allocation28_spill] sm:$0xff] %v6922_v28  ;;  %1923 = vperm.xlu1 %5879, %v6913_v62   ;;  %1918 = vperm.xlu0 %5878, %v6918_v11   ;;  %v6972_v37 = vld [vmem:[%s9326_s5 + $0x30] sm:$0xff]  ;;  %v7005_v28 = vld [vmem:[%s9326_s5 + $0x58] sm:$0xff] }
 0x16a   :  { %9644 = vst [vmem:[#allocation60_spill] sm:$0xff] %v6972_v37  ;;  %9651 = vst [vmem:[#allocation67_spill] sm:$0xff] %v7005_v28  ;;  %v7184_v11 = vld [vmem:[%s9322_s1 + $0x78] sm:$0xff] }
 0x16b   :  { %9679 = vst [vmem:[#allocation95_spill] sm:$0xff] %v7184_v11 }
 0x16c   :  { %v6939_v42 = vpop.permute.xlu1 %1276  ;;  %v6941_v40 = vpop.permute.xlu0 %1271 }
 0x16d   :  { %9637 = vst [vmem:[#allocation31_spill] sm:$0xff] %v6939_v42  ;;  %9638 = vst [vmem:[#allocation32_spill] sm:$0xff] %v6941_v40  ;;  %1933 = vperm.xlu1 %5879, %v6929_v61   ;;  %1928 = vperm.xlu0 %5878, %v6934_v32   ;;  %v6967_v40 = vld [vmem:[%s9326_s5 + $0x38] sm:$0xff] }
 0x16e   :  { %9643 = vst [vmem:[#allocation59_spill] sm:$0xff] %v6967_v40 }
 0x16f   :  { %5673 = vmatmul.mubr.bf16.gmra.mxu1 %v5891_v38  ;;  %v5893_v38 = vld [vmem:[%s9324_s3 + $0x28] sm:$0xff]  }
 0x170   :  { %v6958_v42 = vpop.permute.xlu1 %1286  ;;  %v6960_v0 = vpop.permute.xlu0 %1281  ;;  %5676 = vmatprep.mubr.bf16.mxu1 %v5892_v26 }
 0x171   :  { %9641 = vst [vmem:[#allocation57_spill] sm:$0xff] %v6958_v42  ;;  %9642 = vst [vmem:[#allocation58_spill] sm:$0xff] %v6960_v0  ;;  %1943 = vperm.xlu1 %5879, %v6951_v22   ;;  %1938 = vperm.xlu0 %5878, %v6956_v60   ;;  %v5894_v0 = vld [vmem:[%s9324_s3 + $0x30] sm:$0xff]  }
 0x174   :  { %v6977_v42 = vpop.permute.xlu1 %1296  ;;  %v6979_v26 = vpop.permute.xlu0 %1291 }
 0x175   :  { %9645 = vst [vmem:[#allocation61_spill] sm:$0xff] %v6977_v42  ;;  %9646 = vst [vmem:[#allocation62_spill] sm:$0xff] %v6979_v26  ;;  %1953 = vperm.xlu1 %5879, %v6967_v40   ;;  %1948 = vperm.xlu0 %5878, %v6972_v37  }
 0x177   :  { %5677 = vmatmul.mubr.bf16.gmra.mxu1 %v5893_v38  ;;  %v5895_v38 = vld [vmem:[%s9324_s3 + $0x38] sm:$0xff]  }
 0x178   :  { %v6996_v42 = vpop.permute.xlu1 %1306  ;;  %v6998_v26 = vpop.permute.xlu0 %1301  ;;  %5680 = vmatprep.mubr.bf16.mxu1 %v5894_v0 }
 0x179   :  { %9649 = vst [vmem:[#allocation65_spill] sm:$0xff] %v6996_v42  ;;  %9650 = vst [vmem:[#allocation66_spill] sm:$0xff] %v6998_v26  ;;  %1963 = vperm.xlu1 %5879, %v6989_v20   ;;  %1958 = vperm.xlu0 %5878, %v6994_v57   ;;  %v7024_v26 = vld [vmem:[%s9326_s5 + $0x68] sm:$0xff] }
 0x17a   :  { %9655 = vst [vmem:[#allocation71_spill] sm:$0xff] %v7024_v26 }
 0x17c   :  { %v7015_v42 = vpop.permute.xlu1 %1316  ;;  %v7017_v0 = vpop.permute.xlu0 %1311 }
 0x17d   :  { %9653 = vst [vmem:[#allocation69_spill] sm:$0xff] %v7015_v42  ;;  %9654 = vst [vmem:[#allocation70_spill] sm:$0xff] %v7017_v0  ;;  %1973 = vperm.xlu1 %5879, %v7005_v28   ;;  %1968 = vperm.xlu0 %5878, %v7010_v33   ;;  %v7040_v0 = vld [vmem:[%s9326_s5 + $0x78] sm:$0xff] }
 0x17e   :  { %9659 = vst [vmem:[#allocation75_spill] sm:$0xff] %v7040_v0 }
 0x17f   :  { %5681 = vmatmul.mubr.bf16.gmra.mxu1 %v5895_v38 }
 0x180   :  { %v7031_v56 = vpop.permute.xlu1 %1364  ;;  %v7033_v42 = vpop.permute.xlu0 %1321 }
 0x181   :  { %9657 = vst [vmem:[#allocation73_spill] sm:$0xff] %v7031_v56  ;;  %9658 = vst [vmem:[#allocation74_spill] sm:$0xff] %v7033_v42  ;;  %1983 = vperm.xlu1 %5879, %v7024_v26   ;;  %1978 = vperm.xlu0 %5878, %v7029_v35   ;;  %v7056_v56 = vld [vmem:[%s9322_s1] sm:$0xff] }
 0x182   :  { %9661 = vst [vmem:[#allocation77_spill] sm:$0xff] %v7056_v56  ;;  %v2033_v42 = vld [vmem:[#allocation2] sm:$0x1] }
 0x184   :  { %v7047_v34 = vpop.permute.xlu1 %1398  ;;  %v7049_v38 = vpop.permute.xlu0 %1393 }
 0x185   :  { %1993 = vperm.xlu1 %5879, %v7040_v0   ;;  %1988 = vperm.xlu0 %5878, %v7045_v14  }
 0x188   :  { %v7058_v15 = vpop.permute.xlu1 %1408  ;;  %v7060_v46 = vpop.permute.xlu0 %1403 }
 0x189   :  { %2065 = vperm.xlu1 %5879, %v7056_v56   ;;  %2036 = vperm.xlu0 %5878, %v2033_v42   ;;  %v7082_v42 = vld [vmem:[%s9322_s1 + $0x20] sm:$0xff]  ;;  %v7087_v56 = vld [vmem:[%s9322_s1 + $0x18] sm:$0xff] }
 0x18a   :  { %9664 = vst [vmem:[#allocation80_spill] sm:$0xff] %v7082_v42  ;;  %9665 = vst [vmem:[#allocation81_spill] sm:$0xff] %v7087_v56 }
 0x18c   :  { %v7073_v0 = vpop.permute.xlu1 %1418  ;;  %v7075_v26 = vpop.permute.xlu0 %1413 }
 0x18d   :  { %2075 = vperm.xlu1 %5879, %v7066_v13   ;;  %2070 = vperm.xlu0 %5878, %v7071_v53   ;;  %v7098_v13 = vld [vmem:[%s9322_s1 + $0x30] sm:$0xff]  ;;  %v7103_v53 = vld [vmem:[%s9322_s1 + $0x28] sm:$0xff] }
 0x18e   :  { %9666 = vst [vmem:[#allocation82_spill] sm:$0xff] %v7098_v13  ;;  %9667 = vst [vmem:[#allocation83_spill] sm:$0xff] %v7103_v53 }
 0x190   :  { %v7089_v14 = vpop.permute.xlu1 %1428  ;;  %v7091_v28 = vpop.permute.xlu0 %1423 }
 0x191   :  { %2085 = vperm.xlu1 %5879, %v7082_v42   ;;  %2080 = vperm.xlu0 %5878, %v7087_v56   ;;  %v7114_v42 = vld [vmem:[%s9322_s1 + $0x40] sm:$0xff]  ;;  %v7119_v56 = vld [vmem:[%s9322_s1 + $0x38] sm:$0xff] }
 0x192   :  { %9668 = vst [vmem:[#allocation84_spill] sm:$0xff] %v7114_v42  ;;  %9669 = vst [vmem:[#allocation85_spill] sm:$0xff] %v7119_v56 }
 0x194   :  { %v7105_v35 = vpop.permute.xlu1 %1438  ;;  %v7107_v20 = vpop.permute.xlu0 %1433 }
 0x195   :  { %2095 = vperm.xlu1 %5879, %v7098_v13   ;;  %2090 = vperm.xlu0 %5878, %v7103_v53   ;;  %v7130_v13 = vld [vmem:[%s9322_s1 + $0x50] sm:$0xff]  ;;  %v7135_v53 = vld [vmem:[%s9322_s1 + $0x48] sm:$0xff] }
 0x196   :  { %9670 = vst [vmem:[#allocation86_spill] sm:$0xff] %v7130_v13  ;;  %9671 = vst [vmem:[#allocation87_spill] sm:$0xff] %v7135_v53 }
 0x198   :  { %v7121_v33 = vpop.permute.xlu1 %1448  ;;  %v7123_v40 = vpop.permute.xlu0 %1443 }
 0x199   :  { %2105 = vperm.xlu1 %5879, %v7114_v42   ;;  %2100 = vperm.xlu0 %5878, %v7119_v56   ;;  %v7146_v42 = vld [vmem:[%s9322_s1 + $0x60] sm:$0xff]  ;;  %v7151_v56 = vld [vmem:[%s9322_s1 + $0x58] sm:$0xff] }
 0x19a   :  { %9672 = vst [vmem:[#allocation88_spill] sm:$0xff] %v7146_v42  ;;  %9673 = vst [vmem:[#allocation89_spill] sm:$0xff] %v7151_v56 }
 0x19c   :  { %v7137_v57 = vpop.permute.xlu1 %1458  ;;  %v7139_v22 = vpop.permute.xlu0 %1453 }
 0x19d   :  { %2115 = vperm.xlu1 %5879, %v7130_v13   ;;  %2110 = vperm.xlu0 %5878, %v7135_v53   ;;  %v7162_v13 = vld [vmem:[%s9322_s1 + $0x70] sm:$0xff]  ;;  %v7167_v53 = vld [vmem:[%s9322_s1 + $0x68] sm:$0xff] }
 0x19e   :  { %9674 = vst [vmem:[#allocation90_spill] sm:$0xff] %v7162_v13  ;;  %9675 = vst [vmem:[#allocation91_spill] sm:$0xff] %v7167_v53 }
 0x1a0   :  { %v7153_v37 = vpop.permute.xlu1 %1468  ;;  %v7155_v61 = vpop.permute.xlu0 %1463 }
 0x1a1   :  { %2125 = vperm.xlu1 %5879, %v7146_v42   ;;  %2120 = vperm.xlu0 %5878, %v7151_v56  }
 0x1a3   :  { %v5638_v60 = vpop.f32.mrf.mxu0 }
 0x1a4   :  { %v7169_v62 = vpop.permute.xlu1 %1514  ;;  %v7171_v32 = vpop.permute.xlu0 %1509  ;;  %v486_v6 = vadd.f32 %v5638_v60, %v6498_v29  ;;  %v7203_v29 = vld [vmem:[%s9323_s2 + $0x8] sm:$0xff] }
 0x1a5   :  { %9676 = vst [vmem:[#allocation92_spill] sm:$0xff] %v7169_v62  ;;  %9677 = vst [vmem:[#allocation93_spill] sm:$0xff] %v7171_v32  ;;  %2135 = vperm.xlu1 %5879, %v7162_v13   ;;  %2130 = vperm.xlu0 %5878, %v7167_v53   ;;  %v477_v42 = vpop.f32.mrf.mxu0  ;;  %v9695_v62 = vld [vmem:[#allocation34_spill] sm:$0xff] }
 0x1a6   :  { %v478_v56 = vadd.f32 %v477_v42, %v6488_v18  ;;  %9681 = vst [vmem:[#allocation97_spill] sm:$0xff] %v7203_v29 }
 0x1a7   :  { %v5639_v17 = vpop.f32.mrf.mxu0 }
 0x1a8   :  { %v7187_v36 = vpop.permute.xlu1 %1524  ;;  %v7189_v13 = vpop.permute.xlu0 %1519  ;;  %v540_v42 = vmax.f32 %v478_v56, 0.0  ;;  %v489_v53 = vadd.f32 %v5639_v17, %v6496_v27 }
 0x1a9   :  { %2181 = vperm.xlu1 %5879, %v7179_v25   ;;  %2140 = vperm.xlu0 %5878, %v7184_v11   ;;  %v480_v18 = vpop.f32.mrf.mxu0  ;;  %v542_v25 = vmax.f32 %v486_v6, 0.0  ;;  %v7222_v6 = vld [vmem:[%s9323_s2 + $0x18] sm:$0xff] }
 0x1aa   :  { %v481_v7 = vadd.f32 %v480_v18, %v6486_v21  ;;  %v652_v27 = vmul.f32 %v6565_v45, %v540_v42  ;;  %v543_v17 = vmax.f32 %v489_v53, 0.0  ;;  %9683 = vst [vmem:[#allocation99_spill] sm:$0xff] %v7222_v6 }
 0x1ab   :  { %v5642_v60 = vpop.f32.mrf.mxu0 }
 0x1ac   :  { %v541_v49 = vmax.f32 %v481_v7, 0.0  ;;  %v7205_v11 = vpop.permute.xlu1 %1534  ;;  %v7207_v56 = vpop.permute.xlu0 %1529  ;;  %v7217_v7 = vld [vmem:[%s9323_s2 + $0x20] sm:$0xff]  ;;  %v502_v45 = vadd.f32 %v5642_v60, %v6520_v55  ;;  %v655_v42 = vmul.f32 %v6572_v44, %v543_v17  ;;  %v7238_v55 = vld [vmem:[%s9323_s2 + $0x30] sm:$0xff] }
 0x1ad   :  { %2191 = vperm.xlu1 %5879, %v7198_v23   ;;  %2186 = vperm.xlu0 %5878, %v7203_v29   ;;  %v493_v21 = vpop.f32.mrf.mxu0  ;;  %9682 = vst [vmem:[#allocation98_spill] sm:$0xff] %v7217_v7  ;;  %v654_v29 = vmul.f32 %v6574_v47, %v542_v25  ;;  %9684 = vst [vmem:[#allocation100_spill] sm:$0xff] %v7238_v55 }
 0x1ae   :  { %v653_v18 = vmul.f32 %v6563_v4, %v541_v49  ;;  %v494_v43 = vadd.f32 %v493_v21, %v6508_v51  ;;  %v546_v60 = vmax.f32 %v502_v45, 0.0  ;;  %v7262_v45 = vld [vmem:[%s9323_s2 + $0x38] sm:$0xff] }
 0x1af   :  { %v5643_v23 = vpop.f32.mrf.mxu0  ;;  %9687 = vst [vmem:[#allocation103_spill] sm:$0xff] %v7262_v45 }
 0x1b0   :  { %v668_v12 = vadd.f32 %v653_v18, %v652_v27  ;;  %v544_v53 = vmax.f32 %v494_v43, 0.0  ;;  %v7226_v4 = vpop.permute.xlu1 %1544  ;;  %v7228_v51 = vpop.permute.xlu0 %1539  ;;  %v505_v32 = vadd.f32 %v5643_v23, %v6518_v54  ;;  %v7243_v43 = vld [vmem:[%s9323_s2 + $0x28] sm:$0xff] }
 0x1b1   :  { %2201 = vperm.xlu1 %5879, %v7217_v7   ;;  %2196 = vperm.xlu0 %5878, %v7222_v6   ;;  %v496_v49 = vpop.f32.mrf.mxu0  ;;  %9685 = vst [vmem:[#allocation101_spill] sm:$0xff] %v7243_v43 }
 0x1b2   :  { %v669_v21 = vadd.f32 %v668_v12, %v654_v29  ;;  %v497_v47 = vadd.f32 %v496_v49, %v6506_v48  ;;  %v656_v27 = vmul.f32 %v6586_v19, %v544_v53  ;;  %v547_v17 = vmax.f32 %v505_v32, 0.0  ;;  %v7257_v19 = vld [vmem:[%s9323_s2 + $0x40] sm:$0xff] }
 0x1b3   :  { %v5646_v25 = vpop.f32.mrf.mxu0  ;;  %9686 = vst [vmem:[#allocation102_spill] sm:$0xff] %v7257_v19 }
 0x1b4   :  { %v670_v44 = vadd.f32 %v669_v21, %v655_v42  ;;  %v545_v12 = vmax.f32 %v497_v47, 0.0  ;;  %v7246_v29 = vpop.permute.xlu1 %1554  ;;  %v7248_v54 = vpop.permute.xlu0 %1549  ;;  %v518_v53 = vadd.f32 %v5646_v25, %v6544_v58  ;;  %v658_v21 = vmul.f32 %v6595_v10, %v546_v60  ;;  %v7279_v60 = vld [vmem:[%s9323_s2 + $0x50] sm:$0xff] }
 0x1b5   :  { %2211 = vperm.xlu1 %5879, %v7238_v55   ;;  %2206 = vperm.xlu0 %5878, %v7243_v43   ;;  %v509_v48 = vpop.f32.mrf.mxu0  ;;  %9688 = vst [vmem:[#allocation104_spill] sm:$0xff] %v7279_v60 }
 0x1b6   :  { %v671_v23 = vadd.f32 %v670_v44, %v656_v27  ;;  %v657_v18 = vmul.f32 %v6584_v16, %v545_v12  ;;  %v510_v49 = vadd.f32 %v509_v48, %v6532_v50  ;;  %v7271_v44 = vld [vmem:[%s9321_s0 + $0x2] ss:$0 sm:$0xff]  ;;  %v659_v12 = vmul.f32 %v6593_v2, %v547_v17  ;;  %v7284_v48 = vld [vmem:[%s9323_s2 + $0x48] sm:$0xff]  ;;  %v9690_v17 = vld [vmem:[#allocation36_spill] sm:$0xff] }
 0x1b7   :  { %v5647_v42 = vpop.f32.mrf.mxu0  ;;  %9689 = vst [vmem:[#allocation105_spill] sm:$0xff] %v7284_v48 }
 0x1b8   :  { %v672_v32 = vadd.f32 %v671_v23, %v657_v18  ;;  %v548_v47 = vmax.f32 %v510_v49, 0.0  ;;  %v1565_v16 = vpop.permute.xlu1 %1564  ;;  %v1560_v27 = vpop.permute.xlu0 %1559  ;;  %v521_v25 = vadd.f32 %v5647_v42, %v6542_v5  ;;  %v1486_v23 = vmul.f32 %v7271_v44, %v7121_v33 }
 0x1b9   :  { %2221 = vperm.xlu1 %5879, %v7257_v19   ;;  %2216 = vperm.xlu0 %5878, %v7262_v45   ;;  %v512_v50 = vpop.f32.mrf.mxu0  ;;  %v550_v18 = vmax.f32 %v518_v53, 0.0  ;;  %v1485_v5 = vmul.f32 %v7271_v44, %v7123_v40  ;;  %v1487_v19 = vmul.f32 %v7271_v44, %v7139_v22  ;;  %v1490_v33 = vmul.f32 %v7271_v44, %v7153_v37  ;;  %v9693_v37 = vld [vmem:[#allocation38_spill] sm:$0xff] }
 0x1ba   :  { %v673_v58 = vadd.f32 %v672_v32, %v658_v21  ;;  %v513_v10 = vadd.f32 %v512_v50, %v6530_v3  ;;  %v660_v3 = vmul.f32 %v9690_v17, %v548_v47  ;;  %v1488_v50 = vmul.f32 %v7271_v44, %v7137_v57  ;;  %v7304_v57 = vld [vmem:[%s9323_s2 + $0x58] sm:$0xff] }
 0x1bb   :  { %v5650_v2 = vpop.f32.mrf.mxu0  ;;  %v551_v47 = vmax.f32 %v521_v25, 0.0  ;;  %v1489_v22 = vmul.f32 %v7271_v44, %v7155_v61  ;;  %v662_v55 = vmul.f32 %v9693_v37, %v550_v18 }
 0x1bc   :  { %v674_v49 = vadd.f32 %v673_v58, %v659_v12  ;;  %v549_v42 = vmax.f32 %v513_v10, 0.0  ;;  %v1575_v21 = vpop.permute.xlu1 %1574  ;;  %v1570_v32 = vpop.permute.xlu0 %1569  ;;  %v9691_v12 = vld [vmem:[#allocation33_spill] sm:$0xff]  ;;  %v9692_v10 = vld [vmem:[#allocation52_spill] sm:$0xff] }
 0x1bd   :  { %2231 = vperm.xlu1 %5879, %v7279_v60   ;;  %2226 = vperm.xlu0 %5878, %v7284_v48   ;;  %v525_v40 = vpop.f32.mrf.mxu0  ;;  %v9694_v60 = vld [vmem:[#allocation54_spill] sm:$0xff]  ;;  %v1600_v48 = vadd.f32 %v1575_v21, %v1488_v50  ;;  %v663_v18 = vmul.f32 %v9695_v62, %v551_v47  ;;  %v9697_v21 = vld [vmem:[#allocation51_spill] sm:$0xff]  ;;  %v1484_v62 = vmul.f32 %v7271_v44, %v7105_v35 }
 0x1be   :  { %v675_v53 = vadd.f32 %v674_v49, %v660_v3  ;;  %v661_v58 = vmul.f32 %v9691_v12, %v549_v42  ;;  %v526_v17 = vadd.f32 %v525_v40, %v9692_v10  ;;  %v534_v45 = vadd.f32 %v5650_v2, %v9694_v60  ;;  %v9696_v60 = vld [vmem:[#allocation53_spill] sm:$0xff]  ;;  %v9700_v35 = vld [vmem:[#allocation42_spill] sm:$0xff] }
 0x1bf   :  { %v5651_v7 = vpop.f32.mrf.mxu0  ;;  %v1598_v3 = vadd.f32 %v1565_v16, %v1486_v23  ;;  %v1599_v49 = vadd.f32 %v1570_v32, %v1487_v19  ;;  %v1597_v10 = vadd.f32 %v1560_v27, %v1485_v5  ;;  %v1616_v19 = vmax.f32 %v1600_v48, 0.0  ;;  %v9698_v27 = vld [vmem:[#allocation40_spill] sm:$0xff] }
 0x1c0   :  { %v676_v25 = vadd.f32 %v675_v53, %v661_v58  ;;  %v552_v42 = vmax.f32 %v526_v17, 0.0  ;;  %v1585_v12 = vpop.permute.xlu1 %1584  ;;  %v1580_v40 = vpop.permute.xlu0 %1579  ;;  %v537_v2 = vadd.f32 %v5651_v7, %v9696_v60  ;;  %v554_v23 = vmax.f32 %v534_v45, 0.0  ;;  %v9699_v45 = vld [vmem:[#allocation35_spill] sm:$0xff] }
 0x1c1   :  { %v1602_v43 = vadd.f32 %v1585_v12, %v1490_v33  ;;  %v1601_v6 = vadd.f32 %v1580_v40, %v1489_v22  ;;  %2241 = vperm.xlu1 %5879, %v6718_v63   ;;  %2236 = vperm.xlu0 %5878, %v7304_v57   ;;  %v528_v61 = vpop.f32.mrf.mxu0  ;;  %v1615_v53 = vmax.f32 %v1599_v49, 0.0  ;;  %v1483_v7 = vmul.f32 %v7271_v44, %v7107_v20 }
 0x1c2   :  { %v677_v37 = vadd.f32 %v676_v25, %v662_v55  ;;  %v529_v16 = vadd.f32 %v528_v61, %v9697_v21  ;;  %v664_v5 = vmul.f32 %v9698_v27, %v552_v42  ;;  %v1596_v47 = vadd.f32 %v7246_v29, %v1484_v62 }
 0x1c3   :  { %v1618_v32 = vmax.f32 %v1602_v43, 0.0  ;;  %v1617_v50 = vmax.f32 %v1601_v6, 0.0  ;;  %v555_v43 = vmax.f32 %v537_v2, 0.0  ;;  %v1595_v22 = vadd.f32 %v7248_v54, %v1483_v7  ;;  %v9701_v54 = vld [vmem:[#allocation37_spill] sm:$0xff] }
 0x1c4   :  { %v678_v33 = vadd.f32 %v677_v37, %v663_v18  ;;  %v553_v58 = vmax.f32 %v529_v16, 0.0  ;;  %v7316_v63 = vpop.permute.xlu1 %1666  ;;  %v7318_v17 = vpop.permute.xlu0 %1661  ;;  %v1614_v25 = vmax.f32 %v1598_v3, 0.0  ;;  %v1613_v49 = vmax.f32 %v1597_v10, 0.0 }
 0x1c5   :  { %2251 = vperm.xlu1 %5879, %v6735_v59   ;;  %2246 = vperm.xlu0 %5878, %v6713_v41   ;;  %v1642_v6 = vpack.c.bf16 %v1618_v32, %v1617_v50  ;;  %v666_v42 = vmul.f32 %v9700_v35, %v554_v23  ;;  %v1641_v41 = vpack.c.bf16 %v1616_v19, %v1615_v53  ;;  %v695_v61 = vlaneseq }
 0x1c6   :  { %v679_v55 = vadd.f32 %v678_v33, %v664_v5  ;;  %v665_v48 = vmul.f32 %v9699_v45, %v553_v58  ;;  %v1482_v40 = vmul.f32 %v7271_v44, %v7089_v14  ;;  %v1481_v29 = vmul.f32 %v7271_v44, %v7091_v28 }
 0x1c7   :  { %5684 = vmatprep.subr.bf16.mxu0 %v1642_v6  ;;  %v667_v3 = vmul.f32 %v9701_v54, %v555_v43  ;;  %v1612_v60 = vmax.f32 %v1596_v47, 0.0  ;;  %v1611_v2 = vmax.f32 %v1595_v22, 0.0  ;;  %v1479_v28 = vmul.f32 %v7271_v44, %v7075_v26  ;;  %v9709_v43 = vld [vmem:[#allocation92_spill] sm:$0xff]  ;;  %v9717_v54 = vld [vmem:[#allocation14_spill] sm:$0xff] }
 0x1c8   :  { %v680_v12 = vadd.f32 %v679_v55, %v665_v48  ;;  %v7330_v20 = vpop.permute.xlu1 %1676  ;;  %v7332_v59 = vpop.permute.xlu0 %1671  ;;  %5685 = vmatpush3.bf16.msra.mxu0 %v1642_v6  ;;  %v1594_v18 = vadd.f32 %v7226_v4, %v1482_v40  ;;  %v1593_v37 = vadd.f32 %v7228_v51, %v1481_v29  ;;  %v696_v51 = vshrl.u32 %v695_v61, 7  ;;  %v9710_v48 = vld [vmem:[#allocation93_spill] sm:$0xff] }
 0x1c9   :  { %2333 = vperm.xlu1 %5879, %v6755_v9   ;;  %2256 = vperm.xlu0 %5878, %v6730_v52   ;;  %v1640_v9 = vpack.c.bf16 %v1614_v25, %v1613_v49  ;;  %v1480_v52 = vmul.f32 %v7271_v44, %v7073_v0  ;;  %v1591_v19 = vadd.f32 %v7207_v56, %v1479_v28  ;;  %v9723_v28 = vld [vmem:[#allocation22_spill] sm:$0xff] }
 0x1ca   :  { %v681_v10 = vadd.f32 %v680_v12, %v666_v42  ;;  %5686 = vmatprep.subr.bf16.mxu0 %v1641_v41  ;;  %v1610_v32 = vmax.f32 %v1594_v18, 0.0  ;;  %v1609_v50 = vmax.f32 %v1593_v37, 0.0  ;;  %v1639_v26 = vpack.c.bf16 %v1612_v60, %v1611_v2  ;;  %v9721_v37 = vld [vmem:[#allocation18_spill] sm:$0xff]  ;;  %v9722_v60 = vld [vmem:[#allocation13_spill] sm:$0xff] }
 0x1cb   :  { %v1592_v23 = vadd.f32 %v7205_v11, %v1480_v52  ;;  %v7365_v56 = vsub.s32 0, %v696_v51  ;;  %v1607_v62 = vmax.f32 %v1591_v19, 0.0  ;;  %v5897_v2 = vld [vmem:[%s9324_s3 + $0x8] sm:$0xff]   ;;  %v5898_v52 = vld [vmem:[%s9324_s3 + $0x10] sm:$0xff]  }
 0x1cc   :  { %v682_v21 = vadd.f32 %v681_v10, %v667_v3  ;;  %v7343_v14 = vpop.permute.xlu1 %1686  ;;  %v7345_v16 = vpop.permute.xlu0 %1681  ;;  %5687 = vmatpush3.bf16.msra.mxu0 %v1641_v41  ;;  %v9718_v3 = vld [vmem:[#allocation6_spill] sm:$0xff] }
 0x1cd   :  { %9702 = vst [vmem:[#allocation36_spill] sm:$0xff] %v7343_v14  ;;  %2343 = vperm.xlu1 %5879, %v6775_v31   ;;  %2338 = vperm.xlu0 %5878, %v6750_v30   ;;  %v1478_v31 = vmul.f32 %v7271_v44, %v7058_v15  ;;  %v1477_v30 = vmul.f32 %v7271_v44, %v7060_v46  ;;  %9705 = vst [vmem:[#allocation38_spill] sm:$0xff] %v7365_v56  ;;  %v1608_v58 = vmax.f32 %v1592_v23, 0.0 }
 0x1ce   :  { %v683_v4 = vrot.slane %v682_v21, 4  ;;  %5688 = vmatprep.subr.bf16.mxu0 %v1640_v9  ;;  %v1638_v46 = vpack.c.bf16 %v1610_v32, %v1609_v50  ;;  %v9726_v32 = vld [vmem:[#allocation26_spill] sm:$0xff]  ;;  %v9727_v50 = vld [vmem:[#allocation21_spill] sm:$0xff] }
 0x1cf   :  { %v1590_v5 = vadd.f32 %v7187_v36, %v1478_v31  ;;  %v1589_v33 = vadd.f32 %v7189_v13, %v1477_v30  ;;  %v9708_v36 = vld [vmem:[#allocation39_spill] sm:$0xff] }
 0x1d0   :  { %v684_v53 = vadd.f32 %v683_v4, %v682_v21  ;;  %v7355_v27 = vpop.permute.xlu1 %1696  ;;  %v7357_v0 = vpop.permute.xlu0 %1691  ;;  %5689 = vmatpush3.bf16.msra.mxu0 %v1640_v9  ;;  %v698_v55 = vrot.slane %v9708_v36, %v7365_v56  ;;  %v9724_v4 = vld [vmem:[#allocation17_spill] sm:$0xff]  ;;  %v5902_v36 = vld [vmem:[%s9324_s3 + $0x30] sm:$0xff]  }
 0x1d1   :  { %9703 = vst [vmem:[#allocation33_spill] sm:$0xff] %v7355_v27  ;;  %9704 = vst [vmem:[#allocation52_spill] sm:$0xff] %v7357_v0  ;;  %2353 = vperm.xlu1 %5879, %v6797_v24   ;;  %2348 = vperm.xlu0 %5878, %v6770_v39   ;;  %v1476_v39 = vmul.f32 %v7271_v44, %v7047_v34  ;;  %v1475_v24 = vmul.f32 %v7271_v44, %v7049_v38  ;;  %v1606_v22 = vmax.f32 %v1590_v5, 0.0  ;;  %v9713_v38 = vld [vmem:[#allocation10_spill] sm:$0xff]  ;;  %v9797_v27 = vld [vmem:[#allocation105_spill] sm:$0xff] }
 0x1d2   :  { %v685_v11 = vrot.slane %v684_v53, 2  ;;  %5690 = vmatprep.subr.bf16.mxu0 %v1639_v26  ;;  %v1605_v25 = vmax.f32 %v1589_v33, 0.0  ;;  %v9730_v5 = vld [vmem:[#allocation30_spill] sm:$0xff]  ;;  %v9731_v33 = vld [vmem:[#allocation25_spill] sm:$0xff] }
 0x1d3   :  { %v1588_v45 = vadd.f32 %v9709_v43, %v1476_v39  ;;  %v1587_v47 = vadd.f32 %v9710_v48, %v1475_v24  ;;  %v5901_v39 = vld [vmem:[%s9324_s3 + $0x28] sm:$0xff]   ;;  %v9739_v43 = vld [vmem:[#allocation55_spill] sm:$0xff] }
 0x1d4   :  { %v686_v7 = vadd.f32 %v685_v11, %v684_v53  ;;  %v7369_v6 = vpop.permute.xlu1 %1706  ;;  %v7371_v15 = vpop.permute.xlu0 %1701  ;;  %5691 = vmatpush3.bf16.msra.mxu0 %v1639_v26  ;;  %v1636_v29 = vpack.c.bf16 %v1606_v22, %v1605_v25  ;;  %v5904_v53 = vld [vmem:[%s9324_s3] sm:$0xff]   ;;  %v5899_v26 = vld [vmem:[%s9324_s3 + $0x18] sm:$0xff]  }
 0x1d5   :  { %9706 = vst [vmem:[#allocation54_spill] sm:$0xff] %v7369_v6  ;;  %9707 = vst [vmem:[#allocation34_spill] sm:$0xff] %v7371_v15  ;;  %2363 = vperm.xlu1 %5879, %v6819_v8   ;;  %2358 = vperm.xlu0 %5878, %v6792_v1   ;;  %v1637_v8 = vpack.c.bf16 %v1608_v58, %v1607_v62  ;;  %v9714_v1 = vld [vmem:[#allocation9_spill] sm:$0xff]  ;;  %v1604_v42 = vmax.f32 %v1588_v45, 0.0  ;;  %v1603_v12 = vmax.f32 %v1587_v47, 0.0  ;;  %v9742_v47 = vld [vmem:[#allocation64_spill] sm:$0xff] }
 0x1d6   :  { %v687_v13 = vrot.slane %v686_v7, 1  ;;  %5692 = vmatprep.subr.bf16.mxu0 %v1638_v46  ;;  %5732 = vmatprep.mubr.bf16.mxu1 %v5904_v53  ;;  %v5900_v11 = vld [vmem:[%s9324_s3 + $0x20] sm:$0xff]   ;;  %v9743_v22 = vld [vmem:[#allocation59_spill] sm:$0xff] }
 0x1d7   :  { %v1635_v18 = vpack.c.bf16 %v1604_v42, %v1603_v12  ;;  %v5903_v25 = vld [vmem:[%s9324_s3 + $0x38] sm:$0xff]   ;;  %v9784_v6 = vld [vmem:[#allocation45_spill] sm:$0xff] }
 0x1d8   :  { %v688_v49 = vadd.f32 %v687_v13, %v686_v7  ;;  %v7383_v34 = vpop.permute.xlu1 %1716  ;;  %v7385_v35 = vpop.permute.xlu0 %1711  ;;  %5693 = vmatpush3.bf16.msra.mxu0 %v1638_v46  ;;  %v9734_v7 = vld [vmem:[#allocation56_spill] sm:$0xff]  ;;  %v9735_v46 = vld [vmem:[#allocation29_spill] sm:$0xff] }
 0x1d9   :  { %9711 = vst [vmem:[#allocation53_spill] sm:$0xff] %v7383_v34  ;;  %9712 = vst [vmem:[#allocation51_spill] sm:$0xff] %v7385_v35  ;;  %2373 = vperm.xlu1 %5879, %v9713_v38   ;;  %2368 = vperm.xlu0 %5878, %v9714_v1   ;;  %v9746_v38 = vld [vmem:[#allocation68_spill] sm:$0xff]  ;;  %v9747_v1 = vld [vmem:[#allocation63_spill] sm:$0xff] }
 0x1da   :  { %v699_v44 = vadd.f32 %v698_v55, %v688_v49  ;;  %5694 = vmatprep.subr.bf16.mxu0 %v1637_v8  ;;  %v9738_v55 = vld [vmem:[#allocation60_spill] sm:$0xff]  ;;  %v9785_v35 = vld [vmem:[#allocation101_spill] sm:$0xff] }
 0x1db   :  { %v9750_v12 = vld [vmem:[#allocation72_spill] sm:$0xff] }
 0x1dc   :  { %5944 = vtanh.f32 %v699_v44  ;;  %v7389_v41 = vpop.permute.xlu1 %1726  ;;  %v7391_v40 = vpop.permute.xlu0 %1721  ;;  %5695 = vmatpush3.bf16.msra.mxu0 %v1637_v8 }
 0x1dd   :  { %9715 = vst [vmem:[#allocation40_spill] sm:$0xff] %v7389_v41  ;;  %9716 = vst [vmem:[#allocation35_spill] sm:$0xff] %v7391_v40  ;;  %2383 = vperm.xlu1 %5879, %v9717_v54   ;;  %2378 = vperm.xlu0 %5878, %v9718_v3   ;;  %v9776_v41 = vld [vmem:[#allocation48_spill] sm:$0xff] }
 0x1de   :  { %5696 = vmatprep.subr.bf16.mxu0 %v1636_v29  ;;  %v9779_v40 = vld [vmem:[#allocation96_spill] sm:$0xff] }
 0x1e0   :  { %v7395_v10 = vpop.permute.xlu1 %1736  ;;  %v7397_v61 = vpop.permute.xlu0 %1731  ;;  %5697 = vmatpush3.bf16.msra.mxu0 %v1636_v29  ;;  %v9751_v29 = vld [vmem:[#allocation67_spill] sm:$0xff] }
 0x1e1   :  { %9719 = vst [vmem:[#allocation42_spill] sm:$0xff] %v7395_v10  ;;  %9720 = vst [vmem:[#allocation37_spill] sm:$0xff] %v7397_v61  ;;  %2393 = vperm.xlu1 %5879, %v9721_v37   ;;  %2388 = vperm.xlu0 %5878, %v9722_v60   ;;  %v9754_v37 = vld [vmem:[#allocation71_spill] sm:$0xff]  ;;  %v2705_v60 = vld [vmem:[#allocation2] sm:$0x1] }
 0x1e2   :  { %5698 = vmatprep.subr.bf16.mxu0 %v1635_v18  ;;  %v9777_v10 = vld [vmem:[#allocation46_spill] sm:$0xff] }
 0x1e4   :  { %v7404_v21 = vpop.permute.xlu1 %1923  ;;  %v7406_v9 = vpop.permute.xlu0 %1918  ;;  %5699 = vmatpush3.bf16.msra.mxu0 %v1635_v18  ;;  %v9753_v18 = vld [vmem:[#allocation76_spill] sm:$0xff] }
 0x1e5   :  { %2403 = vperm.xlu1 %5879, %v9723_v28   ;;  %2398 = vperm.xlu0 %5878, %v9724_v4   ;;  %v9755_v28 = vld [vmem:[#allocation75_spill] sm:$0xff] }
 0x1e7   :  { %5701 = vmatmul.mubr.bf16.vlgmr.msra.gmra.mxu0 %v5897_v2 }
 0x1e8   :  { %v7413_v51 = vpop.permute.xlu1 %1933  ;;  %v7415_v23 = vpop.permute.xlu0 %1928  ;;  %5704 = vmatprep.mubr.bf16.mxu0 %v5898_v52 }
 0x1e9   :  { %9725 = vst [vmem:[#allocation39_spill] sm:$0xff] %v7413_v51  ;;  %v5945_v19 = vpop.eup %5944  ;;  %2590 = vperm.xlu1 %5879, %v9726_v32   ;;  %2408 = vperm.xlu0 %5878, %v9727_v50   ;;  %v9756_v32 = vld [vmem:[#allocation79_spill] sm:$0xff]  ;;  %v9757_v50 = vld [vmem:[#allocation77_spill] sm:$0xff]  ;;  %v9798_v51 = vld [vmem:[#allocation102_spill] sm:$0xff] }
 0x1ea   :  { %701 = vst [vmem:[#allocation3] sm:$0x1] %v5945_v19 }
 0x1ec   :  { %v7425_v31 = vpop.permute.xlu1 %1943  ;;  %v7427_v30 = vpop.permute.xlu0 %1938 }
 0x1ed   :  { %9728 = vst [vmem:[#allocation92_spill] sm:$0xff] %v7425_v31  ;;  %9729 = vst [vmem:[#allocation93_spill] sm:$0xff] %v7427_v30  ;;  %2600 = vperm.xlu1 %5879, %v9730_v5   ;;  %2595 = vperm.xlu0 %5878, %v9731_v33   ;;  %v9759_v5 = vld [vmem:[#allocation78_spill] sm:$0xff]  ;;  %v9792_v30 = vld [vmem:[#allocation100_spill] sm:$0xff] }
 0x1ef   :  { %5705 = vmatmul.mubr.bf16.gmra.mxu0 %v5899_v26 }
 0x1f0   :  { %v7434_v58 = vpop.permute.xlu1 %1953  ;;  %v7436_v62 = vpop.permute.xlu0 %1948  ;;  %5708 = vmatprep.mubr.bf16.mxu0 %v5900_v11  ;;  %v9758_v11 = vld [vmem:[#allocation81_spill] sm:$0xff] }
 0x1f1   :  { %9732 = vst [vmem:[#allocation10_spill] sm:$0xff] %v7434_v58  ;;  %9733 = vst [vmem:[#allocation9_spill] sm:$0xff] %v7436_v62  ;;  %2610 = vperm.xlu1 %5879, %v9734_v7   ;;  %2605 = vperm.xlu0 %5878, %v9735_v46   ;;  %v9760_v46 = vld [vmem:[#allocation83_spill] sm:$0xff] }
 0x1f4   :  { %v7443_v24 = vpop.permute.xlu1 %1963  ;;  %v7445_v13 = vpop.permute.xlu0 %1958 }
 0x1f5   :  { %9736 = vst [vmem:[#allocation14_spill] sm:$0xff] %v7443_v24  ;;  %9737 = vst [vmem:[#allocation6_spill] sm:$0xff] %v7445_v13  ;;  %2620 = vperm.xlu1 %5879, %v9738_v55   ;;  %2615 = vperm.xlu0 %5878, %v9739_v43   ;;  %v9762_v43 = vld [vmem:[#allocation85_spill] sm:$0xff] }
 0x1f7   :  { %5709 = vmatmul.mubr.bf16.gmra.mxu0 %v5901_v39  ;;  %v9761_v39 = vld [vmem:[#allocation80_spill] sm:$0xff] }
 0x1f8   :  { %v7452_v45 = vpop.permute.xlu1 %1973  ;;  %v7454_v48 = vpop.permute.xlu0 %1968  ;;  %5712 = vmatprep.mubr.bf16.mxu0 %v5902_v36 }
 0x1f9   :  { %9740 = vst [vmem:[#allocation18_spill] sm:$0xff] %v7452_v45  ;;  %9741 = vst [vmem:[#allocation13_spill] sm:$0xff] %v7454_v48  ;;  %2630 = vperm.xlu1 %5879, %v9742_v47   ;;  %2625 = vperm.xlu0 %5878, %v9743_v22   ;;  %v9763_v47 = vld [vmem:[#allocation82_spill] sm:$0xff] }
 0x1fc   :  { %v7461_v49 = vpop.permute.xlu1 %1983  ;;  %v7463_v8 = vpop.permute.xlu0 %1978 }
 0x1fd   :  { %9744 = vst [vmem:[#allocation22_spill] sm:$0xff] %v7461_v49  ;;  %9745 = vst [vmem:[#allocation17_spill] sm:$0xff] %v7463_v8  ;;  %2640 = vperm.xlu1 %5879, %v9746_v38   ;;  %2635 = vperm.xlu0 %5878, %v9747_v1   ;;  %v9764_v38 = vld [vmem:[#allocation87_spill] sm:$0xff]  ;;  %v9765_v1 = vld [vmem:[#allocation84_spill] sm:$0xff] }
 0x1fe   :  { %v9775_v49 = vld [vmem:[#allocation94_spill] sm:$0xff] }
 0x1ff   :  { %5713 = vmatmul.mubr.bf16.gmra.mxu0 %v5903_v25 }
 0x200   :  { %v7467_v44 = vpop.permute.xlu1 %1993  ;;  %v7469_v42 = vpop.permute.xlu0 %1988 }
 0x201   :  { %9748 = vst [vmem:[#allocation26_spill] sm:$0xff] %v7467_v44  ;;  %9749 = vst [vmem:[#allocation21_spill] sm:$0xff] %v7469_v42  ;;  %2650 = vperm.xlu1 %5879, %v9750_v12   ;;  %2645 = vperm.xlu0 %5878, %v9751_v29  }
 0x204   :  { %v7473_v54 = vpop.permute.xlu1 %2065  ;;  %v7475_v3 = vpop.permute.xlu0 %2036 }
 0x205   :  { %9752 = vst [vmem:[#allocation30_spill] sm:$0xff] %v7475_v3  ;;  %2660 = vperm.xlu1 %5879, %v9753_v18   ;;  %2655 = vperm.xlu0 %5878, %v9754_v37   ;;  %v9766_v18 = vld [vmem:[#allocation89_spill] sm:$0xff]  ;;  %v9767_v37 = vld [vmem:[#allocation86_spill] sm:$0xff] }
 0x208   :  { %v7479_v2 = vpop.permute.xlu1 %2075  ;;  %v7481_v52 = vpop.permute.xlu0 %2070 }
 0x209   :  { %2708 = vperm.xlu1 %5879, %v2705_v60   ;;  %2665 = vperm.xlu0 %5878, %v9755_v28  }
 0x20c   :  { %v7484_v4 = vpop.permute.xlu1 %2085  ;;  %v7486_v19 = vpop.permute.xlu0 %2080 }
 0x20d   :  { %2742 = vperm.xlu1 %5879, %v9756_v32   ;;  %2737 = vperm.xlu0 %5878, %v9757_v50   ;;  %v9768_v32 = vld [vmem:[#allocation91_spill] sm:$0xff]  ;;  %v9769_v50 = vld [vmem:[#allocation88_spill] sm:$0xff] }
 0x210   :  { %v7490_v53 = vpop.permute.xlu1 %2095  ;;  %v7492_v26 = vpop.permute.xlu0 %2090 }
 0x211   :  { %2752 = vperm.xlu1 %5879, %v9758_v11   ;;  %2747 = vperm.xlu0 %5878, %v9759_v5  }
 0x214   :  { %v7496_v33 = vpop.permute.xlu1 %2105  ;;  %v7498_v7 = vpop.permute.xlu0 %2100 }
 0x215   :  { %2762 = vperm.xlu1 %5879, %v9760_v46   ;;  %2757 = vperm.xlu0 %5878, %v9761_v39   ;;  %v9770_v39 = vld [vmem:[#allocation95_spill] sm:$0xff] }
 0x218   :  { %v7502_v36 = vpop.permute.xlu1 %2115  ;;  %v7504_v55 = vpop.permute.xlu0 %2110 }
 0x219   :  { %2772 = vperm.xlu1 %5879, %v9762_v43   ;;  %2767 = vperm.xlu0 %5878, %v9763_v47   ;;  %v9771_v47 = vld [vmem:[#allocation90_spill] sm:$0xff] }
 0x21c   :  { %v7508_v22 = vpop.permute.xlu1 %2125  ;;  %v7510_v25 = vpop.permute.xlu0 %2120 }
 0x21d   :  { %2782 = vperm.xlu1 %5879, %v9764_v38   ;;  %2777 = vperm.xlu0 %5878, %v9765_v1   ;;  %v9772_v38 = vld [vmem:[#allocation44_spill] sm:$0xff] }
 0x220   :  { %v7514_v12 = vpop.permute.xlu1 %2135  ;;  %v7516_v29 = vpop.permute.xlu0 %2130 }
 0x221   :  { %2792 = vperm.xlu1 %5879, %v9766_v18   ;;  %2787 = vperm.xlu0 %5878, %v9767_v37   ;;  %v9773_v37 = vld [vmem:[#allocation41_spill] sm:$0xff] }
 0x224   :  { %v7520_v60 = vpop.permute.xlu1 %2181  ;;  %v7522_v28 = vpop.permute.xlu0 %2140 }
 0x225   :  { %2802 = vperm.xlu1 %5879, %v9768_v32   ;;  %2797 = vperm.xlu0 %5878, %v9769_v50   ;;  %v9774_v50 = vld [vmem:[#allocation97_spill] sm:$0xff] }
 0x227   :  { %v5670_v11 = vpop.f32.mrf.mxu1 }
 0x228   :  { %v7526_v5 = vpop.permute.xlu1 %2191  ;;  %v7528_v46 = vpop.permute.xlu0 %2186  ;;  %v1158_v3 = vadd.f32 %v5670_v11, %v9773_v37  ;;  %v9778_v37 = vld [vmem:[#allocation99_spill] sm:$0xff] }
 0x229   :  { %2812 = vperm.xlu1 %5879, %v9770_v39   ;;  %v1149_v43 = vpop.f32.mrf.mxu1  ;;  %2807 = vperm.xlu0 %5878, %v9771_v47  }
 0x22a   :  { %v1150_v1 = vadd.f32 %v1149_v43, %v9772_v38  ;;  %v1214_v61 = vmax.f32 %v1158_v3, 0.0 }
 0x22b   :  { %v5671_v18 = vpop.f32.mrf.mxu1 }
 0x22c   :  { %v7534_v44 = vpop.permute.xlu1 %2201  ;;  %v7536_v32 = vpop.permute.xlu0 %2196  ;;  %v1212_v8 = vmax.f32 %v1150_v1, 0.0  ;;  %v1161_v39 = vadd.f32 %v5671_v18, %v9776_v41  ;;  %v9781_v1 = vld [vmem:[#allocation24_spill] sm:$0xff]  ;;  %v9782_v41 = vld [vmem:[#allocation43_spill] sm:$0xff] }
 0x22d   :  { %2858 = vperm.xlu1 %5879, %v9774_v50   ;;  %v1152_v42 = vpop.f32.mrf.mxu1  ;;  %2853 = vperm.xlu0 %5878, %v9775_v49   ;;  %v9780_v50 = vld [vmem:[#allocation19_spill] sm:$0xff] }
 0x22e   :  { %v1153_v45 = vadd.f32 %v1152_v42, %v9777_v10  ;;  %v1324_v24 = vmul.f32 %v9780_v50, %v1212_v8  ;;  %v1215_v49 = vmax.f32 %v1161_v39, 0.0  ;;  %v9783_v42 = vld [vmem:[#allocation23_spill] sm:$0xff]  ;;  %v9786_v8 = vld [vmem:[#allocation98_spill] sm:$0xff]  ;;  %v9787_v39 = vld [vmem:[#allocation28_spill] sm:$0xff] }
 0x22f   :  { %v5674_v47 = vpop.f32.mrf.mxu1  ;;  %v1326_v3 = vmul.f32 %v9783_v42, %v1214_v61 }
 0x230   :  { %v1213_v43 = vmax.f32 %v1153_v45, 0.0  ;;  %v7542_v38 = vpop.permute.xlu1 %2211  ;;  %v7544_v11 = vpop.permute.xlu0 %2206  ;;  %v1174_v34 = vadd.f32 %v5674_v47, %v9784_v6  ;;  %v9790_v6 = vld [vmem:[#allocation27_spill] sm:$0xff] }
 0x231   :  { %2868 = vperm.xlu1 %5879, %v9778_v37   ;;  %v1165_v48 = vpop.f32.mrf.mxu1  ;;  %2863 = vperm.xlu0 %5878, %v9779_v40  }
 0x232   :  { %v1325_v13 = vmul.f32 %v9781_v1, %v1213_v43  ;;  %v1166_v18 = vadd.f32 %v1165_v48, %v9782_v41  ;;  %v1327_v43 = vmul.f32 %v9787_v39, %v1215_v49  ;;  %v9788_v48 = vld [vmem:[#allocation49_spill] sm:$0xff]  ;;  %v9789_v41 = vld [vmem:[#allocation50_spill] sm:$0xff] }
 0x233   :  { %v5675_v10 = vpop.f32.mrf.mxu1 }
 0x234   :  { %v1340_v45 = vadd.f32 %v1325_v13, %v1324_v24  ;;  %v1216_v58 = vmax.f32 %v1166_v18, 0.0  ;;  %v7553_v62 = vpop.permute.xlu1 %2221  ;;  %v7555_v37 = vpop.permute.xlu0 %2216  ;;  %v1177_v1 = vadd.f32 %v5675_v10, %v9788_v48  ;;  %v1218_v13 = vmax.f32 %v1174_v34, 0.0  ;;  %v9793_v10 = vld [vmem:[#allocation32_spill] sm:$0xff]  ;;  %v9795_v48 = vld [vmem:[#allocation31_spill] sm:$0xff] }
 0x235   :  { %2878 = vperm.xlu1 %5879, %v9785_v35   ;;  %v1168_v40 = vpop.f32.mrf.mxu1  ;;  %2873 = vperm.xlu0 %5878, %v9786_v8   ;;  %v9791_v35 = vld [vmem:[#allocation103_spill] sm:$0xff] }
 0x236   :  { %v1341_v50 = vadd.f32 %v1340_v45, %v1326_v3  ;;  %v1169_v61 = vadd.f32 %v1168_v40, %v9789_v41  ;;  %v1328_v47 = vmul.f32 %v9790_v6, %v1216_v58  ;;  %v1219_v3 = vmax.f32 %v1177_v1, 0.0  ;;  %v9794_v40 = vld [vmem:[#allocation47_spill] sm:$0xff] }
 0x237   :  { %v5678_v24 = vpop.f32.mrf.mxu1  ;;  %v1330_v58 = vmul.f32 %v9795_v48, %v1218_v13 }
 0x238   :  { %v1342_v18 = vadd.f32 %v1341_v50, %v1327_v43  ;;  %v1217_v42 = vmax.f32 %v1169_v61, 0.0  ;;  %v7563_v15 = vpop.permute.xlu1 %2231  ;;  %v7565_v31 = vpop.permute.xlu0 %2226  ;;  %v9796_v50 = vld [vmem:[#allocation7_spill] sm:$0xff] }
 0x239   :  { %2888 = vperm.xlu1 %5879, %v9791_v35   ;;  %v1181_v8 = vpop.f32.mrf.mxu1  ;;  %2883 = vperm.xlu0 %5878, %v9792_v30   ;;  %v1190_v41 = vadd.f32 %v5678_v24, %v9796_v50  ;;  %v9799_v30 = vld [vmem:[#allocation58_spill] sm:$0xff]  ;;  %v7581_v24 = vld [vmem:[%s9321_s0 + $0x3] ss:$0 sm:$0xff]  ;;  %v9803_v50 = vld [vmem:[#allocation104_spill] sm:$0xff] }
 0x23a   :  { %v1343_v49 = vadd.f32 %v1342_v18, %v1328_v47  ;;  %v1329_v45 = vmul.f32 %v9793_v10, %v1217_v42  ;;  %v1182_v39 = vadd.f32 %v1181_v8, %v9794_v40  ;;  %v1331_v1 = vmul.f32 %v9799_v30, %v1219_v3  ;;  %v9800_v18 = vld [vmem:[#allocation12_spill] sm:$0xff] }
 0x23b   :  { %v5679_v34 = vpop.f32.mrf.mxu1  ;;  %v9801_v8 = vld [vmem:[#allocation8_spill] sm:$0xff]  ;;  %v1222_v13 = vmax.f32 %v1190_v41, 0.0  ;;  %v2157_v3 = vmul.f32 %v7581_v24, %v7502_v36  ;;  %v7597_v36 = vld [vmem:[%s9323_s2 + $0x68] sm:$0xff] }
 0x23c   :  { %v1344_v43 = vadd.f32 %v1343_v49, %v1329_v45  ;;  %v1220_v61 = vmax.f32 %v1182_v39, 0.0  ;;  %v2242_v6 = vpop.permute.xlu1 %2241  ;;  %v2237_v14 = vpop.permute.xlu0 %2236  ;;  %v1193_v42 = vadd.f32 %v5679_v34, %v9800_v18  ;;  %v9802_v49 = vld [vmem:[#allocation57_spill] sm:$0xff]  ;;  %v2161_v34 = vmul.f32 %v7581_v24, %v7514_v12  ;;  %v9806_v18 = vld [vmem:[#allocation15_spill] sm:$0xff] }
 0x23d   :  { %2898 = vperm.xlu1 %5879, %v9797_v27   ;;  %v1184_v35 = vpop.f32.mrf.mxu1  ;;  %2893 = vperm.xlu0 %5878, %v9798_v51   ;;  %v7602_v12 = vld [vmem:[%s9323_s2 + $0x60] sm:$0xff] }
 0x23e   :  { %v1345_v47 = vadd.f32 %v1344_v43, %v1330_v58  ;;  %v1185_v10 = vadd.f32 %v1184_v35, %v9801_v8  ;;  %v1332_v45 = vmul.f32 %v9802_v49, %v1220_v61  ;;  %v2160_v58 = vmul.f32 %v7581_v24, %v7516_v29  ;;  %v9804_v35 = vld [vmem:[#allocation62_spill] sm:$0xff]  ;;  %v9807_v49 = vld [vmem:[#allocation61_spill] sm:$0xff] }
 0x23f   :  { %v5682_v40 = vpop.f32.mrf.mxu1  ;;  %v1223_v61 = vmax.f32 %v1193_v42, 0.0  ;;  %v2162_v29 = vmul.f32 %v7581_v24, %v7522_v28 }
 0x240   :  { %v1346_v27 = vadd.f32 %v1345_v47, %v1331_v1  ;;  %v1221_v39 = vmax.f32 %v1185_v10, 0.0  ;;  %v2252_v48 = vpop.permute.xlu1 %2251  ;;  %v2247_v51 = vpop.permute.xlu0 %2246  ;;  %v9805_v1 = vld [vmem:[#allocation11_spill] sm:$0xff]  ;;  %v1206_v42 = vadd.f32 %v5682_v40, %v9806_v18  ;;  %v9809_v40 = vld [vmem:[#allocation66_spill] sm:$0xff]  ;;  %v9812_v18 = vld [vmem:[#allocation65_spill] sm:$0xff] }
 0x241   :  { %2908 = vperm.xlu1 %5879, %v7304_v57   ;;  %v1197_v43 = vpop.f32.mrf.mxu1  ;;  %2903 = vperm.xlu0 %5878, %v9803_v50   ;;  %v2159_v57 = vmul.f32 %v7581_v24, %v7508_v22  ;;  %v2273_v8 = vadd.f32 %v2252_v48, %v2161_v34  ;;  %v1335_v48 = vmul.f32 %v9809_v40, %v1223_v61 }
 0x242   :  { %v1347_v41 = vadd.f32 %v1346_v27, %v1332_v45  ;;  %v1333_v30 = vmul.f32 %v9804_v35, %v1221_v39  ;;  %v1198_v47 = vadd.f32 %v1197_v43, %v9805_v1  ;;  %v1334_v45 = vmul.f32 %v9807_v49, %v1222_v13  ;;  %v9810_v13 = vld [vmem:[#allocation20_spill] sm:$0xff] }
 0x243   :  { %v5683_v10 = vpop.f32.mrf.mxu1  ;;  %v2272_v39 = vadd.f32 %v2247_v51, %v2160_v58  ;;  %v2158_v1 = vmul.f32 %v7581_v24, %v7510_v25  ;;  %v2271_v0 = vadd.f32 %v2242_v6, %v2159_v57  ;;  %v9811_v51 = vld [vmem:[#allocation16_spill] sm:$0xff]  ;;  %v7627_v25 = vld [vmem:[%s9323_s2 + $0x70] sm:$0xff]  ;;  %v2289_v57 = vmax.f32 %v2273_v8, 0.0 }
 0x244   :  { %v1348_v27 = vadd.f32 %v1347_v41, %v1333_v30  ;;  %v1224_v43 = vmax.f32 %v1198_v47, 0.0  ;;  %v7610_v50 = vpop.permute.xlu1 %2333  ;;  %v2257_v35 = vpop.permute.xlu0 %2256  ;;  %v1209_v41 = vadd.f32 %v5683_v10, %v9810_v13  ;;  %v7622_v30 = vld [vmem:[%s9323_s2 + $0x78] sm:$0xff]  ;;  %v1226_v47 = vmax.f32 %v1206_v42, 0.0 }
 0x245   :  { %9808 = vst [vmem:[#allocation25_spill] sm:$0xff] %v7610_v50  ;;  %v2274_v22 = vadd.f32 %v2257_v35, %v2162_v29  ;;  %2918 = vperm.xlu1 %5879, %v7597_v36   ;;  %v1200_v28 = vpop.f32.mrf.mxu1  ;;  %2913 = vperm.xlu0 %5878, %v7602_v12   ;;  %v2270_v6 = vadd.f32 %v2237_v14, %v2158_v1  ;;  %v2288_v61 = vmax.f32 %v2272_v39, 0.0  ;;  %v2287_v42 = vmax.f32 %v2271_v0, 0.0  ;;  %v8018_v50 = vld [vmem:[%s9322_s1 + $0x38] sm:$0xff] }
 0x246   :  { %v1349_v34 = vadd.f32 %v1348_v27, %v1334_v45  ;;  %v1201_v58 = vadd.f32 %v1200_v28, %v9811_v51  ;;  %v1336_v49 = vmul.f32 %v9812_v18, %v1224_v43  ;;  %v2156_v28 = vmul.f32 %v7581_v24, %v7504_v55  ;;  %v9815_v43 = vld [vmem:[#allocation70_spill] sm:$0xff]  ;;  %v7648_v55 = vld [vmem:[%s9325_s4] sm:$0xff]  ;;  %v7667_v18 = vld [vmem:[%s9325_s4 + $0x18] sm:$0xff]  ;;  %9882 = vst [vmem:[#allocation66_spill] sm:$0xff] %v8018_v50 }
 0x247   :  { %v2290_v29 = vmax.f32 %v2274_v22, 0.0  ;;  %v2269_v40 = vadd.f32 %v7563_v15, %v2157_v3  ;;  %v1227_v39 = vmax.f32 %v1209_v41, 0.0  ;;  %v7643_v22 = vld [vmem:[%s9325_s4 + $0x8] sm:$0xff]  ;;  %v2155_v15 = vmul.f32 %v7581_v24, %v7496_v33 }
 0x248   :  { %v1350_v10 = vadd.f32 %v1349_v34, %v1335_v48  ;;  %v1225_v45 = vmax.f32 %v1201_v58, 0.0  ;;  %v7630_v27 = vpop.permute.xlu1 %2343  ;;  %v7632_v35 = vpop.permute.xlu0 %2338  ;;  %v2268_v3 = vadd.f32 %v7565_v31, %v2156_v28  ;;  %v2286_v0 = vmax.f32 %v2270_v6, 0.0  ;;  %v9816_v48 = vld [vmem:[#allocation69_spill] sm:$0xff]  ;;  %v9819_v6 = vld [vmem:[#allocation74_spill] sm:$0xff] }
 0x249   :  { %9813 = vst [vmem:[#allocation56_spill] sm:$0xff] %v7630_v27  ;;  %9814 = vst [vmem:[#allocation29_spill] sm:$0xff] %v7632_v35  ;;  %2928 = vperm.xlu1 %5879, %v7622_v30   ;;  %2923 = vperm.xlu0 %5878, %v7627_v25   ;;  %v2314_v14 = vpack.c.bf16 %v2290_v29, %v2289_v57  ;;  %v1338_v34 = vmul.f32 %v9816_v48, %v1226_v47  ;;  %v2285_v33 = vmax.f32 %v2269_v40, 0.0  ;;  %v8013_v27 = vld [vmem:[%s9322_s1 + $0x40] sm:$0xff] }
 0x24a   :  { %v1351_v8 = vadd.f32 %v1350_v10, %v1336_v49  ;;  %v1337_v1 = vmul.f32 %v9815_v43, %v1225_v45  ;;  %v2313_v58 = vpack.c.bf16 %v2288_v61, %v2287_v42  ;;  %v2154_v57 = vmul.f32 %v7581_v24, %v7498_v7  ;;  %v7672_v7 = vld [vmem:[%s9325_s4 + $0x10] sm:$0xff]  ;;  %9881 = vst [vmem:[#allocation61_spill] sm:$0xff] %v8013_v27 }
 0x24b   :  { %5716 = vmatprep.subr.bf16.mxu1 %v2314_v14  ;;  %v2267_v31 = vadd.f32 %v7553_v62, %v2155_v15  ;;  %v1339_v29 = vmul.f32 %v9819_v6, %v1227_v39  ;;  %v2153_v61 = vmul.f32 %v7581_v24, %v7490_v53  ;;  %v2284_v49 = vmax.f32 %v2268_v3, 0.0  ;;  %v7694_v39 = vld [vmem:[%s9325_s4 + $0x20] sm:$0xff] }
 0x24c   :  { %v1352_v13 = vadd.f32 %v1351_v8, %v1337_v1  ;;  %v7654_v41 = vpop.permute.xlu1 %2353  ;;  %5717 = vmatpush3.bf16.msra.mxu1 %v2314_v14  ;;  %v7656_v51 = vpop.permute.xlu0 %2348  ;;  %v2266_v62 = vadd.f32 %v7555_v37, %v2154_v57  ;;  %v2312_v40 = vpack.c.bf16 %v2286_v0, %v2285_v33  ;;  %v2152_v14 = vmul.f32 %v7581_v24, %v7492_v26  ;;  %v7689_v37 = vld [vmem:[%s9325_s4 + $0x28] sm:$0xff] }
 0x24d   :  { %9817 = vst [vmem:[#allocation60_spill] sm:$0xff] %v7654_v41  ;;  %9818 = vst [vmem:[#allocation55_spill] sm:$0xff] %v7656_v51  ;;  %3010 = vperm.xlu1 %5879, %v7643_v22   ;;  %3005 = vperm.xlu0 %5878, %v7648_v55   ;;  %v2265_v42 = vadd.f32 %v7542_v38, %v2153_v61  ;;  %v2283_v53 = vmax.f32 %v2267_v31, 0.0  ;;  %v2151_v43 = vmul.f32 %v7581_v24, %v7484_v4 }
 0x24e   :  { %v1353_v47 = vadd.f32 %v1352_v13, %v1338_v34  ;;  %5718 = vmatprep.subr.bf16.mxu1 %v2313_v58  ;;  %v2264_v26 = vadd.f32 %v7544_v11, %v2152_v14  ;;  %v2282_v1 = vmax.f32 %v2266_v62, 0.0  ;;  %v2150_v48 = vmul.f32 %v7581_v24, %v7486_v19  ;;  %v7711_v11 = vld [vmem:[%s9325_s4 + $0x38] sm:$0xff] }
 0x24f   :  { %v2311_v0 = vpack.c.bf16 %v2284_v49, %v2283_v53  ;;  %v2263_v34 = vadd.f32 %v7534_v44, %v2151_v43  ;;  %v2281_v4 = vmax.f32 %v2265_v42, 0.0  ;;  %9824 = vst [vmem:[#allocation72_spill] sm:$0xff] %v7711_v11  ;;  %v2149_v57 = vmul.f32 %v7581_v24, %v7479_v2  ;;  %v7738_v49 = vld [vmem:[%s9325_s4 + $0x40] sm:$0xff] }
 0x250   :  { %v1354_v10 = vadd.f32 %v1353_v47, %v1339_v29  ;;  %v7677_v45 = vpop.permute.xlu1 %2363  ;;  %5719 = vmatpush3.bf16.msra.mxu1 %v2313_v58  ;;  %v7679_v28 = vpop.permute.xlu0 %2358  ;;  %v7716_v58 = vld [vmem:[%s9325_s4 + $0x30] sm:$0xff]  ;;  %v2262_v19 = vadd.f32 %v7536_v32, %v2150_v48  ;;  %v2280_v31 = vmax.f32 %v2264_v26, 0.0  ;;  %v2148_v47 = vmul.f32 %v7581_v24, %v7481_v52  ;;  %v7733_v32 = vld [vmem:[%s9325_s4 + $0x48] sm:$0xff]  ;;  %9828 = vst [vmem:[#allocation75_spill] sm:$0xff] %v7738_v49 }
 0x251   :  { %9820 = vst [vmem:[#allocation64_spill] sm:$0xff] %v7677_v45  ;;  %9821 = vst [vmem:[#allocation59_spill] sm:$0xff] %v7679_v28  ;;  %3020 = vperm.xlu1 %5879, %v7667_v18   ;;  %3015 = vperm.xlu0 %5878, %v7672_v7   ;;  %v2310_v29 = vpack.c.bf16 %v2282_v1, %v2281_v4  ;;  %v2261_v61 = vadd.f32 %v7526_v5, %v2149_v57  ;;  %v2279_v2 = vmax.f32 %v2263_v34, 0.0  ;;  %v7771_v4 = vld [vmem:[%s9325_s4 + $0x68] sm:$0xff]  ;;  %v7986_v45 = vld [vmem:[%s9322_s1 + $0x18] sm:$0xff] }
 0x252   :  { %v1355_v8 = vrot.slane %v1354_v10, 4  ;;  %5720 = vmatprep.subr.bf16.mxu1 %v2312_v40  ;;  %9827 = vst [vmem:[#allocation71_spill] sm:$0xff] %v7733_v32  ;;  %v2147_v52 = vmul.f32 %v7581_v24, %v7473_v54  ;;  %v2260_v5 = vadd.f32 %v7528_v46, %v2148_v47  ;;  %v2278_v14 = vmax.f32 %v2262_v19, 0.0  ;;  %v7755_v54 = vld [vmem:[%s9325_s4 + $0x58] sm:$0xff]  ;;  %v7760_v46 = vld [vmem:[%s9325_s4 + $0x50] sm:$0xff]  ;;  %9836 = vst [vmem:[#allocation85_spill] sm:$0xff] %v7771_v4 }
 0x253   :  { %v2309_v43 = vpack.c.bf16 %v2280_v31, %v2279_v2  ;;  %v2277_v1 = vmax.f32 %v2261_v61, 0.0  ;;  %9832 = vst [vmem:[#allocation81_spill] sm:$0xff] %v7755_v54  ;;  %9833 = vst [vmem:[#allocation78_spill] sm:$0xff] %v7760_v46  ;;  %v5905_v47 = vld [vmem:[%s9324_s3 + $0x8] sm:$0xff]  }
 0x254   :  { %v1356_v38 = vadd.f32 %v1355_v8, %v1354_v10  ;;  %v7699_v15 = vpop.permute.xlu1 %2373  ;;  %5721 = vmatpush3.bf16.msra.mxu1 %v2312_v40  ;;  %v7701_v3 = vpop.permute.xlu0 %2368  ;;  %v9829_v10 = vld [vmem:[#allocation73_spill] sm:$0xff]  ;;  %v2259_v26 = vadd.f32 %v7520_v60, %v2147_v52  ;;  %v2276_v24 = vmax.f32 %v2260_v5, 0.0  ;;  %9878 = vst [vmem:[#allocation62_spill] sm:$0xff] %v7986_v45 }
 0x255   :  { %9822 = vst [vmem:[#allocation68_spill] sm:$0xff] %v7699_v15  ;;  %9823 = vst [vmem:[#allocation63_spill] sm:$0xff] %v7701_v3  ;;  %3030 = vperm.xlu1 %5879, %v7689_v37   ;;  %3025 = vperm.xlu0 %5878, %v7694_v39   ;;  %v1370_v40 = vrot.slane %v9829_v10, %v7365_v56  ;;  %v2308_v60 = vpack.c.bf16 %v2278_v14, %v2277_v1  ;;  %v5912_v10 = vld [vmem:[%s9324_s3] sm:$0xff]   ;;  %v5907_v1 = vld [vmem:[%s9324_s3 + $0x18] sm:$0xff]  }
 0x256   :  { %v1357_v13 = vrot.slane %v1356_v38, 2  ;;  %5722 = vmatprep.subr.bf16.mxu1 %v2311_v0  ;;  %v2275_v34 = vmax.f32 %v2259_v26, 0.0  ;;  %v7817_v52 = vld [vmem:[%s9326_s5] sm:$0xff]  ;;  %5764 = vmatprep.mubr.bf16.mxu0 %v5912_v10  ;;  %v7833_v26 = vld [vmem:[%s9326_s5 + $0x10] sm:$0xff]  ;;  %v7866_v10 = vld [vmem:[%s9326_s5 + $0x38] sm:$0xff] }
 0x257   :  { %9845 = vst [vmem:[#allocation90_spill] sm:$0xff] %v7817_v52  ;;  %9849 = vst [vmem:[#allocation94_spill] sm:$0xff] %v7833_v26  ;;  %v7970_v28 = vld [vmem:[%s9322_s1 + $0x8] sm:$0xff] }
 0x258   :  { %v1358_v44 = vadd.f32 %v1357_v13, %v1356_v38  ;;  %v7721_v33 = vpop.permute.xlu1 %2383  ;;  %5723 = vmatpush3.bf16.msra.mxu1 %v2311_v0  ;;  %v7723_v6 = vpop.permute.xlu0 %2378  ;;  %v7776_v13 = vld [vmem:[%s9325_s4 + $0x60] sm:$0xff]  ;;  %v2307_v31 = vpack.c.bf16 %v2276_v24, %v2275_v34  ;;  %v7850_v34 = vld [vmem:[%s9326_s5 + $0x28] sm:$0xff]  ;;  %9856 = vst [vmem:[#allocation43_spill] sm:$0xff] %v7866_v10  ;;  %9876 = vst [vmem:[#allocation57_spill] sm:$0xff] %v7970_v28 }
 0x259   :  { %9825 = vst [vmem:[#allocation67_spill] sm:$0xff] %v7721_v33  ;;  %9826 = vst [vmem:[#allocation76_spill] sm:$0xff] %v7723_v6  ;;  %3040 = vperm.xlu1 %5879, %v7711_v11   ;;  %3035 = vperm.xlu0 %5878, %v7716_v58   ;;  %v7909_v6 = vld [vmem:[%s9326_s5 + $0x50] sm:$0xff] }
 0x25a   :  { %v1359_v62 = vrot.slane %v1358_v44, 1  ;;  %5724 = vmatprep.subr.bf16.mxu1 %v2310_v29  ;;  %9837 = vst [vmem:[#allocation82_spill] sm:$0xff] %v7776_v13  ;;  %9852 = vst [vmem:[#allocation99_spill] sm:$0xff] %v7850_v34  ;;  %v7944_v33 = vld [vmem:[%s9326_s5 + $0x70] sm:$0xff] }
 0x25b   :  { %9865 = vst [vmem:[#allocation103_spill] sm:$0xff] %v7909_v6  ;;  %9873 = vst [vmem:[#allocation58_spill] sm:$0xff] %v7944_v33  ;;  %v9920_v56 = vld [vmem:[#allocation18_spill] sm:$0xff] }
 0x25c   :  { %v1360_v42 = vadd.f32 %v1359_v62, %v1358_v44  ;;  %v7745_v53 = vpop.permute.xlu1 %2393  ;;  %5725 = vmatpush3.bf16.msra.mxu1 %v2310_v29  ;;  %v7747_v8 = vpop.permute.xlu0 %2388  ;;  %v7787_v44 = vld [vmem:[%s9325_s4 + $0x78] sm:$0xff]  ;;  %v7792_v29 = vld [vmem:[%s9325_s4 + $0x70] sm:$0xff] }
 0x25d   :  { %9830 = vst [vmem:[#allocation79_spill] sm:$0xff] %v7745_v53  ;;  %9831 = vst [vmem:[#allocation77_spill] sm:$0xff] %v7747_v8  ;;  %3050 = vperm.xlu1 %5879, %v7733_v32   ;;  %3045 = vperm.xlu0 %5878, %v7738_v49   ;;  %v5906_v62 = vld [vmem:[%s9324_s3 + $0x10] sm:$0xff]   ;;  %v7893_v53 = vld [vmem:[%s9326_s5 + $0x40] sm:$0xff] }
 0x25e   :  { %v1371_v38 = vadd.f32 %v1370_v40, %v1360_v42  ;;  %5726 = vmatprep.subr.bf16.mxu1 %v2309_v43  ;;  %9840 = vst [vmem:[#allocation89_spill] sm:$0xff] %v7787_v44  ;;  %9841 = vst [vmem:[#allocation86_spill] sm:$0xff] %v7792_v29  ;;  %v7812_v40 = vld [vmem:[%s9326_s5 + $0x8] sm:$0xff]  ;;  %v7928_v8 = vld [vmem:[%s9326_s5 + $0x60] sm:$0xff] }
 0x25f   :  { %9844 = vst [vmem:[#allocation95_spill] sm:$0xff] %v7812_v40  ;;  %9861 = vst [vmem:[#allocation28_spill] sm:$0xff] %v7893_v53 }
 0x260   :  { %5946 = vtanh.f32 %v1371_v38  ;;  %v7762_v0 = vpop.permute.xlu1 %2403  ;;  %5727 = vmatpush3.bf16.msra.mxu1 %v2309_v43  ;;  %v7764_v48 = vpop.permute.xlu0 %2398  ;;  %v7828_v43 = vld [vmem:[%s9326_s5 + $0x18] sm:$0xff]  ;;  %9869 = vst [vmem:[#allocation31_spill] sm:$0xff] %v7928_v8 }
 0x261   :  { %9834 = vst [vmem:[#allocation83_spill] sm:$0xff] %v7762_v0  ;;  %9835 = vst [vmem:[#allocation80_spill] sm:$0xff] %v7764_v48  ;;  %3060 = vperm.xlu1 %5879, %v7755_v54   ;;  %3055 = vperm.xlu0 %5878, %v7760_v46   ;;  %v7888_v0 = vld [vmem:[%s9326_s5 + $0x48] sm:$0xff] }
 0x262   :  { %5728 = vmatprep.subr.bf16.mxu1 %v2308_v60  ;;  %9848 = vst [vmem:[#allocation97_spill] sm:$0xff] %v7828_v43  ;;  %9860 = vst [vmem:[#allocation98_spill] sm:$0xff] %v7888_v0 }
 0x264   :  { %v7778_v57 = vpop.permute.xlu1 %2590  ;;  %5729 = vmatpush3.bf16.msra.mxu1 %v2308_v60  ;;  %v7780_v19 = vpop.permute.xlu0 %2408  ;;  %v5908_v60 = vld [vmem:[%s9324_s3 + $0x20] sm:$0xff]  }
 0x265   :  { %9838 = vst [vmem:[#allocation87_spill] sm:$0xff] %v7778_v57  ;;  %9839 = vst [vmem:[#allocation84_spill] sm:$0xff] %v7780_v19  ;;  %3070 = vperm.xlu1 %5879, %v7771_v4   ;;  %3065 = vperm.xlu0 %5878, %v7776_v13   ;;  %v5910_v19 = vld [vmem:[%s9324_s3 + $0x30] sm:$0xff]   ;;  %v8002_v57 = vld [vmem:[%s9322_s1 + $0x28] sm:$0xff] }
 0x266   :  { %5730 = vmatprep.subr.bf16.mxu1 %v2307_v31  ;;  %9880 = vst [vmem:[#allocation15_spill] sm:$0xff] %v8002_v57 }
 0x268   :  { %v7797_v61 = vpop.permute.xlu1 %2600  ;;  %5731 = vmatpush3.bf16.msra.mxu1 %v2307_v31  ;;  %v7799_v2 = vpop.permute.xlu0 %2595  ;;  %v7855_v31 = vld [vmem:[%s9326_s5 + $0x20] sm:$0xff] }
 0x269   :  { %9842 = vst [vmem:[#allocation91_spill] sm:$0xff] %v7797_v61  ;;  %9843 = vst [vmem:[#allocation88_spill] sm:$0xff] %v7799_v2  ;;  %3080 = vperm.xlu1 %5879, %v7787_v44   ;;  %3075 = vperm.xlu0 %5878, %v7792_v29   ;;  %v7997_v2 = vld [vmem:[%s9322_s1 + $0x30] sm:$0xff]  ;;  %v9900_v29 = vld [vmem:[#allocation36_spill] sm:$0xff] }
 0x26a   :  { %9853 = vst [vmem:[#allocation96_spill] sm:$0xff] %v7855_v31  ;;  %9879 = vst [vmem:[#allocation11_spill] sm:$0xff] %v7997_v2 }
 0x26b   :  { %5733 = vmatmul.mubr.bf16.vlgmr.msra.gmra.mxu1 %v5905_v47 }
 0x26c   :  { %v7819_v5 = vpop.permute.xlu1 %2610  ;;  %v7821_v14 = vpop.permute.xlu0 %2605  ;;  %5736 = vmatprep.mubr.bf16.mxu1 %v5906_v62 }
 0x26d   :  { %9846 = vst [vmem:[#allocation44_spill] sm:$0xff] %v7819_v5  ;;  %9847 = vst [vmem:[#allocation41_spill] sm:$0xff] %v7821_v14  ;;  %v5947_v42 = vpop.eup %5946  ;;  %3267 = vperm.xlu1 %5879, %v7812_v40   ;;  %3262 = vperm.xlu0 %5878, %v7817_v52   ;;  %v7965_v5 = vld [vmem:[%s9322_s1 + $0x10] sm:$0xff]  ;;  %v9899_v52 = vld [vmem:[#allocation33_spill] sm:$0xff] }
 0x26e   :  { %1373 = vst [vmem:[#allocation3 + $0x1] sm:$0x1] %v5947_v42  ;;  %v7871_v42 = vld [vmem:[%s9326_s5 + $0x30] sm:$0xff]  ;;  %9875 = vst [vmem:[#allocation8_spill] sm:$0xff] %v7965_v5 }
 0x26f   :  { %9857 = vst [vmem:[#allocation23_spill] sm:$0xff] %v7871_v42 }
 0x270   :  { %v7838_v38 = vpop.permute.xlu1 %2620  ;;  %v7840_v24 = vpop.permute.xlu0 %2615 }
 0x271   :  { %9850 = vst [vmem:[#allocation48_spill] sm:$0xff] %v7838_v38  ;;  %9851 = vst [vmem:[#allocation46_spill] sm:$0xff] %v7840_v24  ;;  %3277 = vperm.xlu1 %5879, %v7828_v43   ;;  %3272 = vperm.xlu0 %5878, %v7833_v26  }
 0x273   :  { %5737 = vmatmul.mubr.bf16.gmra.mxu1 %v5907_v1  ;;  %v5909_v1 = vld [vmem:[%s9324_s3 + $0x28] sm:$0xff]  }
 0x274   :  { %v7857_v47 = vpop.permute.xlu1 %2630  ;;  %v7859_v62 = vpop.permute.xlu0 %2625  ;;  %5740 = vmatprep.mubr.bf16.mxu1 %v5908_v60 }
 0x275   :  { %9854 = vst [vmem:[#allocation19_spill] sm:$0xff] %v7857_v47  ;;  %9855 = vst [vmem:[#allocation24_spill] sm:$0xff] %v7859_v62  ;;  %3287 = vperm.xlu1 %5879, %v7850_v34   ;;  %3282 = vperm.xlu0 %5878, %v7855_v31   ;;  %v7904_v47 = vld [vmem:[%s9326_s5 + $0x58] sm:$0xff] }
 0x276   :  { %9864 = vst [vmem:[#allocation27_spill] sm:$0xff] %v7904_v47 }
 0x278   :  { %v7876_v48 = vpop.permute.xlu1 %2640  ;;  %v7878_v60 = vpop.permute.xlu0 %2635 }
 0x279   :  { %9858 = vst [vmem:[#allocation45_spill] sm:$0xff] %v7876_v48  ;;  %9859 = vst [vmem:[#allocation101_spill] sm:$0xff] %v7878_v60  ;;  %3297 = vperm.xlu1 %5879, %v7866_v10   ;;  %3292 = vperm.xlu0 %5878, %v7871_v42   ;;  %v8097_v42 = vld [vmem:[%s9323_s2 + $0x10] sm:$0xff] }
 0x27a   :  { %9893 = vst [vmem:[#allocation109_spill] sm:$0xff] %v8097_v42 }
 0x27b   :  { %5741 = vmatmul.mubr.bf16.gmra.mxu1 %v5909_v1  ;;  %v5911_v1 = vld [vmem:[%s9324_s3 + $0x38] sm:$0xff]  }
 0x27c   :  { %v7895_v48 = vpop.permute.xlu1 %2650  ;;  %v7897_v60 = vpop.permute.xlu0 %2645  ;;  %5744 = vmatprep.mubr.bf16.mxu1 %v5910_v19 }
 0x27d   :  { %9862 = vst [vmem:[#allocation49_spill] sm:$0xff] %v7895_v48  ;;  %9863 = vst [vmem:[#allocation50_spill] sm:$0xff] %v7897_v60  ;;  %3307 = vperm.xlu1 %5879, %v7888_v0   ;;  %3302 = vperm.xlu0 %5878, %v7893_v53   ;;  %v7923_v60 = vld [vmem:[%s9326_s5 + $0x68] sm:$0xff]  ;;  %v8083_v0 = vld [vmem:[%s9322_s1 + $0x78] sm:$0xff] }
 0x27e   :  { %9868 = vst [vmem:[#allocation47_spill] sm:$0xff] %v7923_v60  ;;  %9892 = vst [vmem:[#allocation108_spill] sm:$0xff] %v8083_v0 }
 0x280   :  { %v7914_v48 = vpop.permute.xlu1 %2660  ;;  %v7916_v19 = vpop.permute.xlu0 %2655 }
 0x281   :  { %9866 = vst [vmem:[#allocation100_spill] sm:$0xff] %v7914_v48  ;;  %9867 = vst [vmem:[#allocation32_spill] sm:$0xff] %v7916_v19  ;;  %3317 = vperm.xlu1 %5879, %v7904_v47   ;;  %3312 = vperm.xlu0 %5878, %v7909_v6   ;;  %v7939_v19 = vld [vmem:[%s9326_s5 + $0x78] sm:$0xff] }
 0x282   :  { %9872 = vst [vmem:[#allocation102_spill] sm:$0xff] %v7939_v19 }
 0x283   :  { %5745 = vmatmul.mubr.bf16.gmra.mxu1 %v5911_v1 }
 0x284   :  { %v7930_v62 = vpop.permute.xlu1 %2708  ;;  %v7932_v48 = vpop.permute.xlu0 %2665 }
 0x285   :  { %9870 = vst [vmem:[#allocation7_spill] sm:$0xff] %v7930_v62  ;;  %9871 = vst [vmem:[#allocation105_spill] sm:$0xff] %v7932_v48  ;;  %3327 = vperm.xlu1 %5879, %v7923_v60   ;;  %3322 = vperm.xlu0 %5878, %v7928_v8   ;;  %v7955_v62 = vld [vmem:[%s9322_s1] sm:$0xff] }
 0x286   :  { %9874 = vst [vmem:[#allocation12_spill] sm:$0xff] %v7955_v62  ;;  %v3377_v48 = vld [vmem:[#allocation2] sm:$0x1] }
 0x287   :  { %v8078_v8 = vld [vmem:[%s9323_s2] sm:$0xff] }
 0x288   :  { %v7946_v38 = vpop.permute.xlu1 %2742  ;;  %v7948_v1 = vpop.permute.xlu0 %2737  ;;  %9891 = vst [vmem:[#allocation107_spill] sm:$0xff] %v8078_v8 }
 0x289   :  { %3337 = vperm.xlu1 %5879, %v7939_v19   ;;  %3332 = vperm.xlu0 %5878, %v7944_v33  }
 0x28c   :  { %v7957_v15 = vpop.permute.xlu1 %2752  ;;  %v7959_v24 = vpop.permute.xlu0 %2747 }
 0x28d   :  { %3409 = vperm.xlu1 %5879, %v7955_v62   ;;  %3380 = vperm.xlu0 %5878, %v3377_v48   ;;  %v7981_v48 = vld [vmem:[%s9322_s1 + $0x20] sm:$0xff] }
 0x28e   :  { %9877 = vst [vmem:[#allocation104_spill] sm:$0xff] %v7981_v48 }
 0x290   :  { %v7972_v3 = vpop.permute.xlu1 %2762  ;;  %v7974_v14 = vpop.permute.xlu0 %2757 }
 0x291   :  { %3419 = vperm.xlu1 %5879, %v7965_v5   ;;  %3414 = vperm.xlu0 %5878, %v7970_v28  }
 0x294   :  { %v7988_v61 = vpop.permute.xlu1 %2772  ;;  %v7990_v41 = vpop.permute.xlu0 %2767 }
 0x295   :  { %3429 = vperm.xlu1 %5879, %v7981_v48   ;;  %3424 = vperm.xlu0 %5878, %v7986_v45  }
 0x298   :  { %v8004_v35 = vpop.permute.xlu1 %2782  ;;  %v8006_v51 = vpop.permute.xlu0 %2777 }
 0x299   :  { %3439 = vperm.xlu1 %5879, %v7997_v2   ;;  %3434 = vperm.xlu0 %5878, %v8002_v57   ;;  %v8029_v2 = vld [vmem:[%s9322_s1 + $0x50] sm:$0xff]  ;;  %v8034_v57 = vld [vmem:[%s9322_s1 + $0x48] sm:$0xff] }
 0x29a   :  { %9883 = vst [vmem:[#allocation20_spill] sm:$0xff] %v8029_v2  ;;  %9884 = vst [vmem:[#allocation16_spill] sm:$0xff] %v8034_v57 }
 0x29c   :  { %v8020_v48 = vpop.permute.xlu1 %2792  ;;  %v8022_v5 = vpop.permute.xlu0 %2787 }
 0x29d   :  { %3449 = vperm.xlu1 %5879, %v8013_v27   ;;  %3444 = vperm.xlu0 %5878, %v8018_v50   ;;  %v8045_v27 = vld [vmem:[%s9322_s1 + $0x60] sm:$0xff]  ;;  %v8050_v50 = vld [vmem:[%s9322_s1 + $0x58] sm:$0xff] }
 0x29e   :  { %9885 = vst [vmem:[#allocation65_spill] sm:$0xff] %v8045_v27  ;;  %9886 = vst [vmem:[#allocation70_spill] sm:$0xff] %v8050_v50 }
 0x2a0   :  { %v8036_v45 = vpop.permute.xlu1 %2802  ;;  %v8038_v62 = vpop.permute.xlu0 %2797 }
 0x2a1   :  { %3459 = vperm.xlu1 %5879, %v8029_v2   ;;  %3454 = vperm.xlu0 %5878, %v8034_v57   ;;  %v8061_v2 = vld [vmem:[%s9322_s1 + $0x70] sm:$0xff]  ;;  %v8066_v57 = vld [vmem:[%s9322_s1 + $0x68] sm:$0xff] }
 0x2a2   :  { %9887 = vst [vmem:[#allocation69_spill] sm:$0xff] %v8061_v2  ;;  %9888 = vst [vmem:[#allocation74_spill] sm:$0xff] %v8066_v57 }
 0x2a4   :  { %v8052_v28 = vpop.permute.xlu1 %2812  ;;  %v8054_v19 = vpop.permute.xlu0 %2807 }
 0x2a5   :  { %3469 = vperm.xlu1 %5879, %v8045_v27   ;;  %3464 = vperm.xlu0 %5878, %v8050_v50  }
 0x2a7   :  { %v5702_v60 = vpop.f32.mrf.mxu0 }
 0x2a8   :  { %v8068_v33 = vpop.permute.xlu1 %2858  ;;  %v8070_v47 = vpop.permute.xlu0 %2853  ;;  %v1830_v10 = vadd.f32 %v5702_v60, %v7332_v59  ;;  %v8102_v59 = vld [vmem:[%s9323_s2 + $0x8] sm:$0xff] }
 0x2a9   :  { %9889 = vst [vmem:[#allocation73_spill] sm:$0xff] %v8068_v33  ;;  %9890 = vst [vmem:[#allocation106_spill] sm:$0xff] %v8070_v47  ;;  %3479 = vperm.xlu1 %5879, %v8061_v2   ;;  %3474 = vperm.xlu0 %5878, %v8066_v57   ;;  %v1821_v27 = vpop.f32.mrf.mxu0 }
 0x2aa   :  { %v1822_v50 = vadd.f32 %v1821_v27, %v7318_v17  ;;  %9894 = vst [vmem:[#allocation110_spill] sm:$0xff] %v8102_v59 }
 0x2ab   :  { %v5703_v6 = vpop.f32.mrf.mxu0 }
 0x2ac   :  { %v8086_v53 = vpop.permute.xlu1 %2868  ;;  %v8088_v2 = vpop.permute.xlu0 %2863  ;;  %v1884_v27 = vmax.f32 %v1822_v50, 0.0  ;;  %v1833_v57 = vadd.f32 %v5703_v6, %v7330_v20 }
 0x2ad   :  { %3525 = vperm.xlu1 %5879, %v8078_v8   ;;  %3484 = vperm.xlu0 %5878, %v8083_v0   ;;  %v1824_v17 = vpop.f32.mrf.mxu0  ;;  %v1886_v8 = vmax.f32 %v1830_v10, 0.0  ;;  %v8121_v10 = vld [vmem:[%s9323_s2 + $0x18] sm:$0xff] }
 0x2ae   :  { %v1825_v34 = vadd.f32 %v1824_v17, %v7316_v63  ;;  %v1996_v20 = vmul.f32 %v7406_v9, %v1884_v27  ;;  %v1887_v6 = vmax.f32 %v1833_v57, 0.0  ;;  %9896 = vst [vmem:[#allocation112_spill] sm:$0xff] %v8121_v10  ;;  %v9897_v9 = vld [vmem:[#allocation52_spill] sm:$0xff] }
 0x2af   :  { %v5706_v60 = vpop.f32.mrf.mxu0 }
 0x2b0   :  { %v1885_v43 = vmax.f32 %v1825_v34, 0.0  ;;  %v8104_v0 = vpop.permute.xlu1 %2878  ;;  %v8106_v50 = vpop.permute.xlu0 %2873  ;;  %v8116_v34 = vld [vmem:[%s9323_s2 + $0x20] sm:$0xff]  ;;  %v1846_v57 = vadd.f32 %v5706_v60, %v9897_v9 }
 0x2b1   :  { %3535 = vperm.xlu1 %5879, %v8097_v42   ;;  %3530 = vperm.xlu0 %5878, %v8102_v59   ;;  %v1837_v63 = vpop.f32.mrf.mxu0  ;;  %9895 = vst [vmem:[#allocation111_spill] sm:$0xff] %v8116_v34  ;;  %v1998_v59 = vmul.f32 %v7415_v23, %v1886_v8  ;;  %v8137_v8 = vld [vmem:[%s9323_s2 + $0x30] sm:$0xff] }
 0x2b2   :  { %v1997_v17 = vmul.f32 %v7404_v21, %v1885_v43  ;;  %v1838_v31 = vadd.f32 %v1837_v63, %v7345_v16  ;;  %v9898_v63 = vld [vmem:[#allocation39_spill] sm:$0xff]  ;;  %9901 = vst [vmem:[#allocation52_spill] sm:$0xff] %v8137_v8 }
 0x2b3   :  { %v5707_v42 = vpop.f32.mrf.mxu0  ;;  %v1999_v26 = vmul.f32 %v9898_v63, %v1887_v6  ;;  %v9904_v63 = vld [vmem:[#allocation92_spill] sm:$0xff] }
 0x2b4   :  { %v2012_v40 = vadd.f32 %v1997_v17, %v1996_v20  ;;  %v1888_v27 = vmax.f32 %v1838_v31, 0.0  ;;  %v8125_v21 = vpop.permute.xlu1 %2888  ;;  %v8127_v16 = vpop.permute.xlu0 %2883  ;;  %v1849_v4 = vadd.f32 %v5707_v42, %v9899_v52  ;;  %v8142_v31 = vld [vmem:[%s9323_s2 + $0x28] sm:$0xff]  ;;  %v1890_v20 = vmax.f32 %v1846_v57, 0.0  ;;  %v9908_v57 = vld [vmem:[#allocation51_spill] sm:$0xff] }
 0x2b5   :  { %3545 = vperm.xlu1 %5879, %v8116_v34   ;;  %3540 = vperm.xlu0 %5878, %v8121_v10   ;;  %v1840_v43 = vpop.f32.mrf.mxu0  ;;  %9902 = vst [vmem:[#allocation39_spill] sm:$0xff] %v8142_v31  ;;  %v9903_v17 = vld [vmem:[#allocation93_spill] sm:$0xff]  ;;  %v9905_v10 = vld [vmem:[#allocation34_spill] sm:$0xff] }
 0x2b6   :  { %v2013_v44 = vadd.f32 %v2012_v40, %v1998_v59  ;;  %v1841_v23 = vadd.f32 %v1840_v43, %v9900_v29  ;;  %v2000_v9 = vmul.f32 %v9903_v17, %v1888_v27  ;;  %v1891_v43 = vmax.f32 %v1849_v4, 0.0  ;;  %v9909_v17 = vld [vmem:[#allocation9_spill] sm:$0xff] }
 0x2b7   :  { %v5710_v60 = vpop.f32.mrf.mxu0 }
 0x2b8   :  { %v2014_v6 = vadd.f32 %v2013_v44, %v1999_v26  ;;  %v1889_v40 = vmax.f32 %v1841_v23, 0.0  ;;  %v8145_v59 = vpop.permute.xlu1 %2898  ;;  %v8147_v52 = vpop.permute.xlu0 %2893  ;;  %v8156_v44 = vld [vmem:[%s9323_s2 + $0x40] sm:$0xff]  ;;  %v8161_v26 = vld [vmem:[%s9323_s2 + $0x38] sm:$0xff]  ;;  %v1862_v27 = vadd.f32 %v5710_v60, %v9908_v57 }
 0x2b9   :  { %3555 = vperm.xlu1 %5879, %v8137_v8   ;;  %3550 = vperm.xlu0 %5878, %v8142_v31   ;;  %v1853_v29 = vpop.f32.mrf.mxu0  ;;  %9906 = vst [vmem:[#allocation33_spill] sm:$0xff] %v8156_v44  ;;  %9907 = vst [vmem:[#allocation36_spill] sm:$0xff] %v8161_v26  ;;  %v9910_v8 = vld [vmem:[#allocation10_spill] sm:$0xff]  ;;  %v9911_v57 = vld [vmem:[#allocation53_spill] sm:$0xff] }
 0x2ba   :  { %v2015_v42 = vadd.f32 %v2014_v6, %v2000_v9  ;;  %v2001_v34 = vmul.f32 %v9904_v63, %v1889_v40  ;;  %v1854_v54 = vadd.f32 %v1853_v29, %v9905_v10  ;;  %v2002_v9 = vmul.f32 %v9909_v17, %v1890_v20  ;;  %v8170_v29 = vld [vmem:[%s9321_s0 + $0x4] ss:$0 sm:$0xff]  ;;  %v9912_v20 = vld [vmem:[#allocation54_spill] sm:$0xff] }
 0x2bb   :  { %v5711_v23 = vpop.f32.mrf.mxu0  ;;  %v2003_v31 = vmul.f32 %v9910_v8, %v1891_v43  ;;  %v2830_v17 = vmul.f32 %v8170_v29, %v8020_v48  ;;  %v2829_v43 = vmul.f32 %v8170_v29, %v8022_v5  ;;  %v2831_v32 = vmul.f32 %v8170_v29, %v8038_v62 }
 0x2bc   :  { %v2016_v4 = vadd.f32 %v2015_v42, %v2001_v34  ;;  %v1892_v6 = vmax.f32 %v1854_v54, 0.0  ;;  %v2909_v40 = vpop.permute.xlu1 %2908  ;;  %v2904_v63 = vpop.permute.xlu0 %2903  ;;  %v1865_v13 = vadd.f32 %v5711_v23, %v9911_v57  ;;  %v8178_v54 = vld [vmem:[%s9323_s2 + $0x50] sm:$0xff]  ;;  %v8183_v42 = vld [vmem:[%s9323_s2 + $0x48] sm:$0xff]  ;;  %v2834_v48 = vmul.f32 %v8170_v29, %v8052_v28 }
 0x2bd   :  { %3565 = vperm.xlu1 %5879, %v8156_v44   ;;  %3560 = vperm.xlu0 %5878, %v8161_v26   ;;  %v1856_v10 = vpop.f32.mrf.mxu0  ;;  %9913 = vst [vmem:[#allocation93_spill] sm:$0xff] %v8178_v54  ;;  %9914 = vst [vmem:[#allocation92_spill] sm:$0xff] %v8183_v42  ;;  %v1894_v44 = vmax.f32 %v1862_v27, 0.0  ;;  %v9915_v23 = vld [vmem:[#allocation6_spill] sm:$0xff]  ;;  %v2832_v26 = vmul.f32 %v8170_v29, %v8036_v45  ;;  %v8203_v45 = vld [vmem:[%s9323_s2 + $0x58] sm:$0xff]  ;;  %v2833_v62 = vmul.f32 %v8170_v29, %v8054_v19 }
 0x2be   :  { %v2017_v60 = vadd.f32 %v2016_v4, %v2002_v9  ;;  %v1857_v34 = vadd.f32 %v1856_v10, %v9912_v20  ;;  %v2004_v9 = vmul.f32 %v9915_v23, %v1892_v6  ;;  %v1895_v6 = vmax.f32 %v1865_v13, 0.0  ;;  %v9918_v28 = vld [vmem:[#allocation13_spill] sm:$0xff] }
 0x2bf   :  { %v5714_v8 = vpop.f32.mrf.mxu0  ;;  %v2006_v46 = vmul.f32 %v9918_v28, %v1894_v44 }
 0x2c0   :  { %v2018_v4 = vadd.f32 %v2017_v60, %v2003_v31  ;;  %v1893_v10 = vmax.f32 %v1857_v34, 0.0  ;;  %v2919_v57 = vpop.permute.xlu1 %2918  ;;  %v2914_v20 = vpop.permute.xlu0 %2913  ;;  %v9916_v31 = vld [vmem:[#allocation14_spill] sm:$0xff]  ;;  %v9917_v34 = vld [vmem:[#allocation35_spill] sm:$0xff]  ;;  %v2007_v44 = vmul.f32 %v9920_v56, %v1895_v6  ;;  %v2828_v56 = vmul.f32 %v8170_v29, %v8004_v35  ;;  %v9925_v35 = vld [vmem:[#allocation21_spill] sm:$0xff] }
 0x2c1   :  { %3575 = vperm.xlu1 %5879, %v8178_v54   ;;  %3570 = vperm.xlu0 %5878, %v8183_v42   ;;  %v1869_v5 = vpop.f32.mrf.mxu0  ;;  %v9919_v54 = vld [vmem:[#allocation37_spill] sm:$0xff]  ;;  %v2944_v42 = vadd.f32 %v2919_v57, %v2832_v26 }
 0x2c2   :  { %v2019_v27 = vadd.f32 %v2018_v4, %v2004_v9  ;;  %v2005_v60 = vmul.f32 %v9916_v31, %v1893_v10  ;;  %v1870_v23 = vadd.f32 %v1869_v5, %v9917_v34  ;;  %v1878_v11 = vadd.f32 %v5714_v8, %v9919_v54  ;;  %v9921_v54 = vld [vmem:[#allocation42_spill] sm:$0xff]  ;;  %v9922_v8 = vld [vmem:[#allocation40_spill] sm:$0xff] }
 0x2c3   :  { %v5715_v49 = vpop.f32.mrf.mxu0  ;;  %v2942_v9 = vadd.f32 %v2909_v40, %v2830_v17  ;;  %v2943_v4 = vadd.f32 %v2914_v20, %v2831_v32  ;;  %v2941_v34 = vadd.f32 %v2904_v63, %v2829_v43  ;;  %v2960_v32 = vmax.f32 %v2944_v42, 0.0  ;;  %v9923_v63 = vld [vmem:[#allocation17_spill] sm:$0xff] }
 0x2c4   :  { %v2020_v13 = vadd.f32 %v2019_v27, %v2005_v60  ;;  %v1896_v10 = vmax.f32 %v1870_v23, 0.0  ;;  %v2929_v31 = vpop.permute.xlu1 %2928  ;;  %v2924_v5 = vpop.permute.xlu0 %2923  ;;  %v1881_v26 = vadd.f32 %v5715_v49, %v9921_v54  ;;  %v1898_v17 = vmax.f32 %v1878_v11, 0.0 }
 0x2c5   :  { %v2946_v47 = vadd.f32 %v2929_v31, %v2834_v48  ;;  %v2945_v33 = vadd.f32 %v2924_v5, %v2833_v62  ;;  %3585 = vperm.xlu1 %5879, %v7602_v12   ;;  %3580 = vperm.xlu0 %5878, %v8203_v45   ;;  %v1872_v19 = vpop.f32.mrf.mxu0  ;;  %v2959_v27 = vmax.f32 %v2943_v4, 0.0  ;;  %v2827_v49 = vmul.f32 %v8170_v29, %v8006_v51 }
 0x2c6   :  { %v2021_v28 = vadd.f32 %v2020_v13, %v2006_v46  ;;  %v1873_v40 = vadd.f32 %v1872_v19, %v9922_v8  ;;  %v2008_v43 = vmul.f32 %v9923_v63, %v1896_v10  ;;  %v1899_v46 = vmax.f32 %v1881_v26, 0.0 }
 0x2c7   :  { %v2962_v57 = vmax.f32 %v2946_v47, 0.0  ;;  %v2961_v20 = vmax.f32 %v2945_v33, 0.0  ;;  %v9924_v47 = vld [vmem:[#allocation22_spill] sm:$0xff]  ;;  %v2940_v6 = vadd.f32 %v8145_v59, %v2828_v56  ;;  %v2939_v62 = vadd.f32 %v8147_v52, %v2827_v49 }
 0x2c8   :  { %v2022_v48 = vadd.f32 %v2021_v28, %v2007_v44  ;;  %v1897_v60 = vmax.f32 %v1873_v40, 0.0  ;;  %v8215_v12 = vpop.permute.xlu1 %3010  ;;  %v8217_v23 = vpop.permute.xlu0 %3005  ;;  %v2958_v13 = vmax.f32 %v2942_v9, 0.0  ;;  %v2957_v4 = vmax.f32 %v2941_v34, 0.0  ;;  %v9926_v52 = vld [vmem:[#allocation26_spill] sm:$0xff] }
 0x2c9   :  { %3595 = vperm.xlu1 %5879, %v7627_v25   ;;  %3590 = vperm.xlu0 %5878, %v7597_v36   ;;  %v2986_v11 = vpack.c.bf16 %v2962_v57, %v2961_v20  ;;  %v2010_v10 = vmul.f32 %v9925_v35, %v1898_v17  ;;  %v2985_v36 = vpack.c.bf16 %v2960_v32, %v2959_v27  ;;  %v2956_v28 = vmax.f32 %v2940_v6, 0.0 }
 0x2ca   :  { %v2023_v33 = vadd.f32 %v2022_v48, %v2008_v43  ;;  %v2009_v42 = vmul.f32 %v9924_v47, %v1897_v60  ;;  %v2826_v5 = vmul.f32 %v8170_v29, %v7988_v61  ;;  %v2825_v59 = vmul.f32 %v8170_v29, %v7990_v41 }
 0x2cb   :  { %5748 = vmatprep.subr.bf16.mxu0 %v2986_v11  ;;  %v2011_v9 = vmul.f32 %v9926_v52, %v1899_v46  ;;  %v2955_v54 = vmax.f32 %v2939_v62, 0.0  ;;  %v2984_v41 = vpack.c.bf16 %v2958_v13, %v2957_v4  ;;  %v9935_v46 = vld [vmem:[#allocation106_spill] sm:$0xff] }
 0x2cc   :  { %v2024_v31 = vadd.f32 %v2023_v33, %v2009_v42  ;;  %v8229_v51 = vpop.permute.xlu1 %3020  ;;  %v8231_v25 = vpop.permute.xlu0 %3015  ;;  %5749 = vmatpush3.bf16.msra.mxu0 %v2986_v11  ;;  %v2938_v19 = vadd.f32 %v8125_v21, %v2826_v5  ;;  %v2937_v44 = vadd.f32 %v8127_v16, %v2825_v59  ;;  %v9934_v11 = vld [vmem:[#allocation73_spill] sm:$0xff]  ;;  %v9942_v5 = vld [vmem:[#allocation78_spill] sm:$0xff]  ;;  %v9943_v59 = vld [vmem:[#allocation71_spill] sm:$0xff] }
 0x2cd   :  { %3677 = vperm.xlu1 %5879, %v7648_v55   ;;  %3600 = vperm.xlu0 %5878, %v7622_v30   ;;  %v2824_v30 = vmul.f32 %v8170_v29, %v7972_v3  ;;  %v2823_v55 = vmul.f32 %v8170_v29, %v7974_v14  ;;  %v2983_v3 = vpack.c.bf16 %v2956_v28, %v2955_v54  ;;  %v5913_v28 = vld [vmem:[%s9324_s3 + $0x8] sm:$0xff]  }
 0x2ce   :  { %v2025_v34 = vadd.f32 %v2024_v31, %v2010_v10  ;;  %5750 = vmatprep.subr.bf16.mxu0 %v2985_v36  ;;  %v2954_v17 = vmax.f32 %v2938_v19, 0.0  ;;  %v2953_v32 = vmax.f32 %v2937_v44, 0.0  ;;  %v9946_v19 = vld [vmem:[#allocation82_spill] sm:$0xff]  ;;  %v9947_v44 = vld [vmem:[#allocation81_spill] sm:$0xff] }
 0x2cf   :  { %v2936_v16 = vadd.f32 %v8104_v0, %v2824_v30  ;;  %v2935_v40 = vadd.f32 %v8106_v50, %v2823_v55  ;;  %v9948_v30 = vld [vmem:[#allocation86_spill] sm:$0xff]  ;;  %v9949_v55 = vld [vmem:[#allocation85_spill] sm:$0xff] }
 0x2d0   :  { %v2026_v26 = vadd.f32 %v2025_v34, %v2011_v9  ;;  %v8242_v8 = vpop.permute.xlu1 %3030  ;;  %v8244_v61 = vpop.permute.xlu0 %3025  ;;  %5751 = vmatpush3.bf16.msra.mxu0 %v2985_v36 }
 0x2d1   :  { %9927 = vst [vmem:[#allocation34_spill] sm:$0xff] %v8242_v8  ;;  %3687 = vperm.xlu1 %5879, %v7672_v7   ;;  %3682 = vperm.xlu0 %5878, %v7643_v22   ;;  %v2822_v7 = vmul.f32 %v8170_v29, %v7957_v15  ;;  %v2821_v22 = vmul.f32 %v8170_v29, %v7959_v24  ;;  %v2952_v63 = vmax.f32 %v2936_v16, 0.0  ;;  %v2951_v43 = vmax.f32 %v2935_v40, 0.0  ;;  %v9933_v24 = vld [vmem:[#allocation30_spill] sm:$0xff] }
 0x2d2   :  { %v2027_v21 = vrot.slane %v2026_v26, 4  ;;  %5752 = vmatprep.subr.bf16.mxu0 %v2984_v41  ;;  %v2982_v15 = vpack.c.bf16 %v2954_v17, %v2953_v32  ;;  %v9952_v17 = vld [vmem:[#allocation90_spill] sm:$0xff]  ;;  %v9953_v32 = vld [vmem:[#allocation89_spill] sm:$0xff] }
 0x2d3   :  { %v2934_v14 = vadd.f32 %v8086_v53, %v2822_v7  ;;  %v2933_v50 = vadd.f32 %v8088_v2, %v2821_v22  ;;  %v9932_v2 = vld [vmem:[#allocation38_spill] sm:$0xff] }
 0x2d4   :  { %v2028_v57 = vadd.f32 %v2027_v21, %v2026_v26  ;;  %v8254_v20 = vpop.permute.xlu1 %3040  ;;  %v8256_v27 = vpop.permute.xlu0 %3035  ;;  %5753 = vmatpush3.bf16.msra.mxu0 %v2984_v41  ;;  %v2042_v49 = vrot.slane %v9933_v24, %v9932_v2  ;;  %v5914_v41 = vld [vmem:[%s9324_s3 + $0x10] sm:$0xff]  }
 0x2d5   :  { %9928 = vst [vmem:[#allocation51_spill] sm:$0xff] %v8254_v20  ;;  %9929 = vst [vmem:[#allocation9_spill] sm:$0xff] %v8256_v27  ;;  %3697 = vperm.xlu1 %5879, %v7694_v39   ;;  %3692 = vperm.xlu0 %5878, %v7667_v18   ;;  %v2820_v39 = vmul.f32 %v8170_v29, %v7946_v38  ;;  %v2819_v18 = vmul.f32 %v8170_v29, %v7948_v1  ;;  %v2950_v42 = vmax.f32 %v2934_v14, 0.0  ;;  %v9938_v1 = vld [vmem:[#allocation75_spill] sm:$0xff]  ;;  %v9956_v14 = vld [vmem:[#allocation94_spill] sm:$0xff] }
 0x2d6   :  { %v2029_v0 = vrot.slane %v2028_v57, 2  ;;  %5754 = vmatprep.subr.bf16.mxu0 %v2983_v3  ;;  %v2949_v6 = vmax.f32 %v2933_v50, 0.0  ;;  %v9957_v50 = vld [vmem:[#allocation95_spill] sm:$0xff]  ;;  %v10023_v20 = vld [vmem:[#allocation92_spill] sm:$0xff] }
 0x2d7   :  { %v2932_v33 = vadd.f32 %v9934_v11, %v2820_v39  ;;  %v2931_v47 = vadd.f32 %v9935_v46, %v2819_v18  ;;  %v5917_v39 = vld [vmem:[%s9324_s3 + $0x28] sm:$0xff]   ;;  %v5918_v24 = vld [vmem:[%s9324_s3 + $0x30] sm:$0xff]  }
 0x2d8   :  { %v2030_v48 = vadd.f32 %v2029_v0, %v2028_v57  ;;  %v8266_v60 = vpop.permute.xlu1 %3050  ;;  %v8268_v56 = vpop.permute.xlu0 %3045  ;;  %5755 = vmatpush3.bf16.msra.mxu0 %v2983_v3  ;;  %v2980_v36 = vpack.c.bf16 %v2950_v42, %v2949_v6  ;;  %v5920_v57 = vld [vmem:[%s9324_s3] sm:$0xff]   ;;  %v5915_v3 = vld [vmem:[%s9324_s3 + $0x18] sm:$0xff]  }
 0x2d9   :  { %9930 = vst [vmem:[#allocation10_spill] sm:$0xff] %v8266_v60  ;;  %9931 = vst [vmem:[#allocation53_spill] sm:$0xff] %v8268_v56  ;;  %3707 = vperm.xlu1 %5879, %v7716_v58   ;;  %3702 = vperm.xlu0 %5878, %v7689_v37   ;;  %v2981_v58 = vpack.c.bf16 %v2952_v63, %v2951_v43  ;;  %v9939_v37 = vld [vmem:[#allocation72_spill] sm:$0xff]  ;;  %v2948_v4 = vmax.f32 %v2932_v33, 0.0  ;;  %v2947_v35 = vmax.f32 %v2931_v47, 0.0  ;;  %v9965_v11 = vld [vmem:[#allocation99_spill] sm:$0xff] }
 0x2da   :  { %v2031_v53 = vrot.slane %v2030_v48, 1  ;;  %5756 = vmatprep.subr.bf16.mxu0 %v2982_v15  ;;  %5796 = vmatprep.mubr.bf16.mxu1 %v5920_v57  ;;  %v5916_v0 = vld [vmem:[%s9324_s3 + $0x20] sm:$0xff]   ;;  %v9969_v42 = vld [vmem:[#allocation43_spill] sm:$0xff] }
 0x2db   :  { %v2979_v34 = vpack.c.bf16 %v2948_v4, %v2947_v35  ;;  %v9968_v47 = vld [vmem:[#allocation28_spill] sm:$0xff]  ;;  %v9976_v35 = vld [vmem:[#allocation31_spill] sm:$0xff] }
 0x2dc   :  { %v2032_v62 = vadd.f32 %v2031_v53, %v2030_v48  ;;  %v8280_v38 = vpop.permute.xlu1 %3060  ;;  %v8282_v13 = vpop.permute.xlu0 %3055  ;;  %5757 = vmatpush3.bf16.msra.mxu0 %v2982_v15  ;;  %v9960_v48 = vld [vmem:[#allocation96_spill] sm:$0xff]  ;;  %v9961_v15 = vld [vmem:[#allocation97_spill] sm:$0xff] }
 0x2dd   :  { %9936 = vst [vmem:[#allocation54_spill] sm:$0xff] %v8280_v38  ;;  %9937 = vst [vmem:[#allocation6_spill] sm:$0xff] %v8282_v13  ;;  %3717 = vperm.xlu1 %5879, %v9938_v1   ;;  %3712 = vperm.xlu0 %5878, %v9939_v37   ;;  %v5919_v6 = vld [vmem:[%s9324_s3 + $0x38] sm:$0xff]   ;;  %v9973_v37 = vld [vmem:[#allocation98_spill] sm:$0xff] }
 0x2de   :  { %v2043_v29 = vadd.f32 %v2042_v49, %v2032_v62  ;;  %5758 = vmatprep.subr.bf16.mxu0 %v2981_v58  ;;  %v9964_v49 = vld [vmem:[#allocation23_spill] sm:$0xff]  ;;  %v10010_v60 = vld [vmem:[#allocation64_spill] sm:$0xff] }
 0x2df   :  { %v9972_v1 = vld [vmem:[#allocation103_spill] sm:$0xff] }
 0x2e0   :  { %5948 = vtanh.f32 %v2043_v29  ;;  %v8286_v10 = vpop.permute.xlu1 %3070  ;;  %v8288_v31 = vpop.permute.xlu0 %3065  ;;  %5759 = vmatpush3.bf16.msra.mxu0 %v2981_v58  ;;  %v10011_v13 = vld [vmem:[#allocation39_spill] sm:$0xff] }
 0x2e1   :  { %9940 = vst [vmem:[#allocation14_spill] sm:$0xff] %v8286_v10  ;;  %9941 = vst [vmem:[#allocation35_spill] sm:$0xff] %v8288_v31  ;;  %3727 = vperm.xlu1 %5879, %v9942_v5   ;;  %3722 = vperm.xlu0 %5878, %v9943_v59   ;;  %v10002_v10 = vld [vmem:[#allocation55_spill] sm:$0xff]  ;;  %v10005_v31 = vld [vmem:[#allocation109_spill] sm:$0xff] }
 0x2e2   :  { %5760 = vmatprep.subr.bf16.mxu0 %v2980_v36 }
 0x2e4   :  { %v8292_v52 = vpop.permute.xlu1 %3080  ;;  %v8294_v9 = vpop.permute.xlu0 %3075  ;;  %5761 = vmatpush3.bf16.msra.mxu0 %v2980_v36  ;;  %v9977_v36 = vld [vmem:[#allocation27_spill] sm:$0xff] }
 0x2e5   :  { %9944 = vst [vmem:[#allocation13_spill] sm:$0xff] %v8292_v52  ;;  %9945 = vst [vmem:[#allocation37_spill] sm:$0xff] %v8294_v9  ;;  %3737 = vperm.xlu1 %5879, %v9946_v19   ;;  %3732 = vperm.xlu0 %5878, %v9947_v44   ;;  %v9980_v19 = vld [vmem:[#allocation47_spill] sm:$0xff]  ;;  %v4049_v44 = vld [vmem:[#allocation2] sm:$0x1] }
 0x2e6   :  { %5762 = vmatprep.subr.bf16.mxu0 %v2979_v34  ;;  %v10003_v52 = vld [vmem:[#allocation29_spill] sm:$0xff] }
 0x2e8   :  { %v8301_v54 = vpop.permute.xlu1 %3267  ;;  %v8303_v26 = vpop.permute.xlu0 %3262  ;;  %5763 = vmatpush3.bf16.msra.mxu0 %v2979_v34  ;;  %v9979_v34 = vld [vmem:[#allocation58_spill] sm:$0xff] }
 0x2e9   :  { %3747 = vperm.xlu1 %5879, %v9948_v30   ;;  %3742 = vperm.xlu0 %5878, %v9949_v55   ;;  %v9981_v30 = vld [vmem:[#allocation102_spill] sm:$0xff] }
 0x2eb   :  { %5765 = vmatmul.mubr.bf16.vlgmr.msra.gmra.mxu0 %v5913_v28 }
 0x2ec   :  { %v8310_v21 = vpop.permute.xlu1 %3277  ;;  %v8312_v16 = vpop.permute.xlu0 %3272  ;;  %5768 = vmatprep.mubr.bf16.mxu0 %v5914_v41 }
 0x2ed   :  { %9950 = vst [vmem:[#allocation18_spill] sm:$0xff] %v8310_v21  ;;  %9951 = vst [vmem:[#allocation42_spill] sm:$0xff] %v8312_v16  ;;  %v5949_v40 = vpop.eup %5948  ;;  %3934 = vperm.xlu1 %5879, %v9952_v17   ;;  %3752 = vperm.xlu0 %5878, %v9953_v32   ;;  %v9982_v17 = vld [vmem:[#allocation57_spill] sm:$0xff]  ;;  %v9983_v32 = vld [vmem:[#allocation12_spill] sm:$0xff] }
 0x2ee   :  { %2045 = vst [vmem:[#allocation3 + $0x2] sm:$0x1] %v5949_v40  ;;  %v10024_v21 = vld [vmem:[#allocation33_spill] sm:$0xff] }
 0x2f0   :  { %v8322_v7 = vpop.permute.xlu1 %3287  ;;  %v8324_v22 = vpop.permute.xlu0 %3282 }
 0x2f1   :  { %9954 = vst [vmem:[#allocation40_spill] sm:$0xff] %v8322_v7  ;;  %9955 = vst [vmem:[#allocation17_spill] sm:$0xff] %v8324_v22  ;;  %3944 = vperm.xlu1 %5879, %v9956_v14   ;;  %3939 = vperm.xlu0 %5878, %v9957_v50   ;;  %v9985_v14 = vld [vmem:[#allocation8_spill] sm:$0xff] }
 0x2f2   :  { %v10018_v22 = vld [vmem:[#allocation52_spill] sm:$0xff] }
 0x2f3   :  { %5769 = vmatmul.mubr.bf16.gmra.mxu0 %v5915_v3 }
 0x2f4   :  { %v8331_v63 = vpop.permute.xlu1 %3297  ;;  %v8333_v43 = vpop.permute.xlu0 %3292  ;;  %5772 = vmatprep.mubr.bf16.mxu0 %v5916_v0  ;;  %v9984_v0 = vld [vmem:[#allocation62_spill] sm:$0xff] }
 0x2f5   :  { %9958 = vst [vmem:[#allocation22_spill] sm:$0xff] %v8331_v63  ;;  %9959 = vst [vmem:[#allocation21_spill] sm:$0xff] %v8333_v43  ;;  %3954 = vperm.xlu1 %5879, %v9960_v48   ;;  %3949 = vperm.xlu0 %5878, %v9961_v15   ;;  %v9986_v15 = vld [vmem:[#allocation15_spill] sm:$0xff] }
 0x2f8   :  { %v8340_v18 = vpop.permute.xlu1 %3307  ;;  %v8342_v53 = vpop.permute.xlu0 %3302 }
 0x2f9   :  { %9962 = vst [vmem:[#allocation26_spill] sm:$0xff] %v8340_v18  ;;  %9963 = vst [vmem:[#allocation38_spill] sm:$0xff] %v8342_v53  ;;  %3964 = vperm.xlu1 %5879, %v9964_v49   ;;  %3959 = vperm.xlu0 %5878, %v9965_v11   ;;  %v9988_v11 = vld [vmem:[#allocation66_spill] sm:$0xff] }
 0x2fb   :  { %5773 = vmatmul.mubr.bf16.gmra.mxu0 %v5917_v39  ;;  %v9987_v39 = vld [vmem:[#allocation104_spill] sm:$0xff] }
 0x2fc   :  { %v8349_v33 = vpop.permute.xlu1 %3317  ;;  %v8351_v46 = vpop.permute.xlu0 %3312  ;;  %5776 = vmatprep.mubr.bf16.mxu0 %v5918_v24 }
 0x2fd   :  { %9966 = vst [vmem:[#allocation30_spill] sm:$0xff] %v8349_v33  ;;  %9967 = vst [vmem:[#allocation73_spill] sm:$0xff] %v8351_v46  ;;  %3974 = vperm.xlu1 %5879, %v9968_v47   ;;  %3969 = vperm.xlu0 %5878, %v9969_v42   ;;  %v9989_v47 = vld [vmem:[#allocation11_spill] sm:$0xff] }
 0x300   :  { %v8358_v62 = vpop.permute.xlu1 %3327  ;;  %v8360_v58 = vpop.permute.xlu0 %3322 }
 0x301   :  { %9970 = vst [vmem:[#allocation106_spill] sm:$0xff] %v8358_v62  ;;  %9971 = vst [vmem:[#allocation75_spill] sm:$0xff] %v8360_v58  ;;  %3984 = vperm.xlu1 %5879, %v9972_v1   ;;  %3979 = vperm.xlu0 %5878, %v9973_v37   ;;  %v9990_v1 = vld [vmem:[#allocation16_spill] sm:$0xff]  ;;  %v9991_v37 = vld [vmem:[#allocation61_spill] sm:$0xff] }
 0x302   :  { %v10001_v62 = vld [vmem:[#allocation107_spill] sm:$0xff] }
 0x303   :  { %5777 = vmatmul.mubr.bf16.gmra.mxu0 %v5919_v6 }
 0x304   :  { %v8364_v29 = vpop.permute.xlu1 %3337  ;;  %v8366_v4 = vpop.permute.xlu0 %3332 }
 0x305   :  { %9974 = vst [vmem:[#allocation72_spill] sm:$0xff] %v8364_v29  ;;  %9975 = vst [vmem:[#allocation78_spill] sm:$0xff] %v8366_v4  ;;  %3994 = vperm.xlu1 %5879, %v9976_v35   ;;  %3989 = vperm.xlu0 %5878, %v9977_v36  }
 0x308   :  { %v8370_v5 = vpop.permute.xlu1 %3409  ;;  %v8372_v59 = vpop.permute.xlu0 %3380 }
 0x309   :  { %9978 = vst [vmem:[#allocation71_spill] sm:$0xff] %v8372_v59  ;;  %4004 = vperm.xlu1 %5879, %v9979_v34   ;;  %3999 = vperm.xlu0 %5878, %v9980_v19   ;;  %v9992_v34 = vld [vmem:[#allocation70_spill] sm:$0xff]  ;;  %v9993_v19 = vld [vmem:[#allocation20_spill] sm:$0xff] }
 0x30c   :  { %v8376_v28 = vpop.permute.xlu1 %3419  ;;  %v8378_v41 = vpop.permute.xlu0 %3414 }
 0x30d   :  { %4052 = vperm.xlu1 %5879, %v4049_v44   ;;  %4009 = vperm.xlu0 %5878, %v9981_v30  }
 0x310   :  { %v8381_v55 = vpop.permute.xlu1 %3429  ;;  %v8383_v40 = vpop.permute.xlu0 %3424 }
 0x311   :  { %4086 = vperm.xlu1 %5879, %v9982_v17   ;;  %4081 = vperm.xlu0 %5878, %v9983_v32   ;;  %v9994_v17 = vld [vmem:[#allocation74_spill] sm:$0xff]  ;;  %v9995_v32 = vld [vmem:[#allocation65_spill] sm:$0xff] }
 0x314   :  { %v8387_v57 = vpop.permute.xlu1 %3439  ;;  %v8389_v3 = vpop.permute.xlu0 %3434 }
 0x315   :  { %4096 = vperm.xlu1 %5879, %v9984_v0   ;;  %4091 = vperm.xlu0 %5878, %v9985_v14  }
 0x318   :  { %v8393_v50 = vpop.permute.xlu1 %3449  ;;  %v8395_v48 = vpop.permute.xlu0 %3444 }
 0x319   :  { %4106 = vperm.xlu1 %5879, %v9986_v15   ;;  %4101 = vperm.xlu0 %5878, %v9987_v39   ;;  %v9996_v39 = vld [vmem:[#allocation108_spill] sm:$0xff] }
 0x31c   :  { %v8399_v24 = vpop.permute.xlu1 %3459  ;;  %v8401_v49 = vpop.permute.xlu0 %3454 }
 0x31d   :  { %4116 = vperm.xlu1 %5879, %v9988_v11   ;;  %4111 = vperm.xlu0 %5878, %v9989_v47   ;;  %v9997_v47 = vld [vmem:[#allocation69_spill] sm:$0xff] }
 0x320   :  { %v8405_v42 = vpop.permute.xlu1 %3469  ;;  %v8407_v6 = vpop.permute.xlu0 %3464 }
 0x321   :  { %4126 = vperm.xlu1 %5879, %v9990_v1   ;;  %4121 = vperm.xlu0 %5878, %v9991_v37   ;;  %v9998_v1 = vld [vmem:[#allocation25_spill] sm:$0xff] }
 0x324   :  { %v8411_v35 = vpop.permute.xlu1 %3479  ;;  %v8413_v36 = vpop.permute.xlu0 %3474 }
 0x325   :  { %4136 = vperm.xlu1 %5879, %v9992_v34   ;;  %4131 = vperm.xlu0 %5878, %v9993_v19   ;;  %v9999_v19 = vld [vmem:[#allocation56_spill] sm:$0xff] }
 0x328   :  { %v8417_v44 = vpop.permute.xlu1 %3525  ;;  %v8419_v30 = vpop.permute.xlu0 %3484 }
 0x329   :  { %4146 = vperm.xlu1 %5879, %v9994_v17   ;;  %4141 = vperm.xlu0 %5878, %v9995_v32   ;;  %v10000_v32 = vld [vmem:[#allocation110_spill] sm:$0xff] }
 0x32b   :  { %v5734_v0 = vpop.f32.mrf.mxu1 }
 0x32c   :  { %v8423_v14 = vpop.permute.xlu1 %3535  ;;  %v8425_v15 = vpop.permute.xlu0 %3530  ;;  %v2502_v59 = vadd.f32 %v5734_v0, %v9999_v19  ;;  %v10004_v19 = vld [vmem:[#allocation112_spill] sm:$0xff] }
 0x32d   :  { %4156 = vperm.xlu1 %5879, %v9996_v39   ;;  %v2493_v11 = vpop.f32.mrf.mxu1  ;;  %4151 = vperm.xlu0 %5878, %v9997_v47  }
 0x32e   :  { %v2494_v37 = vadd.f32 %v2493_v11, %v9998_v1  ;;  %v2558_v9 = vmax.f32 %v2502_v59, 0.0 }
 0x32f   :  { %v5735_v34 = vpop.f32.mrf.mxu1 }
 0x330   :  { %v8431_v29 = vpop.permute.xlu1 %3545  ;;  %v8433_v17 = vpop.permute.xlu0 %3540  ;;  %v2556_v58 = vmax.f32 %v2494_v37, 0.0  ;;  %v2505_v39 = vadd.f32 %v5735_v34, %v10002_v10  ;;  %v10007_v37 = vld [vmem:[#allocation88_spill] sm:$0xff] }
 0x331   :  { %4202 = vperm.xlu1 %5879, %v10000_v32   ;;  %v2496_v4 = vpop.f32.mrf.mxu1  ;;  %4197 = vperm.xlu0 %5878, %v10001_v62   ;;  %v10006_v32 = vld [vmem:[#allocation87_spill] sm:$0xff]  ;;  %v10008_v10 = vld [vmem:[#allocation60_spill] sm:$0xff] }
 0x332   :  { %v2497_v33 = vadd.f32 %v2496_v4, %v10003_v52  ;;  %v2668_v18 = vmul.f32 %v10006_v32, %v2556_v58  ;;  %v2559_v62 = vmax.f32 %v2505_v39, 0.0  ;;  %v10009_v4 = vld [vmem:[#allocation91_spill] sm:$0xff]  ;;  %v10013_v39 = vld [vmem:[#allocation41_spill] sm:$0xff] }
 0x333   :  { %v5738_v47 = vpop.f32.mrf.mxu1  ;;  %v2670_v59 = vmul.f32 %v10009_v4, %v2558_v9  ;;  %v10012_v58 = vld [vmem:[#allocation111_spill] sm:$0xff] }
 0x334   :  { %v2557_v11 = vmax.f32 %v2497_v33, 0.0  ;;  %v8439_v1 = vpop.permute.xlu1 %3555  ;;  %v8441_v0 = vpop.permute.xlu0 %3550  ;;  %v2518_v38 = vadd.f32 %v5738_v47, %v10010_v60  ;;  %v10016_v60 = vld [vmem:[#allocation44_spill] sm:$0xff] }
 0x335   :  { %4212 = vperm.xlu1 %5879, %v10004_v19   ;;  %v2509_v46 = vpop.f32.mrf.mxu1  ;;  %4207 = vperm.xlu0 %5878, %v10005_v31  }
 0x336   :  { %v2669_v53 = vmul.f32 %v10007_v37, %v2557_v11  ;;  %v2510_v34 = vadd.f32 %v2509_v46, %v10008_v10  ;;  %v2671_v11 = vmul.f32 %v10013_v39, %v2559_v62  ;;  %v10014_v46 = vld [vmem:[#allocation63_spill] sm:$0xff] }
 0x337   :  { %v5739_v52 = vpop.f32.mrf.mxu1  ;;  %v10015_v10 = vld [vmem:[#allocation59_spill] sm:$0xff] }
 0x338   :  { %v2684_v33 = vadd.f32 %v2669_v53, %v2668_v18  ;;  %v2560_v63 = vmax.f32 %v2510_v34, 0.0  ;;  %v8450_v43 = vpop.permute.xlu1 %3565  ;;  %v8452_v19 = vpop.permute.xlu0 %3560  ;;  %v2521_v37 = vadd.f32 %v5739_v52, %v10014_v46  ;;  %v2562_v53 = vmax.f32 %v2518_v38, 0.0  ;;  %v10019_v52 = vld [vmem:[#allocation46_spill] sm:$0xff]  ;;  %v10021_v46 = vld [vmem:[#allocation48_spill] sm:$0xff] }
 0x339   :  { %4222 = vperm.xlu1 %5879, %v10011_v13   ;;  %v2512_v31 = vpop.f32.mrf.mxu1  ;;  %4217 = vperm.xlu0 %5878, %v10012_v58   ;;  %v10017_v13 = vld [vmem:[#allocation36_spill] sm:$0xff] }
 0x33a   :  { %v2685_v32 = vadd.f32 %v2684_v33, %v2670_v59  ;;  %v2513_v9 = vadd.f32 %v2512_v31, %v10015_v10  ;;  %v2672_v47 = vmul.f32 %v10016_v60, %v2560_v63  ;;  %v2563_v59 = vmax.f32 %v2521_v37, 0.0  ;;  %v10020_v31 = vld [vmem:[#allocation68_spill] sm:$0xff] }
 0x33b   :  { %v5742_v18 = vpop.f32.mrf.mxu1  ;;  %v2674_v63 = vmul.f32 %v10021_v46, %v2562_v53 }
 0x33c   :  { %v2686_v34 = vadd.f32 %v2685_v32, %v2671_v11  ;;  %v2561_v4 = vmax.f32 %v2513_v9, 0.0  ;;  %v8460_v56 = vpop.permute.xlu1 %3575  ;;  %v8462_v7 = vpop.permute.xlu0 %3570  ;;  %v10022_v32 = vld [vmem:[#allocation67_spill] sm:$0xff] }
 0x33d   :  { %4232 = vperm.xlu1 %5879, %v10017_v13   ;;  %v2525_v58 = vpop.f32.mrf.mxu1  ;;  %4227 = vperm.xlu0 %5878, %v10018_v22   ;;  %v2534_v10 = vadd.f32 %v5742_v18, %v10022_v32  ;;  %v10025_v22 = vld [vmem:[#allocation24_spill] sm:$0xff]  ;;  %v8478_v18 = vld [vmem:[%s9321_s0 + $0x5] ss:$0 sm:$0xff] }
 0x33e   :  { %v2687_v62 = vadd.f32 %v2686_v34, %v2672_v47  ;;  %v2673_v33 = vmul.f32 %v10019_v52, %v2561_v4  ;;  %v2526_v39 = vadd.f32 %v2525_v58, %v10020_v31  ;;  %v2675_v37 = vmul.f32 %v10025_v22, %v2563_v59  ;;  %v10026_v34 = vld [vmem:[#allocation77_spill] sm:$0xff]  ;;  %v10027_v58 = vld [vmem:[#allocation76_spill] sm:$0xff] }
 0x33f   :  { %v5743_v38 = vpop.f32.mrf.mxu1  ;;  %v2566_v53 = vmax.f32 %v2534_v10, 0.0  ;;  %v3501_v59 = vmul.f32 %v8478_v18, %v8399_v24  ;;  %v10029_v32 = vld [vmem:[#allocation93_spill] sm:$0xff]  ;;  %v3502_v27 = vmul.f32 %v8478_v18, %v8407_v6  ;;  %v8524_v6 = vld [vmem:[%s9323_s2 + $0x70] sm:$0xff] }
 0x340   :  { %v2688_v11 = vadd.f32 %v2687_v62, %v2673_v33  ;;  %v2564_v9 = vmax.f32 %v2526_v39, 0.0  ;;  %v3586_v60 = vpop.permute.xlu1 %3585  ;;  %v3581_v8 = vpop.permute.xlu0 %3580  ;;  %v2537_v4 = vadd.f32 %v5743_v38, %v10026_v34  ;;  %v10028_v62 = vld [vmem:[#allocation19_spill] sm:$0xff]  ;;  %v3505_v38 = vmul.f32 %v8478_v18, %v8411_v35  ;;  %v8494_v24 = vld [vmem:[%s9323_s2 + $0x68] sm:$0xff]  ;;  %v8499_v35 = vld [vmem:[%s9323_s2 + $0x60] sm:$0xff] }
 0x341   :  { %4242 = vperm.xlu1 %5879, %v10023_v20   ;;  %v2528_v13 = vpop.f32.mrf.mxu1  ;;  %4237 = vperm.xlu0 %5878, %v10024_v21   ;;  %v3506_v34 = vmul.f32 %v8478_v18, %v8419_v30 }
 0x342   :  { %v2689_v47 = vadd.f32 %v2688_v11, %v2674_v63  ;;  %v2529_v52 = vadd.f32 %v2528_v13, %v10027_v58  ;;  %v2676_v33 = vmul.f32 %v10028_v62, %v2564_v9  ;;  %v3504_v63 = vmul.f32 %v8478_v18, %v8413_v36  ;;  %v10030_v13 = vld [vmem:[#allocation101_spill] sm:$0xff] }
 0x343   :  { %v5746_v31 = vpop.f32.mrf.mxu1  ;;  %v2567_v9 = vmax.f32 %v2537_v4, 0.0  ;;  %v3503_v36 = vmul.f32 %v8478_v18, %v8405_v42  ;;  %v10032_v4 = vld [vmem:[#allocation83_spill] sm:$0xff] }
 0x344   :  { %v2690_v20 = vadd.f32 %v2689_v47, %v2675_v37  ;;  %v2565_v39 = vmax.f32 %v2529_v52, 0.0  ;;  %v3596_v46 = vpop.permute.xlu1 %3595  ;;  %v3591_v21 = vpop.permute.xlu0 %3590  ;;  %v10031_v37 = vld [vmem:[#allocation79_spill] sm:$0xff]  ;;  %v2550_v58 = vadd.f32 %v5746_v31, %v10032_v4  ;;  %v10035_v31 = vld [vmem:[#allocation50_spill] sm:$0xff]  ;;  %v10038_v4 = vld [vmem:[#allocation49_spill] sm:$0xff] }
 0x345   :  { %4252 = vperm.xlu1 %5879, %v8203_v45   ;;  %v2541_v11 = vpop.f32.mrf.mxu1  ;;  %4247 = vperm.xlu0 %5878, %v10029_v32   ;;  %v3617_v52 = vadd.f32 %v3596_v46, %v3505_v38  ;;  %v3615_v16 = vadd.f32 %v3586_v60, %v3503_v36  ;;  %v2679_v46 = vmul.f32 %v10035_v31, %v2567_v9 }
 0x346   :  { %v2691_v10 = vadd.f32 %v2690_v20, %v2676_v33  ;;  %v2677_v22 = vmul.f32 %v10030_v13, %v2565_v39  ;;  %v2542_v47 = vadd.f32 %v2541_v11, %v10031_v37  ;;  %v10033_v33 = vld [vmem:[#allocation45_spill] sm:$0xff]  ;;  %v3616_v11 = vadd.f32 %v3591_v21, %v3504_v63  ;;  %v10037_v21 = vld [vmem:[#allocation80_spill] sm:$0xff] }
 0x347   :  { %v5747_v62 = vpop.f32.mrf.mxu1  ;;  %v2678_v20 = vmul.f32 %v10033_v33, %v2566_v53  ;;  %v10036_v53 = vld [vmem:[#allocation84_spill] sm:$0xff]  ;;  %v3614_v60 = vadd.f32 %v3581_v8, %v3502_v27  ;;  %v3633_v36 = vmax.f32 %v3617_v52, 0.0  ;;  %v3613_v31 = vadd.f32 %v8460_v56, %v3501_v59 }
 0x348   :  { %v2692_v39 = vadd.f32 %v2691_v10, %v2677_v22  ;;  %v2568_v32 = vmax.f32 %v2542_v47, 0.0  ;;  %v8507_v13 = vpop.permute.xlu1 %3677  ;;  %v3601_v37 = vpop.permute.xlu0 %3600  ;;  %v2553_v10 = vadd.f32 %v5747_v62, %v10036_v53  ;;  %v8519_v22 = vld [vmem:[%s9323_s2 + $0x78] sm:$0xff]  ;;  %v2570_v47 = vmax.f32 %v2550_v58, 0.0 }
 0x349   :  { %10034 = vst [vmem:[#allocation82_spill] sm:$0xff] %v8507_v13  ;;  %v3618_v42 = vadd.f32 %v3601_v37, %v3506_v34  ;;  %4262 = vperm.xlu1 %5879, %v8494_v24   ;;  %v2544_v30 = vpop.f32.mrf.mxu1  ;;  %4257 = vperm.xlu0 %5878, %v8499_v35   ;;  %v3632_v9 = vmax.f32 %v3616_v11, 0.0  ;;  %v3631_v27 = vmax.f32 %v3615_v16, 0.0  ;;  %v10041_v11 = vld [vmem:[#allocation32_spill] sm:$0xff]  ;;  %v3499_v56 = vmul.f32 %v8478_v18, %v8393_v50 }
 0x34a   :  { %v2693_v38 = vadd.f32 %v2692_v39, %v2678_v20  ;;  %v2545_v63 = vadd.f32 %v2544_v30, %v10037_v21  ;;  %v2680_v33 = vmul.f32 %v10038_v4, %v2568_v32  ;;  %v3500_v30 = vmul.f32 %v8478_v18, %v8401_v49  ;;  %v8545_v49 = vld [vmem:[%s9325_s4] sm:$0xff]  ;;  %v8564_v4 = vld [vmem:[%s9325_s4 + $0x18] sm:$0xff] }
 0x34b   :  { %v3634_v34 = vmax.f32 %v3618_v42, 0.0  ;;  %v2571_v52 = vmax.f32 %v2553_v10, 0.0  ;;  %v8540_v42 = vld [vmem:[%s9325_s4 + $0x8] sm:$0xff]  ;;  %v3630_v16 = vmax.f32 %v3614_v60, 0.0  ;;  %v3629_v50 = vmax.f32 %v3613_v31, 0.0 }
 0x34c   :  { %v2694_v62 = vadd.f32 %v2693_v38, %v2679_v46  ;;  %v2569_v20 = vmax.f32 %v2545_v63, 0.0  ;;  %v8527_v39 = vpop.permute.xlu1 %3687  ;;  %v8529_v37 = vpop.permute.xlu0 %3682  ;;  %v3612_v59 = vadd.f32 %v8462_v7, %v3500_v30  ;;  %v10042_v46 = vld [vmem:[#allocation100_spill] sm:$0xff]  ;;  %v3657_v63 = vpack.c.bf16 %v3632_v9, %v3631_v27  ;;  %v10045_v60 = vld [vmem:[#allocation105_spill] sm:$0xff] }
 0x34d   :  { %10039 = vst [vmem:[#allocation81_spill] sm:$0xff] %v8527_v39  ;;  %10040 = vst [vmem:[#allocation86_spill] sm:$0xff] %v8529_v37  ;;  %4272 = vperm.xlu1 %5879, %v8519_v22   ;;  %4267 = vperm.xlu0 %5878, %v8524_v6   ;;  %v3658_v8 = vpack.c.bf16 %v3634_v34, %v3633_v36  ;;  %v2682_v38 = vmul.f32 %v10042_v46, %v2570_v47 }
 0x34e   :  { %v2695_v58 = vadd.f32 %v2694_v62, %v2680_v33  ;;  %v2681_v32 = vmul.f32 %v10041_v11, %v2569_v20  ;;  %v3498_v36 = vmul.f32 %v8478_v18, %v8395_v48  ;;  %v3611_v7 = vadd.f32 %v8450_v43, %v3499_v56  ;;  %v8569_v48 = vld [vmem:[%s9325_s4 + $0x10] sm:$0xff] }
 0x34f   :  { %5780 = vmatprep.subr.bf16.mxu1 %v3658_v8  ;;  %v2683_v34 = vmul.f32 %v10045_v60, %v2571_v52  ;;  %v3497_v9 = vmul.f32 %v8478_v18, %v8387_v57  ;;  %v3628_v33 = vmax.f32 %v3612_v59, 0.0  ;;  %v3656_v31 = vpack.c.bf16 %v3630_v16, %v3629_v50  ;;  %v8591_v52 = vld [vmem:[%s9325_s4 + $0x20] sm:$0xff] }
 0x350   :  { %v2696_v53 = vadd.f32 %v2695_v58, %v2681_v32  ;;  %v8551_v10 = vpop.permute.xlu1 %3697  ;;  %5781 = vmatpush3.bf16.msra.mxu1 %v3658_v8  ;;  %v8553_v21 = vpop.permute.xlu0 %3692  ;;  %v3610_v43 = vadd.f32 %v8452_v19, %v3498_v36  ;;  %v3496_v8 = vmul.f32 %v8478_v18, %v8389_v3  ;;  %v3627_v57 = vmax.f32 %v3611_v7, 0.0  ;;  %v8586_v19 = vld [vmem:[%s9325_s4 + $0x28] sm:$0xff] }
 0x351   :  { %10043 = vst [vmem:[#allocation85_spill] sm:$0xff] %v8551_v10  ;;  %10044 = vst [vmem:[#allocation90_spill] sm:$0xff] %v8553_v21  ;;  %4354 = vperm.xlu1 %5879, %v8540_v42   ;;  %4349 = vperm.xlu0 %5878, %v8545_v49   ;;  %v3609_v27 = vadd.f32 %v8439_v1, %v3497_v9  ;;  %v3495_v11 = vmul.f32 %v8478_v18, %v8381_v55 }
 0x352   :  { %v2697_v47 = vadd.f32 %v2696_v53, %v2682_v38  ;;  %5782 = vmatprep.subr.bf16.mxu1 %v3657_v63  ;;  %v3608_v3 = vadd.f32 %v8441_v0, %v3496_v8  ;;  %v3626_v32 = vmax.f32 %v3610_v43, 0.0  ;;  %v3655_v16 = vpack.c.bf16 %v3628_v33, %v3627_v57  ;;  %v4749_v0 = vld [vmem:[%s9322_s1 + $0x70] sm:$0xff] }
 0x353   :  { %v3494_v46 = vmul.f32 %v8478_v18, %v8383_v40  ;;  %v3607_v38 = vadd.f32 %v8431_v29, %v3495_v11  ;;  %v3625_v55 = vmax.f32 %v3609_v27, 0.0  ;;  %v3493_v36 = vmul.f32 %v8478_v18, %v8376_v28  ;;  %v10053_v33 = vld [vmem:[#allocation7_spill] sm:$0xff] }
 0x354   :  { %v2698_v62 = vadd.f32 %v2697_v47, %v2683_v34  ;;  %v8574_v20 = vpop.permute.xlu1 %3707  ;;  %5783 = vmatpush3.bf16.msra.mxu1 %v3657_v63  ;;  %v8576_v30 = vpop.permute.xlu0 %3702  ;;  %v8611_v63 = vld [vmem:[%s9325_s4 + $0x30] sm:$0xff]  ;;  %v3624_v40 = vmax.f32 %v3608_v3, 0.0  ;;  %v3492_v47 = vmul.f32 %v8478_v18, %v8378_v41 }
 0x355   :  { %10046 = vst [vmem:[#allocation89_spill] sm:$0xff] %v8574_v20  ;;  %10047 = vst [vmem:[#allocation94_spill] sm:$0xff] %v8576_v30  ;;  %4364 = vperm.xlu1 %5879, %v8564_v4   ;;  %4359 = vperm.xlu0 %5878, %v8569_v48   ;;  %v3606_v7 = vadd.f32 %v8433_v17, %v3494_v46  ;;  %v3654_v34 = vpack.c.bf16 %v3626_v32, %v3625_v55  ;;  %v3623_v43 = vmax.f32 %v3607_v38, 0.0  ;;  %v4750_v17 = vld [vmem:[%s9322_s1 + $0x78] sm:$0xff] }
 0x356   :  { %v2699_v58 = vrot.slane %v2698_v62, 4  ;;  %5784 = vmatprep.subr.bf16.mxu1 %v3656_v31  ;;  %10050 = vst [vmem:[#allocation97_spill] sm:$0xff] %v8611_v63  ;;  %v3605_v9 = vadd.f32 %v8423_v14, %v3493_v36  ;;  %v3604_v8 = vadd.f32 %v8425_v15, %v3492_v47 }
 0x357   :  { %v3622_v27 = vmax.f32 %v3606_v7, 0.0  ;;  %v5922_v7 = vld [vmem:[%s9324_s3 + $0x10] sm:$0xff]  }
 0x358   :  { %v2700_v1 = vadd.f32 %v2699_v58, %v2698_v62  ;;  %v8596_v56 = vpop.permute.xlu1 %3717  ;;  %5785 = vmatpush3.bf16.msra.mxu1 %v3656_v31  ;;  %v8598_v59 = vpop.permute.xlu0 %3712  ;;  %v2714_v62 = vrot.slane %v10053_v33, %v9932_v2  ;;  %v3491_v31 = vmul.f32 %v8478_v18, %v8370_v5  ;;  %v3653_v58 = vpack.c.bf16 %v3624_v40, %v3623_v43  ;;  %v4747_v5 = vld [vmem:[%s9322_s1 + $0x60] sm:$0xff]  ;;  %v4861_v40 = vld [vmem:[%s9323_s2 + $0x50] sm:$0xff]  ;;  %v5923_v43 = vld [vmem:[%s9324_s3 + $0x18] sm:$0xff]  }
 0x359   :  { %10048 = vst [vmem:[#allocation95_spill] sm:$0xff] %v8596_v56  ;;  %10049 = vst [vmem:[#allocation96_spill] sm:$0xff] %v8598_v59  ;;  %4374 = vperm.xlu1 %5879, %v8586_v19   ;;  %4369 = vperm.xlu0 %5878, %v8591_v52   ;;  %v3621_v3 = vmax.f32 %v3605_v9, 0.0  ;;  %v3620_v15 = vmax.f32 %v3604_v8, 0.0  ;;  %v4743_v9 = vld [vmem:[%s9322_s1 + $0x40] sm:$0xff]  ;;  %v8897_v59 = vld [vmem:[%s9326_s5 + $0x18] sm:$0xff] }
 0x35a   :  { %v2701_v53 = vrot.slane %v2700_v1, 2  ;;  %5786 = vmatprep.subr.bf16.mxu1 %v3655_v16  ;;  %v3603_v11 = vadd.f32 %v8417_v44, %v3491_v31  ;;  %v4748_v44 = vld [vmem:[%s9322_s1 + $0x68] sm:$0xff]  ;;  %v5924_v33 = vld [vmem:[%s9324_s3 + $0x20] sm:$0xff]   ;;  %10085 = vst [vmem:[#allocation112_spill] sm:$0xff] %v8897_v59 }
 0x35b   :  { %v4744_v31 = vld [vmem:[%s9322_s1 + $0x48] sm:$0xff] }
 0x35c   :  { %v2702_v50 = vadd.f32 %v2701_v53, %v2700_v1  ;;  %v8616_v29 = vpop.permute.xlu1 %3727  ;;  %5787 = vmatpush3.bf16.msra.mxu1 %v3655_v16  ;;  %v8618_v60 = vpop.permute.xlu0 %3722  ;;  %v3652_v16 = vpack.c.bf16 %v3622_v27, %v3621_v3  ;;  %v5921_v53 = vld [vmem:[%s9324_s3 + $0x8] sm:$0xff]  }
 0x35d   :  { %10051 = vst [vmem:[#allocation23_spill] sm:$0xff] %v8616_v29  ;;  %10052 = vst [vmem:[#allocation99_spill] sm:$0xff] %v8618_v60  ;;  %4823 = vperm.xlu1 %5879, %v4749_v0   ;;  %4379 = vperm.xlu0 %5878, %v8611_v63  }
 0x35e   :  { %v2703_v28 = vrot.slane %v2702_v50, 1  ;;  %5788 = vmatprep.subr.bf16.mxu1 %v3654_v34 }
 0x360   :  { %v2704_v57 = vadd.f32 %v2703_v28, %v2702_v50  ;;  %v8632_v41 = vpop.permute.xlu1 %3737  ;;  %5789 = vmatpush3.bf16.msra.mxu1 %v3654_v34  ;;  %v8634_v14 = vpop.permute.xlu0 %3732  ;;  %v4746_v50 = vld [vmem:[%s9322_s1 + $0x58] sm:$0xff] }
 0x361   :  { %10054 = vst [vmem:[#allocation28_spill] sm:$0xff] %v8632_v41  ;;  %10055 = vst [vmem:[#allocation43_spill] sm:$0xff] %v8634_v14  ;;  %4939 = vperm.xlu1 %5879, %v8524_v6   ;;  %4828 = vperm.xlu0 %5878, %v4750_v17   ;;  %v3619_v6 = vmax.f32 %v3603_v11, 0.0  ;;  %v8878_v14 = vld [vmem:[%s9326_s5 + $0x8] sm:$0xff] }
 0x362   :  { %v2715_v32 = vadd.f32 %v2714_v62, %v2704_v57  ;;  %5790 = vmatprep.subr.bf16.mxu1 %v3653_v58  ;;  %v4859_v62 = vld [vmem:[%s9323_s2 + $0x40] sm:$0xff]  ;;  %v4860_v57 = vld [vmem:[%s9323_s2 + $0x48] sm:$0xff] }
 0x363   :  { %v3651_v55 = vpack.c.bf16 %v3620_v15, %v3619_v6  ;;  %v4742_v15 = vld [vmem:[%s9322_s1 + $0x38] sm:$0xff] }
 0x364   :  { %5950 = vtanh.f32 %v2715_v32  ;;  %v8641_v18 = vpop.permute.xlu1 %3747  ;;  %5791 = vmatpush3.bf16.msra.mxu1 %v3653_v58  ;;  %v8643_v1 = vpop.permute.xlu0 %3742  ;;  %v5925_v58 = vld [vmem:[%s9324_s3 + $0x28] sm:$0xff]   ;;  %v5926_v32 = vld [vmem:[%s9324_s3 + $0x30] sm:$0xff]  }
 0x365   :  { %10056 = vst [vmem:[#allocation103_spill] sm:$0xff] %v8641_v18  ;;  %10057 = vst [vmem:[#allocation98_spill] sm:$0xff] %v8643_v1  ;;  %4813 = vperm.xlu1 %5879, %v4747_v5   ;;  %4944 = vperm.xlu0 %5878, %v8519_v22   ;;  %v4745_v22 = vld [vmem:[%s9322_s1 + $0x50] sm:$0xff]  ;;  %v8850_v1 = vld [vmem:[%s9325_s4 + $0x60] sm:$0xff] }
 0x366   :  { %5792 = vmatprep.subr.bf16.mxu1 %v3652_v16  ;;  %v4857_v5 = vld [vmem:[%s9323_s2 + $0x30] sm:$0xff]  ;;  %10082 = vst [vmem:[#allocation107_spill] sm:$0xff] %v8850_v1 }
 0x367   :  { %v8866_v18 = vld [vmem:[%s9325_s4 + $0x70] sm:$0xff] }
 0x368   :  { %v8649_v46 = vpop.permute.xlu1 %3934  ;;  %5793 = vmatpush3.bf16.msra.mxu1 %v3652_v16  ;;  %v8651_v38 = vpop.permute.xlu0 %3752  ;;  %10084 = vst [vmem:[#allocation29_spill] sm:$0xff] %v8866_v18 }
 0x369   :  { %10058 = vst [vmem:[#allocation31_spill] sm:$0xff] %v8649_v46  ;;  %10059 = vst [vmem:[#allocation27_spill] sm:$0xff] %v8651_v38  ;;  %4929 = vperm.xlu1 %5879, %v8499_v35   ;;  %4818 = vperm.xlu0 %5878, %v4748_v44   ;;  %v5928_v35 = vld [vmem:[%s9324_s3] sm:$0xff]   ;;  %v10089_v46 = vld [vmem:[#allocation42_spill] sm:$0xff] }
 0x36a   :  { %5794 = vmatprep.subr.bf16.mxu1 %v3651_v55  ;;  %5828 = vmatprep.mubr.bf16.mxu0 %v5928_v35  ;;  %v4739_v44 = vld [vmem:[%s9322_s1 + $0x20] sm:$0xff] }
 0x36b   :  { %v4855_v35 = vld [vmem:[%s9323_s2 + $0x20] sm:$0xff] }
 0x36c   :  { %v8660_v0 = vpop.permute.xlu1 %3944  ;;  %5795 = vmatpush3.bf16.msra.mxu1 %v3651_v55  ;;  %v8662_v36 = vpop.permute.xlu0 %3939  ;;  %v4858_v55 = vld [vmem:[%s9323_s2 + $0x38] sm:$0xff] }
 0x36d   :  { %10060 = vst [vmem:[#allocation58_spill] sm:$0xff] %v8660_v0  ;;  %10061 = vst [vmem:[#allocation47_spill] sm:$0xff] %v8662_v36  ;;  %4803 = vperm.xlu1 %5879, %v4745_v22   ;;  %4934 = vperm.xlu0 %5878, %v8494_v24   ;;  %v5927_v22 = vld [vmem:[%s9324_s3 + $0x38] sm:$0xff]  }
 0x36f   :  { %5797 = vmatmul.mubr.bf16.vlgmr.msra.gmra.mxu1 %v5921_v53 }
 0x370   :  { %v8677_v34 = vpop.permute.xlu1 %3954  ;;  %v8679_v47 = vpop.permute.xlu0 %3949  ;;  %5800 = vmatprep.mubr.bf16.mxu1 %v5922_v7 }
 0x371   :  { %10062 = vst [vmem:[#allocation102_spill] sm:$0xff] %v8677_v34  ;;  %10063 = vst [vmem:[#allocation57_spill] sm:$0xff] %v8679_v47  ;;  %v5951_v24 = vpop.eup %5950  ;;  %4919 = vperm.xlu1 %5879, %v4861_v40   ;;  %4808 = vperm.xlu0 %5878, %v4746_v50   ;;  %v4740_v40 = vld [vmem:[%s9322_s1 + $0x28] sm:$0xff] }
 0x372   :  { %2717 = vst [vmem:[#allocation3 + $0x3] sm:$0x1] %v5951_v24 }
 0x374   :  { %v8687_v28 = vpop.permute.xlu1 %3964  ;;  %v8689_v17 = vpop.permute.xlu0 %3959 }
 0x375   :  { %10064 = vst [vmem:[#allocation12_spill] sm:$0xff] %v8687_v28  ;;  %10065 = vst [vmem:[#allocation62_spill] sm:$0xff] %v8689_v17  ;;  %4793 = vperm.xlu1 %5879, %v4743_v9   ;;  %4924 = vperm.xlu0 %5878, %v8203_v45   ;;  %v4741_v45 = vld [vmem:[%s9322_s1 + $0x30] sm:$0xff] }
 0x376   :  { %v4737_v9 = vld [vmem:[%s9322_s1 + $0x10] sm:$0xff] }
 0x377   :  { %5801 = vmatmul.mubr.bf16.gmra.mxu1 %v5923_v43  ;;  %v4856_v43 = vld [vmem:[%s9323_s2 + $0x28] sm:$0xff] }
 0x378   :  { %v8701_v8 = vpop.permute.xlu1 %3974  ;;  %v8703_v27 = vpop.permute.xlu0 %3969  ;;  %5804 = vmatprep.mubr.bf16.mxu1 %v5924_v33 }
 0x379   :  { %10066 = vst [vmem:[#allocation8_spill] sm:$0xff] %v8701_v8  ;;  %10067 = vst [vmem:[#allocation15_spill] sm:$0xff] %v8703_v27  ;;  %4909 = vperm.xlu1 %5879, %v4859_v62   ;;  %4798 = vperm.xlu0 %5878, %v4744_v31   ;;  %v4853_v31 = vld [vmem:[%s9323_s2 + $0x10] sm:$0xff]  ;;  %v8883_v27 = vld [vmem:[%s9326_s5] sm:$0xff] }
 0x37c   :  { %v8714_v11 = vpop.permute.xlu1 %3984  ;;  %v8716_v3 = vpop.permute.xlu0 %3979 }
 0x37d   :  { %10068 = vst [vmem:[#allocation104_spill] sm:$0xff] %v8714_v11  ;;  %10069 = vst [vmem:[#allocation66_spill] sm:$0xff] %v8716_v3  ;;  %4783 = vperm.xlu1 %5879, %v4741_v45   ;;  %4914 = vperm.xlu0 %5878, %v4860_v57   ;;  %v4738_v45 = vld [vmem:[%s9322_s1 + $0x18] sm:$0xff] }
 0x37f   :  { %5805 = vmatmul.mubr.bf16.gmra.mxu1 %v5925_v58 }
 0x380   :  { %v8727_v16 = vpop.permute.xlu1 %3994  ;;  %v8729_v6 = vpop.permute.xlu0 %3989  ;;  %5808 = vmatprep.mubr.bf16.mxu1 %v5926_v32  ;;  %v4735_v32 = vld [vmem:[%s9322_s1] sm:$0xff] }
 0x381   :  { %10070 = vst [vmem:[#allocation11_spill] sm:$0xff] %v8727_v16  ;;  %10071 = vst [vmem:[#allocation16_spill] sm:$0xff] %v8729_v6  ;;  %4899 = vperm.xlu1 %5879, %v4857_v5   ;;  %4788 = vperm.xlu0 %5878, %v4742_v15   ;;  %v4854_v5 = vld [vmem:[%s9323_s2 + $0x18] sm:$0xff]  ;;  %v8845_v16 = vld [vmem:[%s9325_s4 + $0x68] sm:$0xff] }
 0x382   :  { %10081 = vst [vmem:[#allocation110_spill] sm:$0xff] %v8845_v16  ;;  %v8861_v6 = vld [vmem:[%s9325_s4 + $0x78] sm:$0xff] }
 0x383   :  { %10083 = vst [vmem:[#allocation55_spill] sm:$0xff] %v8861_v6 }
 0x384   :  { %v8740_v53 = vpop.permute.xlu1 %4004  ;;  %v8742_v7 = vpop.permute.xlu0 %3999 }
 0x385   :  { %10072 = vst [vmem:[#allocation61_spill] sm:$0xff] %v8740_v53  ;;  %10073 = vst [vmem:[#allocation70_spill] sm:$0xff] %v8742_v7  ;;  %4773 = vperm.xlu1 %5879, %v4739_v44   ;;  %4904 = vperm.xlu0 %5878, %v4858_v55   ;;  %v4851_v55 = vld [vmem:[%s9323_s2] sm:$0xff] }
 0x387   :  { %5809 = vmatmul.mubr.bf16.gmra.mxu1 %v5927_v22  ;;  %v4736_v22 = vld [vmem:[%s9322_s1 + $0x8] sm:$0xff] }
 0x388   :  { %v8750_v50 = vpop.permute.xlu1 %4052  ;;  %v8752_v24 = vpop.permute.xlu0 %4009 }
 0x389   :  { %10074 = vst [vmem:[#allocation20_spill] sm:$0xff] %v8750_v50  ;;  %10075 = vst [vmem:[#allocation74_spill] sm:$0xff] %v8752_v24  ;;  %4889 = vperm.xlu1 %5879, %v4855_v35   ;;  %4778 = vperm.xlu0 %5878, %v4740_v40   ;;  %v5936_v50 = vld [vmem:[%s9324_s3] sm:$0xff]   ;;  %v8834_v24 = vld [vmem:[%s9325_s4 + $0x50] sm:$0xff] }
 0x38a   :  { %10080 = vst [vmem:[#allocation56_spill] sm:$0xff] %v8834_v24  ;;  %5860 = vmatprep.mubr.bf16.mxu1 %v5936_v50 }
 0x38c   :  { %v8760_v33 = vpop.permute.xlu1 %4086  ;;  %v8762_v62 = vpop.permute.xlu0 %4081 }
 0x38d   :  { %4763 = vperm.xlu1 %5879, %v4737_v9   ;;  %4894 = vperm.xlu0 %5878, %v4856_v43   ;;  %v8797_v9 = vld [vmem:[%s9325_s4 + $0x38] sm:$0xff]  ;;  %v4852_v43 = vld [vmem:[%s9323_s2 + $0x8] sm:$0xff] }
 0x38e   :  { %10076 = vst [vmem:[#allocation65_spill] sm:$0xff] %v8797_v9 }
 0x390   :  { %v8770_v57 = vpop.permute.xlu1 %4096  ;;  %v8772_v58 = vpop.permute.xlu0 %4091 }
 0x391   :  { %4879 = vperm.xlu1 %5879, %v4853_v31   ;;  %4768 = vperm.xlu0 %5878, %v4738_v45  }
 0x394   :  { %v8780_v15 = vpop.permute.xlu1 %4106  ;;  %v8782_v44 = vpop.permute.xlu0 %4101 }
 0x395   :  { %4753 = vperm.xlu1 %5879, %v4735_v32   ;;  %4884 = vperm.xlu0 %5878, %v4854_v5   ;;  %v8810_v32 = vld [vmem:[%s9325_s4 + $0x48] sm:$0xff]  ;;  %v8815_v5 = vld [vmem:[%s9325_s4 + $0x40] sm:$0xff] }
 0x396   :  { %10077 = vst [vmem:[#allocation108_spill] sm:$0xff] %v8810_v32  ;;  %10078 = vst [vmem:[#allocation69_spill] sm:$0xff] %v8815_v5 }
 0x398   :  { %v8790_v35 = vpop.permute.xlu1 %4116  ;;  %v8792_v40 = vpop.permute.xlu0 %4111 }
 0x399   :  { %4869 = vperm.xlu1 %5879, %v4851_v55   ;;  %4758 = vperm.xlu0 %5878, %v4736_v22  }
 0x39c   :  { %v8802_v31 = vpop.permute.xlu1 %4126  ;;  %v8804_v45 = vpop.permute.xlu0 %4121 }
 0x39d   :  { %4384 = vperm.xlu1 %5879, %v8797_v9   ;;  %4874 = vperm.xlu0 %5878, %v4852_v43   ;;  %v8829_v43 = vld [vmem:[%s9325_s4 + $0x58] sm:$0xff] }
 0x39e   :  { %10079 = vst [vmem:[#allocation25_spill] sm:$0xff] %v8829_v43 }
 0x3a0   :  { %v8817_v55 = vpop.permute.xlu1 %4136  ;;  %v8819_v22 = vpop.permute.xlu0 %4131 }
 0x3a1   :  { %4394 = vperm.xlu1 %5879, %v8810_v32   ;;  %4389 = vperm.xlu0 %5878, %v8815_v5  }
 0x3a4   :  { %v8836_v53 = vpop.permute.xlu1 %4146  ;;  %v8838_v7 = vpop.permute.xlu0 %4141 }
 0x3a5   :  { %4404 = vperm.xlu1 %5879, %v8829_v43   ;;  %4399 = vperm.xlu0 %5878, %v8834_v24   ;;  %v10098_v43 = vld [vmem:[#allocation53_spill] sm:$0xff] }
 0x3a8   :  { %v8852_v38 = vpop.permute.xlu1 %4156  ;;  %v8854_v50 = vpop.permute.xlu0 %4151 }
 0x3a9   :  { %4414 = vperm.xlu1 %5879, %v8845_v16   ;;  %4409 = vperm.xlu0 %5878, %v8850_v1   ;;  %v10093_v16 = vld [vmem:[#allocation34_spill] sm:$0xff] }
 0x3ab   :  { %v5766_v11 = vpop.f32.mrf.mxu0 }
 0x3ac   :  { %v8868_v41 = vpop.permute.xlu1 %4202  ;;  %v8870_v3 = vpop.permute.xlu0 %4197  ;;  %v3174_v28 = vadd.f32 %v5766_v11, %v8231_v25  ;;  %v8902_v25 = vld [vmem:[%s9326_s5 + $0x10] sm:$0xff] }
 0x3ad   :  { %4424 = vperm.xlu1 %5879, %v8861_v6   ;;  %4419 = vperm.xlu0 %5878, %v8866_v18   ;;  %v3165_v8 = vpop.f32.mrf.mxu0  ;;  %10086 = vst [vmem:[#allocation109_spill] sm:$0xff] %v8902_v25  ;;  %v10092_v6 = vld [vmem:[#allocation51_spill] sm:$0xff] }
 0x3ae   :  { %v3166_v60 = vadd.f32 %v3165_v8, %v8217_v23  ;;  %v3230_v47 = vmax.f32 %v3174_v28, 0.0  ;;  %v8921_v28 = vld [vmem:[%s9326_s5 + $0x20] sm:$0xff] }
 0x3af   :  { %v5767_v29 = vpop.f32.mrf.mxu0  ;;  %10088 = vst [vmem:[#allocation88_spill] sm:$0xff] %v8921_v28 }
 0x3b0   :  { %v8886_v56 = vpop.permute.xlu1 %4212  ;;  %v8888_v17 = vpop.permute.xlu0 %4207  ;;  %v3228_v8 = vmax.f32 %v3166_v60, 0.0  ;;  %v3177_v34 = vadd.f32 %v5767_v29, %v8229_v51  ;;  %v3342_v37 = vmul.f32 %v10089_v46, %v3230_v47  ;;  %v8942_v47 = vld [vmem:[%s9326_s5 + $0x30] sm:$0xff] }
 0x3b1   :  { %4611 = vperm.xlu1 %5879, %v8878_v14   ;;  %4606 = vperm.xlu0 %5878, %v8883_v27   ;;  %v3168_v23 = vpop.f32.mrf.mxu0  ;;  %10095 = vst [vmem:[#allocation91_spill] sm:$0xff] %v8942_v47 }
 0x3b2   :  { %v3169_v30 = vadd.f32 %v3168_v23, %v8215_v12  ;;  %v3340_v51 = vmul.f32 %v8303_v26, %v3228_v8  ;;  %v3231_v29 = vmax.f32 %v3177_v34, 0.0  ;;  %v10090_v26 = vld [vmem:[#allocation9_spill] sm:$0xff] }
 0x3b3   :  { %v5770_v11 = vpop.f32.mrf.mxu0 }
 0x3b4   :  { %v3229_v20 = vmax.f32 %v3169_v30, 0.0  ;;  %v8904_v0 = vpop.permute.xlu1 %4222  ;;  %v8906_v60 = vpop.permute.xlu0 %4217  ;;  %v8916_v30 = vld [vmem:[%s9326_s5 + $0x28] sm:$0xff]  ;;  %v3190_v34 = vadd.f32 %v5770_v11, %v10090_v26 }
 0x3b5   :  { %4621 = vperm.xlu1 %5879, %v8897_v59   ;;  %4616 = vperm.xlu0 %5878, %v8902_v25   ;;  %v3181_v12 = vpop.f32.mrf.mxu0  ;;  %10087 = vst [vmem:[#allocation87_spill] sm:$0xff] %v8916_v30 }
 0x3b6   :  { %v3341_v23 = vmul.f32 %v8301_v54, %v3229_v20  ;;  %v3182_v10 = vadd.f32 %v3181_v12, %v8244_v61  ;;  %v10091_v12 = vld [vmem:[#allocation18_spill] sm:$0xff] }
 0x3b7   :  { %v5771_v36 = vpop.f32.mrf.mxu0  ;;  %v3343_v39 = vmul.f32 %v10091_v12, %v3231_v29  ;;  %v10097_v12 = vld [vmem:[#allocation40_spill] sm:$0xff] }
 0x3b8   :  { %v3356_v21 = vadd.f32 %v3341_v23, %v3340_v51  ;;  %v3232_v8 = vmax.f32 %v3182_v10, 0.0  ;;  %v8925_v54 = vpop.permute.xlu1 %4232  ;;  %v8927_v61 = vpop.permute.xlu0 %4227  ;;  %v3193_v18 = vadd.f32 %v5771_v36, %v10092_v6  ;;  %v8937_v10 = vld [vmem:[%s9326_s5 + $0x38] sm:$0xff]  ;;  %v3234_v51 = vmax.f32 %v3190_v34, 0.0  ;;  %v10096_v23 = vld [vmem:[#allocation17_spill] sm:$0xff]  ;;  %v10101_v34 = vld [vmem:[#allocation6_spill] sm:$0xff] }
 0x3b9   :  { %4631 = vperm.xlu1 %5879, %v8916_v30   ;;  %4626 = vperm.xlu0 %5878, %v8921_v28   ;;  %v3184_v20 = vpop.f32.mrf.mxu0  ;;  %10094 = vst [vmem:[#allocation60_spill] sm:$0xff] %v8937_v10 }
 0x3ba   :  { %v3357_v13 = vadd.f32 %v3356_v21, %v3342_v37  ;;  %v3185_v46 = vadd.f32 %v3184_v20, %v10093_v16  ;;  %v3344_v26 = vmul.f32 %v10096_v23, %v3232_v8  ;;  %v3235_v20 = vmax.f32 %v3193_v18, 0.0  ;;  %v10102_v23 = vld [vmem:[#allocation21_spill] sm:$0xff] }
 0x3bb   :  { %v5774_v11 = vpop.f32.mrf.mxu0 }
 0x3bc   :  { %v3358_v29 = vadd.f32 %v3357_v13, %v3343_v39  ;;  %v3233_v37 = vmax.f32 %v3185_v46, 0.0  ;;  %v8945_v21 = vpop.permute.xlu1 %4242  ;;  %v8947_v36 = vpop.permute.xlu0 %4237  ;;  %v8956_v13 = vld [vmem:[%s9326_s5 + $0x48] sm:$0xff]  ;;  %v8961_v39 = vld [vmem:[%s9326_s5 + $0x40] sm:$0xff]  ;;  %v3206_v8 = vadd.f32 %v5774_v11, %v10101_v34 }
 0x3bd   :  { %4641 = vperm.xlu1 %5879, %v8937_v10   ;;  %4636 = vperm.xlu0 %5878, %v8942_v47   ;;  %v3197_v16 = vpop.f32.mrf.mxu0  ;;  %10099 = vst [vmem:[#allocation64_spill] sm:$0xff] %v8956_v13  ;;  %10100 = vst [vmem:[#allocation39_spill] sm:$0xff] %v8961_v39  ;;  %v10103_v10 = vld [vmem:[#allocation22_spill] sm:$0xff] }
 0x3be   :  { %v3359_v6 = vadd.f32 %v3358_v29, %v3344_v26  ;;  %v3345_v1 = vmul.f32 %v10097_v12, %v3233_v37  ;;  %v3198_v24 = vadd.f32 %v3197_v16, %v10098_v43  ;;  %v3346_v26 = vmul.f32 %v10102_v23, %v3234_v51  ;;  %v8970_v16 = vld [vmem:[%s9321_s0 + $0x6] ss:$0 sm:$0xff]  ;;  %v10104_v34 = vld [vmem:[#allocation54_spill] sm:$0xff] }
 0x3bf   :  { %v5775_v46 = vpop.f32.mrf.mxu0  ;;  %v3347_v47 = vmul.f32 %v10103_v10, %v3235_v20  ;;  %v10105_v51 = vld [vmem:[#allocation10_spill] sm:$0xff]  ;;  %v4174_v23 = vmul.f32 %v8970_v16, %v8817_v55  ;;  %v4173_v20 = vmul.f32 %v8970_v16, %v8819_v22  ;;  %v4175_v30 = vmul.f32 %v8970_v16, %v8838_v7 }
 0x3c0   :  { %v3360_v18 = vadd.f32 %v3359_v6, %v3345_v1  ;;  %v3236_v29 = vmax.f32 %v3198_v24, 0.0  ;;  %v4253_v37 = vpop.permute.xlu1 %4252  ;;  %v4248_v12 = vpop.permute.xlu0 %4247  ;;  %v3209_v32 = vadd.f32 %v5775_v46, %v10104_v34  ;;  %v8978_v24 = vld [vmem:[%s9326_s5 + $0x58] sm:$0xff]  ;;  %v8983_v6 = vld [vmem:[%s9326_s5 + $0x50] sm:$0xff]  ;;  %v4178_v55 = vmul.f32 %v8970_v16, %v8852_v38  ;;  %v9008_v38 = vld [vmem:[%s9326_s5 + $0x60] sm:$0xff] }
 0x3c1   :  { %4651 = vperm.xlu1 %5879, %v8956_v13   ;;  %4646 = vperm.xlu0 %5878, %v8961_v39   ;;  %v3200_v43 = vpop.f32.mrf.mxu0  ;;  %10106 = vst [vmem:[#allocation111_spill] sm:$0xff] %v8978_v24  ;;  %10107 = vst [vmem:[#allocation41_spill] sm:$0xff] %v8983_v6  ;;  %v3238_v13 = vmax.f32 %v3206_v8, 0.0  ;;  %v10108_v46 = vld [vmem:[#allocation38_spill] sm:$0xff]  ;;  %v4176_v39 = vmul.f32 %v8970_v16, %v8836_v53  ;;  %v4177_v7 = vmul.f32 %v8970_v16, %v8854_v50 }
 0x3c2   :  { %v3361_v11 = vadd.f32 %v3360_v18, %v3346_v26  ;;  %v3201_v1 = vadd.f32 %v3200_v43, %v10105_v51  ;;  %v3348_v26 = vmul.f32 %v10108_v46, %v3236_v29  ;;  %v3239_v29 = vmax.f32 %v3209_v32, 0.0  ;;  %v9003_v53 = vld [vmem:[%s9326_s5 + $0x68] sm:$0xff] }
 0x3c3   :  { %v5778_v10 = vpop.f32.mrf.mxu0  ;;  %v10112_v32 = vld [vmem:[#allocation37_spill] sm:$0xff]  ;;  %v4285_v59 = vadd.f32 %v4248_v12, %v4173_v20 }
 0x3c4   :  { %v3362_v18 = vadd.f32 %v3361_v11, %v3347_v47  ;;  %v3237_v43 = vmax.f32 %v3201_v1, 0.0  ;;  %v4263_v34 = vpop.permute.xlu1 %4262  ;;  %v4258_v51 = vpop.permute.xlu0 %4257  ;;  %v10109_v47 = vld [vmem:[#allocation26_spill] sm:$0xff]  ;;  %v10110_v1 = vld [vmem:[#allocation35_spill] sm:$0xff] }
 0x3c5   :  { %4661 = vperm.xlu1 %5879, %v8978_v24   ;;  %4656 = vperm.xlu0 %5878, %v8983_v6   ;;  %v3213_v22 = vpop.f32.mrf.mxu0  ;;  %v10111_v24 = vld [vmem:[#allocation73_spill] sm:$0xff]  ;;  %v4287_v6 = vadd.f32 %v4258_v51, %v4175_v30  ;;  %v9024_v30 = vld [vmem:[%s9326_s5 + $0x78] sm:$0xff] }
 0x3c6   :  { %v3363_v8 = vadd.f32 %v3362_v18, %v3348_v26  ;;  %v3349_v11 = vmul.f32 %v10109_v47, %v3237_v43  ;;  %v3214_v46 = vadd.f32 %v3213_v22, %v10110_v1  ;;  %v3350_v26 = vmul.f32 %v10111_v24, %v3238_v13  ;;  %v10113_v13 = vld [vmem:[#allocation30_spill] sm:$0xff] }
 0x3c7   :  { %v3222_v18 = vadd.f32 %v5778_v10, %v10112_v32  ;;  %v4288_v43 = vadd.f32 %v4263_v34, %v4176_v39  ;;  %v5779_v47 = vpop.f32.mrf.mxu0  ;;  %v9014_v22 = vadd.f32 %v4253_v37, %v4174_v23  ;;  %v3351_v24 = vmul.f32 %v10113_v13, %v3239_v29  ;;  %v10114_v39 = vld [vmem:[#allocation13_spill] sm:$0xff]  ;;  %v10115_v37 = vld [vmem:[#allocation14_spill] sm:$0xff] }
 0x3c8   :  { %v3364_v1 = vadd.f32 %v3363_v8, %v3349_v11  ;;  %v3240_v5 = vmax.f32 %v3214_v46, 0.0  ;;  %v4273_v28 = vpop.permute.xlu1 %4272  ;;  %v4268_v9 = vpop.permute.xlu0 %4267  ;;  %v3225_v34 = vadd.f32 %v5779_v47, %v10114_v39  ;;  %v10116_v8 = vld [vmem:[#allocation75_spill] sm:$0xff]  ;;  %v4172_v32 = vmul.f32 %v8970_v16, %v8802_v31 }
 0x3c9   :  { %v4290_v63 = vadd.f32 %v4273_v28, %v4178_v55  ;;  %v4289_v25 = vadd.f32 %v4268_v9, %v4177_v7  ;;  %4671 = vperm.xlu1 %5879, %v9003_v53   ;;  %4666 = vperm.xlu0 %5878, %v9008_v38   ;;  %v3216_v50 = vpop.f32.mrf.mxu0  ;;  %v9029_v9 = vld [vmem:[%s9326_s5 + $0x70] sm:$0xff]  ;;  %v3242_v28 = vmax.f32 %v3222_v18, 0.0  ;;  %v4304_v12 = vmax.f32 %v4288_v43, 0.0  ;;  %v4721_v43 = vld [vmem:[#allocation2] sm:$0x1] }
 0x3ca   :  { %v3365_v10 = vadd.f32 %v3364_v1, %v3350_v26  ;;  %v3217_v23 = vadd.f32 %v3216_v50, %v10115_v37  ;;  %v4303_v55 = vmax.f32 %v4287_v6, 0.0  ;;  %v3352_v29 = vmul.f32 %v10116_v8, %v3240_v5  ;;  %v10117_v5 = vld [vmem:[#allocation106_spill] sm:$0xff] }
 0x3cb   :  { %v4306_v20 = vmax.f32 %v4290_v63, 0.0  ;;  %v4305_v51 = vmax.f32 %v4289_v25, 0.0  ;;  %v4171_v47 = vmul.f32 %v8970_v16, %v8804_v45  ;;  %v3243_v6 = vmax.f32 %v3225_v34, 0.0 }
 0x3cc   :  { %v3366_v11 = vadd.f32 %v3365_v10, %v3351_v24  ;;  %v3241_v46 = vmax.f32 %v3217_v23, 0.0  ;;  %v9032_v7 = vpop.permute.xlu1 %4354  ;;  %v9034_v26 = vpop.permute.xlu0 %4349  ;;  %v4284_v1 = vadd.f32 %v8945_v21, %v4172_v32  ;;  %v4302_v13 = vmax.f32 %v9014_v22, 0.0  ;;  %v10118_v24 = vld [vmem:[#allocation78_spill] sm:$0xff] }
 0x3cd   :  { %4681 = vperm.xlu1 %5879, %v9024_v30   ;;  %4676 = vperm.xlu0 %5878, %v9029_v9   ;;  %v4330_v63 = vpack.c.bf16 %v4306_v20, %v4305_v51  ;;  %v4283_v50 = vadd.f32 %v8947_v36, %v4171_v47  ;;  %v4301_v31 = vmax.f32 %v4285_v59, 0.0  ;;  %v3354_v45 = vmul.f32 %v10118_v24, %v3242_v28  ;;  %v10119_v36 = vld [vmem:[#allocation72_spill] sm:$0xff] }
 0x3ce   :  { %v3367_v25 = vadd.f32 %v3366_v11, %v3352_v29  ;;  %v3353_v18 = vmul.f32 %v10117_v5, %v3241_v46  ;;  %v4329_v34 = vpack.c.bf16 %v4304_v12, %v4303_v55  ;;  %v4170_v23 = vmul.f32 %v8970_v16, %v8790_v35 }
 0x3cf   :  { %5812 = vmatprep.subr.bf16.mxu0 %v4330_v63  ;;  %v4169_v21 = vmul.f32 %v8970_v16, %v8792_v40  ;;  %v3355_v59 = vmul.f32 %v10119_v36, %v3243_v6  ;;  %v4300_v51 = vmax.f32 %v4284_v1, 0.0  ;;  %v4299_v8 = vmax.f32 %v4283_v50, 0.0 }
 0x3d0   :  { %v3368_v10 = vadd.f32 %v3367_v25, %v3353_v18  ;;  %v9047_v39 = vpop.permute.xlu1 %4364  ;;  %v9049_v37 = vpop.permute.xlu0 %4359  ;;  %5813 = vmatpush3.bf16.msra.mxu0 %v4330_v63  ;;  %v4282_v28 = vadd.f32 %v8925_v54, %v4170_v23  ;;  %v4328_v40 = vpack.c.bf16 %v4302_v13, %v4301_v31  ;;  %v4167_v29 = vmul.f32 %v8970_v16, %v8782_v44 }
 0x3d1   :  { %5021 = vperm.xlu1 %5879, %v8545_v49   ;;  %4724 = vperm.xlu0 %5878, %v4721_v43   ;;  %v4281_v20 = vadd.f32 %v8927_v61, %v4169_v21  ;;  %v4168_v49 = vmul.f32 %v8970_v16, %v8780_v15  ;;  %v4327_v15 = vpack.c.bf16 %v4300_v51, %v4299_v8  ;;  %v10121_v21 = vld [vmem:[#allocation109_spill] sm:$0xff] }
 0x3d2   :  { %v3369_v22 = vadd.f32 %v3368_v10, %v3354_v45  ;;  %5814 = vmatprep.subr.bf16.mxu0 %v4329_v34  ;;  %v4279_v11 = vadd.f32 %v8906_v60, %v4167_v29  ;;  %v4298_v46 = vmax.f32 %v4282_v28, 0.0  ;;  %v4166_v44 = vmul.f32 %v8970_v16, %v8770_v57 }
 0x3d3   :  { %v4280_v61 = vadd.f32 %v8904_v0, %v4168_v49  ;;  %v4297_v32 = vmax.f32 %v4281_v20, 0.0  ;;  %v9082_v0 = vld [vmem:[%s9321_s0 + $0x7] ss:$0 sm:$0xff]  ;;  %v4163_v1 = vmul.f32 %v8970_v16, %v8762_v62  ;;  %v10123_v49 = vld [vmem:[#allocation112_spill] sm:$0xff] }
 0x3d4   :  { %v3370_v12 = vadd.f32 %v3369_v22, %v3355_v59  ;;  %v9059_v55 = vpop.permute.xlu1 %4374  ;;  %v9061_v35 = vpop.permute.xlu0 %4369  ;;  %5815 = vmatpush3.bf16.msra.mxu0 %v4329_v34  ;;  %v4278_v60 = vadd.f32 %v8886_v56, %v4166_v44  ;;  %v4295_v57 = vmax.f32 %v4279_v11, 0.0  ;;  %v10120_v56 = vld [vmem:[#allocation71_spill] sm:$0xff]  ;;  %v5929_v44 = vld [vmem:[%s9324_s3 + $0x8] sm:$0xff]  }
 0x3d5   :  { %5031 = vperm.xlu1 %5879, %v8569_v48   ;;  %5026 = vperm.xlu0 %5878, %v8540_v42   ;;  %v4165_v42 = vmul.f32 %v8970_v16, %v8772_v58  ;;  %v4296_v5 = vmax.f32 %v4280_v61, 0.0  ;;  %v4275_v24 = vadd.f32 %v8870_v3, %v4163_v1 }
 0x3d6   :  { %v3371_v54 = vrot.slane %v3370_v12, 4  ;;  %5816 = vmatprep.subr.bf16.mxu0 %v4328_v40  ;;  %v4294_v10 = vmax.f32 %v4278_v60, 0.0  ;;  %v5930_v60 = vld [vmem:[%s9324_s3 + $0x10] sm:$0xff]  }
 0x3d7   :  { %v4277_v6 = vadd.f32 %v8888_v17, %v4165_v42  ;;  %v3386_v17 = vrot.slane %v10120_v56, %v9932_v2  ;;  %v4291_v22 = vmax.f32 %v4275_v24, 0.0  ;;  %v10128_v56 = vld [vmem:[#allocation108_spill] sm:$0xff] }
 0x3d8   :  { %v3372_v47 = vadd.f32 %v3371_v54, %v3370_v12  ;;  %v4824_v63 = vpop.permute.xlu1 %4823  ;;  %v9071_v25 = vpop.permute.xlu0 %4379  ;;  %5817 = vmatpush3.bf16.msra.mxu0 %v4328_v40  ;;  %v10122_v40 = vld [vmem:[#allocation97_spill] sm:$0xff]  ;;  %v5931_v24 = vld [vmem:[%s9324_s3 + $0x18] sm:$0xff]  }
 0x3d9   :  { %5278 = vperm.xlu1 %5879, %v8883_v27   ;;  %5036 = vperm.xlu0 %5878, %v8564_v4   ;;  %v4326_v27 = vpack.c.bf16 %v4298_v46, %v4297_v32  ;;  %v4164_v4 = vmul.f32 %v8970_v16, %v8760_v33  ;;  %v4849_v50 = vmul.f32 %v9082_v0, %v4824_v63  ;;  %v4293_v62 = vmax.f32 %v4277_v6, 0.0  ;;  %v10124_v32 = vld [vmem:[#allocation65_spill] sm:$0xff] }
 0x3da   :  { %v3373_v48 = vrot.slane %v3372_v47, 2  ;;  %5818 = vmatprep.subr.bf16.mxu0 %v4327_v15 }
 0x3db   :  { %v4276_v31 = vadd.f32 %v8868_v41, %v4164_v4  ;;  %v4324_v51 = vpack.c.bf16 %v4294_v10, %v4293_v62  ;;  %v5932_v10 = vld [vmem:[%s9324_s3 + $0x20] sm:$0xff]  }
 0x3dc   :  { %v3374_v18 = vadd.f32 %v3373_v48, %v3372_v47  ;;  %v4940_v43 = vpop.permute.xlu1 %4939  ;;  %v4829_v58 = vpop.permute.xlu0 %4828  ;;  %5819 = vmatpush3.bf16.msra.mxu0 %v4327_v15  ;;  %v10125_v47 = vld [vmem:[#allocation88_spill] sm:$0xff] }
 0x3dd   :  { %5041 = vperm.xlu1 %5879, %v8591_v52   ;;  %5283 = vperm.xlu0 %5878, %v8878_v14   ;;  %v4961_v45 = vadd.f32 %v4940_v43, %v4849_v50  ;;  %v4850_v33 = vmul.f32 %v9082_v0, %v4829_v58  ;;  %v4325_v52 = vpack.c.bf16 %v4296_v5, %v4295_v57  ;;  %v4292_v3 = vmax.f32 %v4276_v31, 0.0  ;;  %v10126_v57 = vld [vmem:[#allocation69_spill] sm:$0xff] }
 0x3de   :  { %v3375_v13 = vrot.slane %v3374_v18, 1  ;;  %5820 = vmatprep.subr.bf16.mxu0 %v4326_v27 }
 0x3df   :  { %v4977_v41 = vmax.f32 %v4961_v45, 0.0  ;;  %v4323_v11 = vpack.c.bf16 %v4292_v3, %v4291_v22  ;;  %v10133_v3 = vld [vmem:[#allocation39_spill] sm:$0xff] }
 0x3e0   :  { %v3376_v16 = vadd.f32 %v3375_v13, %v3374_v18  ;;  %v4814_v34 = vpop.permute.xlu1 %4813  ;;  %v4945_v23 = vpop.permute.xlu0 %4944  ;;  %5821 = vmatpush3.bf16.msra.mxu0 %v4326_v27  ;;  %v10127_v18 = vld [vmem:[#allocation87_spill] sm:$0xff] }
 0x3e1   :  { %v4962_v14 = vadd.f32 %v4945_v23, %v4850_v33  ;;  %5046 = vperm.xlu1 %5879, %v8586_v19   ;;  %5288 = vperm.xlu0 %5878, %v10121_v21   ;;  %v4847_v8 = vmul.f32 %v9082_v0, %v4814_v34  ;;  %v10130_v34 = vld [vmem:[#allocation56_spill] sm:$0xff] }
 0x3e2   :  { %v3387_v36 = vadd.f32 %v3386_v17, %v3376_v16  ;;  %5822 = vmatprep.subr.bf16.mxu0 %v4325_v52  ;;  %v10129_v17 = vld [vmem:[#allocation91_spill] sm:$0xff]  ;;  %v10131_v23 = vld [vmem:[#allocation60_spill] sm:$0xff] }
 0x3e3   :  { %v4978_v59 = vmax.f32 %v4962_v14, 0.0 }
 0x3e4   :  { %5952 = vtanh.f32 %v3387_v36  ;;  %v4930_v28 = vpop.permute.xlu1 %4929  ;;  %v4819_v20 = vpop.permute.xlu0 %4818  ;;  %5823 = vmatpush3.bf16.msra.mxu0 %v4325_v52 }
 0x3e5   :  { %v5002_v12 = vpack.c.bf16 %v4978_v59, %v4977_v41  ;;  %5051 = vperm.xlu1 %5879, %v10122_v40   ;;  %5293 = vperm.xlu0 %5878, %v10123_v49   ;;  %v4959_v19 = vadd.f32 %v4930_v28, %v4847_v8  ;;  %v4848_v29 = vmul.f32 %v9082_v0, %v4819_v20  ;;  %v10132_v59 = vld [vmem:[#allocation25_spill] sm:$0xff] }
 0x3e6   :  { %5824 = vmatprep.subr.bf16.mxu0 %v4324_v51  ;;  %v5933_v20 = vld [vmem:[%s9324_s3 + $0x28] sm:$0xff]  }
 0x3e7   :  { %5844 = vmatprep.subr.bf16.mxu1 %v5002_v12  ;;  %v4975_v63 = vmax.f32 %v4959_v19, 0.0  ;;  %v10134_v19 = vld [vmem:[#allocation107_spill] sm:$0xff] }
 0x3e8   :  { %v4804_v54 = vpop.permute.xlu1 %4803  ;;  %5845 = vmatpush3.bf16.msra.mxu1 %v5002_v12  ;;  %v4935_v61 = vpop.permute.xlu0 %4934  ;;  %5825 = vmatpush3.bf16.msra.mxu0 %v4324_v51  ;;  %v5934_v12 = vld [vmem:[%s9324_s3 + $0x30] sm:$0xff]  }
 0x3e9   :  { %v4960_v46 = vadd.f32 %v4935_v61, %v4848_v29  ;;  %5056 = vperm.xlu1 %5879, %v10124_v32   ;;  %5298 = vperm.xlu0 %5878, %v10125_v47   ;;  %v4845_v6 = vmul.f32 %v9082_v0, %v4804_v54  ;;  %v10135_v29 = vld [vmem:[#allocation64_spill] sm:$0xff]  ;;  %v10136_v47 = vld [vmem:[#allocation110_spill] sm:$0xff] }
 0x3ea   :  { %5826 = vmatprep.subr.bf16.mxu0 %v4323_v11 }
 0x3eb   :  { %v4976_v15 = vmax.f32 %v4960_v46, 0.0 }
 0x3ec   :  { %v4920_v42 = vpop.permute.xlu1 %4919  ;;  %v4809_v48 = vpop.permute.xlu0 %4808  ;;  %5827 = vmatpush3.bf16.msra.mxu0 %v4323_v11 }
 0x3ed   :  { %v5001_v5 = vpack.c.bf16 %v4976_v15, %v4975_v63  ;;  %5061 = vperm.xlu1 %5879, %v10126_v57   ;;  %5303 = vperm.xlu0 %5878, %v10127_v18   ;;  %v4957_v43 = vadd.f32 %v4920_v42, %v4845_v6  ;;  %v4846_v58 = vmul.f32 %v9082_v0, %v4809_v48  ;;  %v10137_v63 = vld [vmem:[#allocation41_spill] sm:$0xff]  ;;  %v5935_v42 = vld [vmem:[%s9324_s3 + $0x38] sm:$0xff]  }
 0x3ee   :  { %v10138_v57 = vld [vmem:[#allocation29_spill] sm:$0xff]  ;;  %v10139_v18 = vld [vmem:[#allocation111_spill] sm:$0xff] }
 0x3ef   :  { %5829 = vmatmul.mubr.bf16.vlgmr.msra.gmra.mxu0 %v5929_v44  ;;  %5846 = vmatprep.subr.bf16.mxu1 %v5001_v5  ;;  %v4973_v13 = vmax.f32 %v4957_v43, 0.0 }
 0x3f0   :  { %v4794_v27 = vpop.permute.xlu1 %4793  ;;  %5847 = vmatpush3.bf16.msra.mxu1 %v5001_v5  ;;  %v4925_v4 = vpop.permute.xlu0 %4924  ;;  %5832 = vmatprep.mubr.bf16.mxu0 %v5930_v60 }
 0x3f1   :  { %v5953_v1 = vpop.eup %5952  ;;  %v4958_v50 = vadd.f32 %v4925_v4, %v4846_v58  ;;  %5066 = vperm.xlu1 %5879, %v10128_v56   ;;  %5308 = vperm.xlu0 %5878, %v10129_v17   ;;  %v4843_v62 = vmul.f32 %v9082_v0, %v4794_v27 }
 0x3f2   :  { %3389 = vst [vmem:[#allocation3 + $0x4] sm:$0x1] %v5953_v1 }
 0x3f3   :  { %v4974_v31 = vmax.f32 %v4958_v50, 0.0  ;;  %v10140_v50 = vld [vmem:[#allocation55_spill] sm:$0xff] }
 0x3f4   :  { %v4910_v45 = vpop.permute.xlu1 %4909  ;;  %v4799_v33 = vpop.permute.xlu0 %4798 }
 0x3f5   :  { %v5000_v16 = vpack.c.bf16 %v4974_v31, %v4973_v13  ;;  %5071 = vperm.xlu1 %5879, %v10130_v34   ;;  %5313 = vperm.xlu0 %5878, %v10131_v23   ;;  %v4955_v52 = vadd.f32 %v4910_v45, %v4843_v62  ;;  %v4844_v14 = vmul.f32 %v9082_v0, %v4799_v33  ;;  %v5393_v33 = vld [vmem:[#allocation2] sm:$0x1] }
 0x3f7   :  { %5833 = vmatmul.mubr.bf16.gmra.mxu0 %v5931_v24  ;;  %5848 = vmatprep.subr.bf16.mxu1 %v5000_v16  ;;  %v4971_v22 = vmax.f32 %v4955_v52, 0.0 }
 0x3f8   :  { %v4784_v21 = vpop.permute.xlu1 %4783  ;;  %5849 = vmatpush3.bf16.msra.mxu1 %v5000_v16  ;;  %v4915_v36 = vpop.permute.xlu0 %4914  ;;  %5836 = vmatprep.mubr.bf16.mxu0 %v5932_v10 }
 0x3f9   :  { %v4956_v41 = vadd.f32 %v4915_v36, %v4844_v14  ;;  %5076 = vperm.xlu1 %5879, %v10132_v59   ;;  %5318 = vperm.xlu0 %5878, %v10133_v3   ;;  %v4841_v40 = vmul.f32 %v9082_v0, %v4784_v21 }
 0x3fb   :  { %v4972_v28 = vmax.f32 %v4956_v41, 0.0 }
 0x3fc   :  { %v4900_v51 = vpop.permute.xlu1 %4899  ;;  %v4789_v8 = vpop.permute.xlu0 %4788 }
 0x3fd   :  { %v4999_v49 = vpack.c.bf16 %v4972_v28, %v4971_v22  ;;  %5081 = vperm.xlu1 %5879, %v10134_v19   ;;  %5323 = vperm.xlu0 %5878, %v10135_v29   ;;  %v4953_v54 = vadd.f32 %v4900_v51, %v4841_v40  ;;  %v4842_v61 = vmul.f32 %v9082_v0, %v4789_v8  ;;  %v5938_v51 = vld [vmem:[%s9324_s3 + $0x10] sm:$0xff]   ;;  %v5940_v8 = vld [vmem:[%s9324_s3 + $0x20] sm:$0xff]   ;;  %v5941_v40 = vld [vmem:[%s9324_s3 + $0x28] sm:$0xff]  }
 0x3fe   :  { %v10141_v29 = vld [vmem:[#allocation82_spill] sm:$0xff] }
 0x3ff   :  { %5837 = vmatmul.mubr.bf16.gmra.mxu0 %v5933_v20  ;;  %5850 = vmatprep.subr.bf16.mxu1 %v4999_v49  ;;  %v4969_v15 = vmax.f32 %v4953_v54, 0.0 }
 0x400   :  { %v4774_v11 = vpop.permute.xlu1 %4773  ;;  %5851 = vmatpush3.bf16.msra.mxu1 %v4999_v49  ;;  %v4905_v46 = vpop.permute.xlu0 %4904  ;;  %5840 = vmatprep.mubr.bf16.mxu0 %v5934_v12  ;;  %v5942_v49 = vld [vmem:[%s9324_s3 + $0x30] sm:$0xff]  }
 0x401   :  { %v4954_v32 = vadd.f32 %v4905_v46, %v4842_v61  ;;  %5086 = vperm.xlu1 %5879, %v10136_v47   ;;  %5328 = vperm.xlu0 %5878, %v10137_v63   ;;  %v4839_v6 = vmul.f32 %v9082_v0, %v4774_v11  ;;  %v10142_v11 = vld [vmem:[#allocation81_spill] sm:$0xff]  ;;  %v10143_v63 = vld [vmem:[#allocation90_spill] sm:$0xff] }
 0x403   :  { %v4970_v44 = vmax.f32 %v4954_v32, 0.0 }
 0x404   :  { %v4890_v48 = vpop.permute.xlu1 %4889  ;;  %v4779_v60 = vpop.permute.xlu0 %4778 }
 0x405   :  { %v4998_v5 = vpack.c.bf16 %v4970_v44, %v4969_v15  ;;  %5091 = vperm.xlu1 %5879, %v10138_v57   ;;  %5333 = vperm.xlu0 %5878, %v10139_v18   ;;  %v4951_v43 = vadd.f32 %v4890_v48, %v4839_v6  ;;  %v4840_v58 = vmul.f32 %v9082_v0, %v4779_v60  ;;  %v10144_v44 = vld [vmem:[#allocation86_spill] sm:$0xff]  ;;  %v5943_v60 = vld [vmem:[%s9324_s3 + $0x38] sm:$0xff]  }
 0x406   :  { %v10145_v18 = vld [vmem:[#allocation31_spill] sm:$0xff] }
 0x407   :  { %5841 = vmatmul.mubr.bf16.gmra.mxu0 %v5935_v42  ;;  %5852 = vmatprep.subr.bf16.mxu1 %v4998_v5  ;;  %v4967_v56 = vmax.f32 %v4951_v43, 0.0 }
 0x408   :  { %v4764_v27 = vpop.permute.xlu1 %4763  ;;  %5853 = vmatpush3.bf16.msra.mxu1 %v4998_v5  ;;  %v4895_v4 = vpop.permute.xlu0 %4894 }
 0x409   :  { %v4952_v1 = vadd.f32 %v4895_v4, %v4840_v58  ;;  %5096 = vperm.xlu1 %5879, %v10140_v50   ;;  %5338 = vperm.xlu0 %5878, %v9008_v38   ;;  %v4837_v24 = vmul.f32 %v9082_v0, %v4764_v27  ;;  %v10146_v27 = vld [vmem:[#allocation47_spill] sm:$0xff] }
 0x40b   :  { %v4968_v17 = vmax.f32 %v4952_v1, 0.0  ;;  %v10147_v1 = vld [vmem:[#allocation85_spill] sm:$0xff] }
 0x40c   :  { %v4880_v13 = vpop.permute.xlu1 %4879  ;;  %v4769_v31 = vpop.permute.xlu0 %4768 }
 0x40d   :  { %v4997_v45 = vpack.c.bf16 %v4968_v17, %v4967_v56  ;;  %5348 = vperm.xlu1 %5879, %v9029_v9   ;;  %5343 = vperm.xlu0 %5878, %v9003_v53   ;;  %v4949_v10 = vadd.f32 %v4880_v13, %v4837_v24  ;;  %v4838_v62 = vmul.f32 %v9082_v0, %v4769_v31  ;;  %v10148_v17 = vld [vmem:[#allocation58_spill] sm:$0xff]  ;;  %v10149_v24 = vld [vmem:[#allocation89_spill] sm:$0xff] }
 0x40f   :  { %5854 = vmatprep.subr.bf16.mxu1 %v4997_v45  ;;  %v4965_v23 = vmax.f32 %v4949_v10, 0.0 }
 0x410   :  { %v4754_v16 = vpop.permute.xlu1 %4753  ;;  %5855 = vmatpush3.bf16.msra.mxu1 %v4997_v45  ;;  %v4885_v34 = vpop.permute.xlu0 %4884 }
 0x411   :  { %v4950_v38 = vadd.f32 %v4885_v34, %v4838_v62  ;;  %5396 = vperm.xlu1 %5879, %v5393_v33   ;;  %5353 = vperm.xlu0 %5878, %v9024_v30   ;;  %v4835_v9 = vmul.f32 %v9082_v0, %v4754_v16  ;;  %v5937_v30 = vld [vmem:[%s9324_s3 + $0x8] sm:$0xff]  }
 0x412   :  { %v10150_v62 = vld [vmem:[#allocation57_spill] sm:$0xff] }
 0x413   :  { %v4966_v52 = vmax.f32 %v4950_v38, 0.0  ;;  %v10151_v38 = vld [vmem:[#allocation96_spill] sm:$0xff] }
 0x414   :  { %v4870_v14 = vpop.permute.xlu1 %4869  ;;  %v4759_v21 = vpop.permute.xlu0 %4758 }
 0x415   :  { %v4996_v36 = vpack.c.bf16 %v4966_v52, %v4965_v23  ;;  %v4947_v53 = vadd.f32 %v4870_v14, %v4835_v9  ;;  %v4836_v41 = vmul.f32 %v9082_v0, %v4759_v21  ;;  %v5939_v0 = vld [vmem:[%s9324_s3 + $0x18] sm:$0xff]   ;;  %v10152_v52 = vld [vmem:[#allocation94_spill] sm:$0xff]  ;;  %s5983_s3 = smov [#allocation3]  }
 0x416   :  { %s5412_s20 = sshll.u32 %s5983_s3, 4  ;;  %s5413_s20 = int_to_ptr.vmem [resolvable:$true] %s5412_s20 }
 0x417   :  { %5856 = vmatprep.subr.bf16.mxu1 %v4996_v36  ;;  %v4963_v22 = vmax.f32 %v4947_v53, 0.0  ;;  %s5960_s0 = scalar_lea.vmem %s5413_s20, 128  ;;  %p5965_p1 = scmp.lt.s32.totalorder %s5413_s20, %s5413_s20 }
 0x418   :  { %5857 = vmatpush3.bf16.msra.mxu1 %v4996_v36  ;;  %v4875_v59 = vpop.permute.xlu0 %4874  ;;  %v10153_v36 = vld [vmem:[#allocation102_spill] sm:$0xff]  ;;  %p5961_p0 = scmp.ne.s32.totalorder %s5413_s20, %s5960_s0  ;;  %p5966_p2 = scmp.lt.s32.totalorder %s5960_s0, %s5960_s0 }
 0x419   :  { %v4948_v3 = vadd.f32 %v4875_v59, %v4836_v41 }
 0x41a   :  { %p5967_p3 = por %p5966_p2, %p5965_p1 }
 0x41b   :  { %v4964_v28 = vmax.f32 %v4948_v3, 0.0 }
 0x41c   :  { %p5968_p4 = pnand %p5967_p3, %p5961_p0 }
 0x41d   :  { %v4995_v20 = vpack.c.bf16 %v4964_v28, %v4963_v22 }
 0x41f   :  { %5858 = vmatprep.subr.bf16.mxu1 %v4995_v20 }
 0x420   :  { %5859 = vmatpush3.bf16.msra.mxu1 %v4995_v20  ;;  %v10154_v20 = vld [vmem:[#allocation62_spill] sm:$0xff] }
 0x423   :  { %5861 = vmatmul.mubr.bf16.vlgmr.msra.gmra.mxu1 %v5937_v30 }
 0x424   :  { %5864 = vmatprep.mubr.bf16.mxu1 %v5938_v51  ;;  %v10155_v51 = vld [vmem:[#allocation95_spill] sm:$0xff] }
 0x42b   :  { %5865 = vmatmul.mubr.bf16.gmra.mxu1 %v5939_v0 }
 0x42c   :  { %5868 = vmatprep.mubr.bf16.mxu1 %v5940_v8 }
 0x42f   :  { %v5798_v12 = vpop.f32.mrf.mxu1 }
 0x430   :  { %v3846_v46 = vadd.f32 %v5798_v12, %v10142_v11  ;;  %v10156_v12 = vld [vmem:[#allocation12_spill] sm:$0xff]  ;;  %v10158_v11 = vld [vmem:[#allocation15_spill] sm:$0xff] }
 0x431   :  { %v3837_v19 = vpop.f32.mrf.mxu1 }
 0x432   :  { %v3838_v54 = vadd.f32 %v3837_v19, %v10141_v29  ;;  %v3902_v6 = vmax.f32 %v3846_v46, 0.0  ;;  %v10157_v19 = vld [vmem:[#allocation23_spill] sm:$0xff] }
 0x433   :  { %v5799_v61 = vpop.f32.mrf.mxu1  ;;  %5869 = vmatmul.mubr.bf16.gmra.mxu1 %v5941_v40 }
 0x434   :  { %5872 = vmatprep.mubr.bf16.mxu1 %v5942_v49  ;;  %v3900_v47 = vmax.f32 %v3838_v54, 0.0  ;;  %v3849_v15 = vadd.f32 %v5799_v61, %v10143_v63  ;;  %v4014_v13 = vmul.f32 %v10148_v17, %v3902_v6  ;;  %v10164_v17 = vld [vmem:[#allocation104_spill] sm:$0xff] }
 0x435   :  { %v3840_v32 = vpop.f32.mrf.mxu1 }
 0x436   :  { %v3841_v42 = vadd.f32 %v3840_v32, %v10144_v44  ;;  %v4012_v43 = vmul.f32 %v10145_v18, %v3900_v47  ;;  %v3903_v58 = vmax.f32 %v3849_v15, 0.0  ;;  %v10159_v47 = vld [vmem:[#allocation43_spill] sm:$0xff] }
 0x437   :  { %v5802_v48 = vpop.f32.mrf.mxu1  ;;  %v10160_v15 = vld [vmem:[#allocation99_spill] sm:$0xff] }
 0x438   :  { %v3901_v5 = vmax.f32 %v3841_v42, 0.0  ;;  %v3862_v45 = vadd.f32 %v5802_v48, %v10149_v24  ;;  %v4015_v16 = vmul.f32 %v10150_v62, %v3903_v58  ;;  %v10165_v24 = vld [vmem:[#allocation103_spill] sm:$0xff]  ;;  %v10166_v62 = vld [vmem:[#allocation16_spill] sm:$0xff] }
 0x439   :  { %v3853_v57 = vpop.f32.mrf.mxu1 }
 0x43a   :  { %v4013_v4 = vmul.f32 %v10146_v27, %v3901_v5  ;;  %v3854_v50 = vadd.f32 %v3853_v57, %v10147_v1  ;;  %v3906_v9 = vmax.f32 %v3862_v45, 0.0  ;;  %v10162_v27 = vld [vmem:[#allocation66_spill] sm:$0xff]  ;;  %v10163_v1 = vld [vmem:[#allocation28_spill] sm:$0xff] }
 0x43b   :  { %v5803_v56 = vpop.f32.mrf.mxu1  ;;  %5873 = vmatmul.mubr.bf16.gmra.mxu1 %v5943_v60  ;;  %v10161_v60 = vld [vmem:[#allocation8_spill] sm:$0xff] }
 0x43c   :  { %v4028_v31 = vadd.f32 %v4013_v4, %v4012_v43  ;;  %v3904_v33 = vmax.f32 %v3854_v50, 0.0  ;;  %v3865_v23 = vadd.f32 %v5803_v56, %v10151_v38  ;;  %v4018_v40 = vmul.f32 %v10156_v12, %v3906_v9  ;;  %v10167_v38 = vld [vmem:[#allocation27_spill] sm:$0xff] }
 0x43d   :  { %v3856_v10 = vpop.f32.mrf.mxu1  ;;  %v10169_v9 = vld [vmem:[#allocation11_spill] sm:$0xff] }
 0x43e   :  { %v4029_v34 = vadd.f32 %v4028_v31, %v4014_v13  ;;  %v3857_v14 = vadd.f32 %v3856_v10, %v10152_v52  ;;  %v4016_v53 = vmul.f32 %v10153_v36, %v3904_v33  ;;  %v3907_v28 = vmax.f32 %v3865_v23, 0.0  ;;  %v10168_v52 = vld [vmem:[#allocation98_spill] sm:$0xff] }
 0x43f   :  { %v5806_v21 = vpop.f32.mrf.mxu1 }
 0x440   :  { %v4030_v41 = vadd.f32 %v4029_v34, %v4015_v16  ;;  %v3905_v59 = vmax.f32 %v3857_v14, 0.0  ;;  %v3878_v29 = vadd.f32 %v5806_v21, %v10157_v19  ;;  %v4019_v46 = vmul.f32 %v10158_v11, %v3907_v28  ;;  %v9213_v11 = vpop.permute.xlu0 %4389 }
 0x441   :  { %v3869_v3 = vpop.f32.mrf.mxu1 }
 0x442   :  { %v4031_v22 = vadd.f32 %v4030_v41, %v4016_v53  ;;  %v4017_v30 = vmul.f32 %v10154_v20, %v3905_v59  ;;  %v3870_v0 = vadd.f32 %v3869_v3, %v10155_v51  ;;  %v3910_v48 = vmax.f32 %v3878_v29, 0.0  ;;  %v10171_v20 = vld [vmem:[#allocation61_spill] sm:$0xff] }
 0x443   :  { %v5807_v8 = vpop.f32.mrf.mxu1 }
 0x444   :  { %v4032_v49 = vadd.f32 %v4031_v22, %v4017_v30  ;;  %v3908_v54 = vmax.f32 %v3870_v0, 0.0  ;;  %v3881_v63 = vadd.f32 %v5807_v8, %v10159_v47  ;;  %v4022_v13 = vmul.f32 %v10164_v17, %v3910_v48  ;;  %v10170_v22 = vld [vmem:[#allocation70_spill] sm:$0xff] }
 0x445   :  { %v3872_v61 = vpop.f32.mrf.mxu1  ;;  %v10172_v0 = vld [vmem:[#allocation74_spill] sm:$0xff] }
 0x446   :  { %v4033_v32 = vadd.f32 %v4032_v49, %v4018_v40  ;;  %v3873_v44 = vadd.f32 %v3872_v61, %v10160_v15  ;;  %v4020_v6 = vmul.f32 %v10161_v60, %v3908_v54  ;;  %v3911_v58 = vmax.f32 %v3881_v63, 0.0  ;;  %v9211_v54 = vpop.permute.xlu1 %4384 }
 0x447   :  { %v5810_v42 = vpop.f32.mrf.mxu1 }
 0x448   :  { %v4034_v5 = vadd.f32 %v4033_v32, %v4019_v46  ;;  %v3909_v57 = vmax.f32 %v3873_v44, 0.0  ;;  %v3894_v45 = vadd.f32 %v5810_v42, %v10165_v24  ;;  %v4023_v16 = vmul.f32 %v10166_v62, %v3911_v58  ;;  %v10173_v32 = vld [vmem:[#allocation20_spill] sm:$0xff]  ;;  %v9219_v42 = vpop.permute.xlu0 %4399 }
 0x449   :  { %v3885_v18 = vpop.f32.mrf.mxu1  ;;  %v4058_v47 = vrot.slane %v10173_v32, %v9932_v2 }
 0x44a   :  { %v4035_v43 = vadd.f32 %v4034_v5, %v4020_v6  ;;  %v4021_v4 = vmul.f32 %v10162_v27, %v3909_v57  ;;  %v3886_v50 = vadd.f32 %v3885_v18, %v10163_v1  ;;  %v3914_v21 = vmax.f32 %v3894_v45, 0.0  ;;  %v9217_v15 = vpop.permute.xlu1 %4394 }
 0x44b   :  { %v5811_v56 = vpop.f32.mrf.mxu1 }
 0x44c   :  { %v4036_v31 = vadd.f32 %v4035_v43, %v4021_v4  ;;  %v3912_v33 = vmax.f32 %v3886_v50, 0.0  ;;  %v3897_v23 = vadd.f32 %v5811_v56, %v10167_v38  ;;  %v4026_v30 = vmul.f32 %v10171_v20, %v3914_v21  ;;  %v9223_v60 = vpop.permute.xlu0 %4409 }
 0x44d   :  { %v3888_v10 = vpop.f32.mrf.mxu1 }
 0x44e   :  { %v4037_v34 = vadd.f32 %v4036_v31, %v4022_v13  ;;  %v3889_v14 = vadd.f32 %v3888_v10, %v10168_v52  ;;  %v4024_v36 = vmul.f32 %v10169_v9, %v3912_v33  ;;  %v3915_v3 = vmax.f32 %v3897_v23, 0.0  ;;  %v9221_v48 = vpop.permute.xlu1 %4404 }
 0x450   :  { %v4038_v53 = vadd.f32 %v4037_v34, %v4023_v16  ;;  %v3913_v41 = vmax.f32 %v3889_v14, 0.0  ;;  %v4027_v8 = vmul.f32 %v10172_v0, %v3915_v3  ;;  %v9227_v5 = vpop.permute.xlu0 %4419 }
 0x452   :  { %v4039_v59 = vadd.f32 %v4038_v53, %v4024_v36  ;;  %v4025_v28 = vmul.f32 %v10170_v22, %v3913_v41  ;;  %v9225_v6 = vpop.permute.xlu1 %4414 }
 0x454   :  { %v4040_v51 = vadd.f32 %v4039_v59, %v4025_v28  ;;  %v4607_v43 = vpop.permute.xlu0 %4606 }
 0x456   :  { %v4041_v12 = vadd.f32 %v4040_v51, %v4026_v30  ;;  %v9229_v18 = vpop.permute.xlu1 %4424 }
 0x458   :  { %v4042_v40 = vadd.f32 %v4041_v12, %v4027_v8  ;;  %v4617_v27 = vpop.permute.xlu0 %4616 }
 0x45a   :  { %v4043_v49 = vrot.slane %v4042_v40, 4  ;;  %v4612_v58 = vpop.permute.xlu1 %4611 }
 0x45c   :  { %v4044_v19 = vadd.f32 %v4043_v49, %v4042_v40  ;;  %v4627_v1 = vpop.permute.xlu0 %4626 }
 0x45e   :  { %v4045_v29 = vrot.slane %v4044_v19, 2  ;;  %v4622_v4 = vpop.permute.xlu1 %4621 }
 0x460   :  { %v4046_v61 = vadd.f32 %v4045_v29, %v4044_v19  ;;  %v4637_v56 = vpop.permute.xlu0 %4636 }
 0x462   :  { %v4047_v46 = vrot.slane %v4046_v61, 1  ;;  %v4632_v50 = vpop.permute.xlu1 %4631 }
 0x464   :  { %v4048_v63 = vadd.f32 %v4047_v46, %v4046_v61  ;;  %v9231_v13 = vpop.permute.xlu0 %4646 }
 0x466   :  { %v4059_v44 = vadd.f32 %v4058_v47, %v4048_v63  ;;  %v4642_v17 = vpop.permute.xlu1 %4641 }
 0x468   :  { %5954 = vtanh.f32 %v4059_v44  ;;  %v9235_v24 = vpop.permute.xlu0 %4656 }
 0x46a   :  { %v9233_v31 = vpop.permute.xlu1 %4651 }
 0x46c   :  { %v9239_v33 = vpop.permute.xlu0 %4666 }
 0x46e   :  { %v9237_v45 = vpop.permute.xlu1 %4661 }
 0x470   :  { %v9243_v62 = vpop.permute.xlu0 %4676 }
 0x472   :  { %v9241_v10 = vpop.permute.xlu1 %4671 }
 0x474   :  { %v9247_v34 = vpop.permute.xlu0 %4724 }
 0x475   :  { %v5955_v57 = vpop.eup %5954 }
 0x476   :  { %4061 = vst [vmem:[#allocation3 + $0x5] sm:$0x1] %v5955_v57  ;;  %v9245_v16 = vpop.permute.xlu1 %4681 }
 0x478   :  { %v9251_v23 = vpop.permute.xlu0 %5026 }
 0x47a   :  { %v9249_v38 = vpop.permute.xlu1 %5021 }
 0x47c   :  { %v9257_v41 = vpop.permute.xlu0 %5036 }
 0x47e   :  { %v9254_v9 = vpop.permute.xlu1 %5031 }
 0x482   :  { %v9261_v0 = vpop.permute.xlu1 %5278 }
 0x486   :  { %v9269_v57 = vpop.permute.xlu1 %5041 }
 0x4af   :  { %v5830_v52 = vpop.f32.mrf.mxu0 }
 0x4b0   :  { %v4518_v53 = vadd.f32 %v5830_v52, %v9049_v37  ;;  %v9264_v37 = vpop.permute.xlu0 %5283 }
 0x4b1   :  { %v4509_v14 = vpop.f32.mrf.mxu0 }
 0x4b2   :  { %v4510_v21 = vadd.f32 %v4509_v14, %v9034_v26  ;;  %v4574_v30 = vmax.f32 %v4518_v53, 0.0 }
 0x4b3   :  { %v5831_v36 = vpop.f32.mrf.mxu0 }
 0x4b4   :  { %v4572_v3 = vmax.f32 %v4510_v21, 0.0  ;;  %v4521_v22 = vadd.f32 %v5831_v36, %v9047_v39  ;;  %v4686_v29 = vmul.f32 %v4617_v27, %v4574_v30  ;;  %v9271_v21 = vpop.permute.xlu0 %5288 }
 0x4b5   :  { %v4512_v59 = vpop.f32.mrf.mxu0 }
 0x4b6   :  { %v4513_v28 = vadd.f32 %v4512_v59, %v9032_v7  ;;  %v4684_v26 = vmul.f32 %v4607_v43, %v4572_v3  ;;  %v4575_v12 = vmax.f32 %v4521_v22, 0.0 }
 0x4b7   :  { %v5834_v20 = vpop.f32.mrf.mxu0 }
 0x4b8   :  { %v4573_v51 = vmax.f32 %v4513_v28, 0.0  ;;  %v4534_v39 = vadd.f32 %v5834_v20, %v9071_v25  ;;  %v4687_v32 = vmul.f32 %v4622_v4, %v4575_v12  ;;  %v9275_v28 = vpop.permute.xlu1 %5046 }
 0x4b9   :  { %v4525_v8 = vpop.f32.mrf.mxu0 }
 0x4ba   :  { %v4685_v40 = vmul.f32 %v4612_v58, %v4573_v51  ;;  %v4526_v49 = vadd.f32 %v4525_v8, %v9061_v35  ;;  %v4578_v58 = vmax.f32 %v4534_v39, 0.0 }
 0x4bb   :  { %v5835_v19 = vpop.f32.mrf.mxu0 }
 0x4bc   :  { %v4700_v61 = vadd.f32 %v4685_v40, %v4684_v26  ;;  %v4576_v46 = vmax.f32 %v4526_v49, 0.0  ;;  %v4537_v63 = vadd.f32 %v5835_v19, %v9211_v54  ;;  %v4690_v3 = vmul.f32 %v4637_v56, %v4578_v58  ;;  %v9279_v26 = vpop.permute.xlu0 %5293 }
 0x4bd   :  { %v4528_v7 = vpop.f32.mrf.mxu0 }
 0x4be   :  { %v4701_v47 = vadd.f32 %v4700_v61, %v4686_v29  ;;  %v4529_v44 = vadd.f32 %v4528_v7, %v9059_v55  ;;  %v4688_v35 = vmul.f32 %v4627_v1, %v4576_v46  ;;  %v4579_v25 = vmax.f32 %v4537_v63, 0.0  ;;  %v9284_v61 = vpop.permute.xlu1 %5051 }
 0x4bf   :  { %v5838_v43 = vpop.f32.mrf.mxu0 }
 0x4c0   :  { %v4702_v52 = vadd.f32 %v4701_v47, %v4687_v32  ;;  %v4577_v14 = vmax.f32 %v4529_v44, 0.0  ;;  %v4550_v55 = vadd.f32 %v5838_v43, %v9219_v42  ;;  %v4691_v1 = vmul.f32 %v4642_v17, %v4579_v25  ;;  %v9288_v32 = vpop.permute.xlu0 %5298 }
 0x4c1   :  { %v4541_v27 = vpop.f32.mrf.mxu0 }
 0x4c2   :  { %v4703_v36 = vadd.f32 %v4702_v52, %v4688_v35  ;;  %v4689_v53 = vmul.f32 %v4632_v50, %v4577_v14  ;;  %v4542_v4 = vadd.f32 %v4541_v27, %v9213_v11  ;;  %v4582_v12 = vmax.f32 %v4550_v55, 0.0 }
 0x4c3   :  { %v5839_v59 = vpop.f32.mrf.mxu0 }
 0x4c4   :  { %v4704_v54 = vadd.f32 %v4703_v36, %v4689_v53  ;;  %v4580_v22 = vmax.f32 %v4542_v4, 0.0  ;;  %v4553_v51 = vadd.f32 %v5839_v59, %v9221_v48  ;;  %v9295_v27 = vpop.permute.xlu0 %5303 }
 0x4c5   :  { %v4544_v20 = vpop.f32.mrf.mxu0 }
 0x4c6   :  { %v4705_v30 = vadd.f32 %v4704_v54, %v4690_v3  ;;  %v4545_v8 = vadd.f32 %v4544_v20, %v9217_v15  ;;  %v4692_v11 = vmul.f32 %v9231_v13, %v4580_v22  ;;  %v4583_v19 = vmax.f32 %v4553_v51, 0.0 }
 0x4c7   :  { %v5842_v50 = vpop.f32.mrf.mxu0  ;;  %v4694_v15 = vmul.f32 %v9235_v24, %v4582_v12  ;;  %v5057_v24 = vpop.permute.xlu1 %5056 }
 0x4c8   :  { %v4706_v56 = vadd.f32 %v4705_v30, %v4691_v1  ;;  %v4581_v40 = vmax.f32 %v4545_v8, 0.0  ;;  %v4566_v46 = vadd.f32 %v5842_v50, %v9227_v5  ;;  %v4695_v47 = vmul.f32 %v9237_v45, %v4583_v19  ;;  %v5309_v4 = vpop.permute.xlu0 %5308 }
 0x4c9   :  { %v4557_v49 = vpop.f32.mrf.mxu0 }
 0x4ca   :  { %v4707_v42 = vadd.f32 %v4706_v56, %v4692_v11  ;;  %v4693_v29 = vmul.f32 %v9233_v31, %v4581_v40  ;;  %v4558_v17 = vadd.f32 %v4557_v49, %v9223_v60  ;;  %v4586_v60 = vmax.f32 %v4566_v46, 0.0 }
 0x4cb   :  { %v5843_v48 = vpop.f32.mrf.mxu0  ;;  %v5062_v53 = vpop.permute.xlu1 %5061 }
 0x4cc   :  { %v4708_v39 = vadd.f32 %v4707_v42, %v4693_v29  ;;  %v4584_v7 = vmax.f32 %v4558_v17, 0.0  ;;  %v4569_v44 = vadd.f32 %v5843_v48, %v9229_v18  ;;  %v4698_v36 = vmul.f32 %v9243_v62, %v4586_v60  ;;  %v5314_v55 = vpop.permute.xlu0 %5313 }
 0x4cd   :  { %v4560_v13 = vpop.f32.mrf.mxu0  ;;  %v4730_v62 = vrot.slane %v9247_v34, %v9932_v2 }
 0x4ce   :  { %v4709_v63 = vadd.f32 %v4708_v39, %v4694_v15  ;;  %v4561_v31 = vadd.f32 %v4560_v13, %v9225_v6  ;;  %v4696_v43 = vmul.f32 %v9239_v33, %v4584_v7  ;;  %v4587_v14 = vmax.f32 %v4569_v44, 0.0 }
 0x4cf   :  { %v9299_v3 = vpop.permute.xlu1 %5066 }
 0x4d0   :  { %v4710_v58 = vadd.f32 %v4709_v63, %v4695_v47  ;;  %v4585_v35 = vmax.f32 %v4561_v31, 0.0  ;;  %v4699_v25 = vmul.f32 %v9245_v16, %v4587_v14  ;;  %v5319_v51 = vpop.permute.xlu0 %5318 }
 0x4d2   :  { %v4711_v52 = vadd.f32 %v4710_v58, %v4696_v43  ;;  %v4697_v5 = vmul.f32 %v9241_v10, %v4585_v35 }
 0x4d3   :  { %v5072_v10 = vpop.permute.xlu1 %5071 }
 0x4d4   :  { %v4712_v45 = vadd.f32 %v4711_v52, %v4697_v5  ;;  %v5324_v29 = vpop.permute.xlu0 %5323 }
 0x4d6   :  { %v4713_v18 = vadd.f32 %v4712_v45, %v4698_v36 }
 0x4d7   :  { %v5077_v56 = vpop.permute.xlu1 %5076 }
 0x4d8   :  { %v4714_v6 = vadd.f32 %v4713_v18, %v4699_v25  ;;  %v5329_v44 = vpop.permute.xlu0 %5328 }
 0x4da   :  { %v4715_v59 = vrot.slane %v4714_v6, 4 }
 0x4dc   :  { %v4716_v33 = vadd.f32 %v4715_v59, %v4714_v6 }
 0x4de   :  { %v4717_v54 = vrot.slane %v4716_v33, 2 }
 0x4e0   :  { %v4718_v22 = vadd.f32 %v4717_v54, %v4716_v33 }
 0x4e2   :  { %v4719_v20 = vrot.slane %v4718_v22, 1 }
 0x4e3   :  { %v5862_v1 = vpop.f32.mrf.mxu1 }
 0x4e4   :  { %v4720_v30 = vadd.f32 %v4719_v20, %v4718_v22  ;;  %v5190_v11 = vadd.f32 %v5862_v1, %v9254_v9  ;;  %v5082_v9 = vpop.permute.xlu1 %5081 }
 0x4e5   :  { %v5181_v16 = vpop.f32.mrf.mxu1 }
 0x4e6   :  { %v4731_v8 = vadd.f32 %v4730_v62, %v4720_v30  ;;  %v5182_v50 = vadd.f32 %v5181_v16, %v9249_v38  ;;  %v5246_v34 = vmax.f32 %v5190_v11, 0.0 }
 0x4e7   :  { %v5863_v12 = vpop.f32.mrf.mxu1 }
 0x4e8   :  { %5956 = vtanh.f32 %v4731_v8  ;;  %v5244_v49 = vmax.f32 %v5182_v50, 0.0  ;;  %v5193_v42 = vadd.f32 %v5863_v12, %v9257_v41  ;;  %v5358_v47 = vmul.f32 %v9271_v21, %v5246_v34  ;;  %v5087_v21 = vpop.permute.xlu1 %5086 }
 0x4e9   :  { %v5184_v40 = vpop.f32.mrf.mxu1 }
 0x4ea   :  { %v5185_v19 = vadd.f32 %v5184_v40, %v9251_v23  ;;  %v5356_v39 = vmul.f32 %v9261_v0, %v5244_v49  ;;  %v5247_v46 = vmax.f32 %v5193_v42, 0.0 }
 0x4eb   :  { %v5866_v17 = vpop.f32.mrf.mxu1 }
 0x4ec   :  { %v5245_v48 = vmax.f32 %v5185_v19, 0.0  ;;  %v5206_v41 = vadd.f32 %v5866_v17, %v9284_v61  ;;  %v5359_v60 = vmul.f32 %v9279_v26, %v5247_v46  ;;  %v5334_v26 = vpop.permute.xlu0 %5333  ;;  %v5092_v62 = vpop.permute.xlu1 %5091 }
 0x4ed   :  { %v5197_v15 = vpop.f32.mrf.mxu1 }
 0x4ee   :  { %v5357_v38 = vmul.f32 %v9264_v37, %v5245_v48  ;;  %v5198_v7 = vadd.f32 %v5197_v15, %v9269_v57  ;;  %v5250_v37 = vmax.f32 %v5206_v41, 0.0 }
 0x4ef   :  { %v5867_v13 = vpop.f32.mrf.mxu1 }
 0x4f0   :  { %v5372_v63 = vadd.f32 %v5357_v38, %v5356_v39  ;;  %v5248_v23 = vmax.f32 %v5198_v7, 0.0  ;;  %v5209_v58 = vadd.f32 %v5867_v13, %v5057_v24  ;;  %v5362_v24 = vmul.f32 %v5309_v4, %v5250_v37 }
 0x4f1   :  { %v5200_v31 = vpop.f32.mrf.mxu1 }
 0x4f2   :  { %v5373_v43 = vadd.f32 %v5372_v63, %v5358_v47  ;;  %v5201_v0 = vadd.f32 %v5200_v31, %v9275_v28  ;;  %v5360_v57 = vmul.f32 %v9288_v32, %v5248_v23  ;;  %v5251_v45 = vmax.f32 %v5209_v58, 0.0 }
 0x4f3   :  { %v5870_v35 = vpop.f32.mrf.mxu1 }
 0x4f4   :  { %v5374_v52 = vadd.f32 %v5373_v43, %v5359_v60  ;;  %v5249_v14 = vmax.f32 %v5201_v0, 0.0  ;;  %v5222_v28 = vadd.f32 %v5870_v35, %v5072_v10  ;;  %v5363_v22 = vmul.f32 %v5314_v55, %v5251_v45 }
 0x4f5   :  { %v5957_v5 = vpop.eup %5956  ;;  %v5213_v36 = vpop.f32.mrf.mxu1 }
 0x4f6   :  { %4733 = vst [vmem:[#allocation3 + $0x6] sm:$0x1] %v5957_v5  ;;  %v5375_v61 = vadd.f32 %v5374_v52, %v5360_v57  ;;  %v5361_v25 = vmul.f32 %v9295_v27, %v5249_v14  ;;  %v5214_v18 = vadd.f32 %v5213_v36, %v5062_v53  ;;  %v5254_v16 = vmax.f32 %v5222_v28, 0.0  ;;  %v5339_v27 = vpop.permute.xlu0 %5338 }
 0x4f7   :  { %v5871_v6 = vpop.f32.mrf.mxu1 }
 0x4f8   :  { %v5376_v59 = vadd.f32 %v5375_v61, %v5361_v25  ;;  %v5252_v33 = vmax.f32 %v5214_v18, 0.0  ;;  %v5225_v20 = vadd.f32 %v5871_v6, %v5077_v56  ;;  %v5366_v42 = vmul.f32 %v5329_v44, %v5254_v16  ;;  %v5097_v56 = vpop.permute.xlu1 %5096 }
 0x4f9   :  { %v5216_v54 = vpop.f32.mrf.mxu1 }
 0x4fa   :  { %v5377_v32 = vadd.f32 %v5376_v59, %v5362_v24  ;;  %v5217_v1 = vadd.f32 %v5216_v54, %v9299_v3  ;;  %v5364_v8 = vmul.f32 %v5319_v51, %v5252_v33  ;;  %v5255_v40 = vmax.f32 %v5225_v20, 0.0  ;;  %v5344_v51 = vpop.permute.xlu0 %5343 }
 0x4fb   :  { %v5874_v30 = vpop.f32.mrf.mxu1 }
 0x4fc   :  { %v5378_v50 = vadd.f32 %v5377_v32, %v5363_v22  ;;  %v5253_v12 = vmax.f32 %v5217_v1, 0.0  ;;  %v5238_v55 = vadd.f32 %v5874_v30, %v5092_v62  ;;  %v5367_v3 = vmul.f32 %v5334_v26, %v5255_v40 }
 0x4fd   :  { %v5229_v53 = vpop.f32.mrf.mxu1 }
 0x4fe   :  { %v5379_v11 = vadd.f32 %v5378_v50, %v5364_v8  ;;  %v5365_v4 = vmul.f32 %v5324_v29, %v5253_v12  ;;  %v5230_v49 = vadd.f32 %v5229_v53, %v5082_v9  ;;  %v5258_v46 = vmax.f32 %v5238_v55, 0.0  ;;  %v5349_v9 = vpop.permute.xlu1 %5348  ;;  %v5354_v44 = vpop.permute.xlu0 %5353 }
 0x4ff   :  { %v5875_v10 = vpop.f32.mrf.mxu1 }
 0x500   :  { %v5380_v19 = vadd.f32 %v5379_v11, %v5365_v4  ;;  %v5256_v17 = vmax.f32 %v5230_v49, 0.0  ;;  %v5241_v15 = vadd.f32 %v5875_v10, %v5097_v56  ;;  %v5370_v41 = vmul.f32 %v5349_v9, %v5258_v46 }
 0x501   :  { %v5232_v34 = vpop.f32.mrf.mxu1 }
 0x502   :  { %v5381_v48 = vadd.f32 %v5380_v19, %v5366_v42  ;;  %v5233_v39 = vadd.f32 %v5232_v34, %v5087_v21  ;;  %v5368_v38 = vmul.f32 %v5339_v27, %v5256_v17  ;;  %v5259_v63 = vmax.f32 %v5241_v15, 0.0  ;;  %v5397_v57 = vpop.permute.xlu1 %5396 }
 0x503   :  { %v5402_v14 = vrot.slane %v5397_v57, %v9932_v2 }
 0x504   :  { %v5382_v7 = vadd.f32 %v5381_v48, %v5367_v3  ;;  %v5257_v13 = vmax.f32 %v5233_v39, 0.0  ;;  %v5371_v31 = vmul.f32 %v5354_v44, %v5259_v63 }
 0x506   :  { %v5383_v47 = vadd.f32 %v5382_v7, %v5368_v38  ;;  %v5369_v29 = vmul.f32 %v5344_v51, %v5257_v13 }
 0x508   :  { %v5384_v23 = vadd.f32 %v5383_v47, %v5369_v29 }
 0x50a   :  { %v5385_v60 = vadd.f32 %v5384_v23, %v5370_v41 }
 0x50c   :  { %v5386_v43 = vadd.f32 %v5385_v60, %v5371_v31 }
 0x50e   :  { %v5387_v58 = vrot.slane %v5386_v43, 4 }
 0x510   :  { %v5388_v0 = vadd.f32 %v5387_v58, %v5386_v43 }
 0x512   :  { %v5389_v35 = vrot.slane %v5388_v0, 2 }
 0x514   :  { %v5390_v37 = vadd.f32 %v5389_v35, %v5388_v0 }
 0x516   :  { %v5391_v52 = vrot.slane %v5390_v37, 1 }
 0x518   :  { %v5392_v5 = vadd.f32 %v5391_v52, %v5390_v37 }
 0x51a   :  { %v5403_v21 = vadd.f32 %v5402_v14, %v5392_v5 }
 0x51c   :  { %5958 = vtanh.f32 %v5403_v21 }
 0x529   :  { %v5959_v36 = vpop.eup %5958 }
 0x52a   :  { %5405 = vst [vmem:[#allocation3 + $0x7] sm:$0x1] %v5959_v36 }
 0x52b   :  { %5971 = shalt.err (!%p5968_p4)
}
 0x52c   :  { %5415 = dma.vmem_to_hbm [thread:$0]  %s5413_s20, 128, %s9328_s7, [#allocation4]  }
 0x52d   :  { %5980 = dma.done.wait [#allocation4], 128  }
 0x52e   :  { %5981 = vsyncadd [#allocation4], 4294967168 }
 0x52f   :  { %5419 = vsyncpa [#allocation4], 1 }

</bundles_post_ra>
